<compile_context>
chip_gen: v6e
topology: v6e:2x2x1
jax: 0.10.0
libtpu: 0.0.40
codegen_flags: <defaults>
</compile_context>

<pallas_src>
import functools
import math

import jax
import jax.numpy as jnp
from jax.experimental import pallas as pl
from jax.experimental.pallas import tpu as pltpu


# ----------------------------------------------------------------------------
# Row layout of the packed (rows, 128) f32 vector blob (biases + LayerNorm params)
# ----------------------------------------------------------------------------
_V_CONV1_B = 0          # width 64
_V_CONV2_B = 1          # width F
_V_OUT_B = 2            # width input_dim
_V_CA_B = 3             # width n_dec * F   (fused cross-attn biases, concatenated)
_V_LAYER0 = 4
_ENC_ROWS = 6           # [b_attn, b_ffn2, ln1_g, ln1_b, ln2_g, ln2_b]
_DEC_ROWS = 8           # [b_attn, b_ffn2, ln1_g, ln1_b, ln2_g, ln2_b, ln3_g, ln3_b]


def _enc_base(l):
    return _V_LAYER0 + l * _ENC_ROWS


def _dec_base(l, n_enc):
    return _V_LAYER0 + n_enc * _ENC_ROWS + l * _DEC_ROWS


# ----------------------------------------------------------------------------
# The single fused kernel: conv1 -> pool -> conv2 -> encoder*N -> decoder*N -> head
# ----------------------------------------------------------------------------
def _fused_model_kernel(patches_ref, w_c1_ref, w_c2_ref, w_sq_ref, w_ffn1_ref,
                        w_ffn2_ref, b_ffn1_ref, w_out_ref, vecs_ref, out_ref,
                        *, n_enc, n_dec, n_spatial, group, nimg, n_src, f,
                        input_dim, eps=1e-5):
    bf16 = jnp.bfloat16

    def vec(row, width):
        # One packed (1, width) f32 bias / norm vector.
        return vecs_ref[row:row + 1, 0:width]

    def mm(x, w):
        # bf16 MXU operands, f32 accumulation.
        return jnp.dot(x.astype(bf16), w, preferred_element_type=jnp.float32)

    def layer_norm(x, g, b):
        m = jnp.mean(x, axis=-1, keepdims=True)
        c = x - m
        v = jnp.mean(c * c, axis=-1, keepdims=True)
        return c * jax.lax.rsqrt(v + eps) * g + b

    # ---- feature extractor: Conv(3x3,p1)+ReLU -> MaxPool(2) -> Conv+ReLU ------
    # conv1 as one im2col matmul; rows are spatial-major, each spatial group is
    # padded to `group` (=8) rows so the pooling max uses (8,128)-aligned slices.
    y1 = mm(patches_ref[...], w_c1_ref[...])                     # (n_spatial*group, 64)
    pooled = y1[0:group, :]
    for s in range(1, n_spatial):
        pooled = jnp.maximum(pooled, y1[s * group:(s + 1) * group, :])
    # Bias + ReLU commute with the max (same bias at every spatial position).
    pooled = jnp.maximum(pooled + vec(_V_CONV1_B, 64), 0.0)      # (group, 64)
    # conv2 (pad=1) on the 1x1 pooled map reduces exactly to its centre tap.
    feat = jnp.maximum(mm(pooled, w_c2_ref[...]) + vec(_V_CONV2_B, f), 0.0)

    x = feat[0:n_src, :]                 # src features  (B, F) -> encoder
    y = feat[n_src:nimg, :]              # tgt features  (B, F) -> decoder

    # ---- transformer encoder (post-norm, dropout == identity, seq_len == 1) ---
    # seq_len == 1  =>  softmax over a single key is exactly 1, so each attention
    # is the prep-time-fused single matmul  x @ (Wv^T Wo^T) + (bv Wo^T + bo).
    for l in range(n_enc):
        base = _enc_base(l)
        attn = mm(x, w_sq_ref[...])[:, l * f:(l + 1) * f] + vec(base + 0, f)
        x = layer_norm(x + attn, vec(base + 2, f), vec(base + 3, f))
        h = jnp.maximum(mm(x, w_ffn1_ref[l]) + b_ffn1_ref[l:l + 1, :], 0.0)
        ff = mm(h, w_ffn2_ref[...])[:, l * f:(l + 1) * f] + vec(base + 1, f)
        x = layer_norm(x + ff, vec(base + 4, f), vec(base + 5, f))
    memory = x

    # ---- transformer decoder --------------------------------------------------
    # Cross-attention (seq 1) depends only on `memory`: compute every decoder
    # layer's cross-attention with one matmul, slice per layer inside the loop.
    n_sa = n_enc + n_dec
    ca_all = (mm(memory, w_sq_ref[...])[:, n_sa * f:(n_sa + n_dec) * f]
              + vec(_V_CA_B, n_dec * f))                          # (B, n_dec*F)

    for l in range(n_dec):
        base = _dec_base(l, n_enc)
        attn = (mm(y, w_sq_ref[...])[:, (n_enc + l) * f:(n_enc + l + 1) * f]
                + vec(base + 0, f))
        y = layer_norm(y + attn, vec(base + 2, f), vec(base + 3, f))
        y = layer_norm(y + ca_all[:, l * f:(l + 1) * f],
                       vec(base + 4, f), vec(base + 5, f))
        li = n_enc + l
        h = jnp.maximum(mm(y, w_ffn1_ref[li]) + b_ffn1_ref[li:li + 1, :], 0.0)
        ff = mm(h, w_ffn2_ref[...])[:, li * f:(li + 1) * f] + vec(base + 1, f)
        y = layer_norm(y + ff, vec(base + 6, f), vec(base + 7, f))

    # ---- output head -----------------------------------------------------------
    out_ref[...] = (mm(y, w_out_ref[...])
                    + vec(_V_OUT_B, input_dim)).astype(out_ref.dtype)


# ----------------------------------------------------------------------------
# Host-side glue
# ----------------------------------------------------------------------------
def _conv1_patches(x_nchw, group):
    """im2col for the 3x3 / pad-1 / stride-1 conv.

    Rows are spatial-major with each spatial position's image group zero-padded
    to `group` rows (sublane-aligned):  row = spatial * group + image,
    feature = (ky*3 + kx) * Cin + cin."""
    n, c, h, w = x_nchw.shape
    x = jnp.transpose(x_nchw, (0, 2, 3, 1))                      # NHWC
    xp = jnp.pad(x, ((0, 0), (1, 1), (1, 1), (0, 0)))
    taps = [xp[:, ky:ky + h, kx:kx + w, :] for ky in range(3) for kx in range(3)]
    pat = jnp.concatenate(taps, axis=-1)                         # (n, h, w, 9c)
    pat = jnp.transpose(pat, (1, 2, 0, 3)).reshape(h * w, n, 9 * c)
    pat = jnp.pad(pat, ((0, 0), (0, group - n), (0, 0)))
    return pat.reshape(h * w * group, 9 * c)


def pallas_forward(src, tgt, p, *, input_dim, feature_dim, n_enc, n_dec):
    b, _, h, w = src.shape
    # The module's Flatten feeds d_model=feature_dim directly, so the spatial map
    # must collapse to 1x1 after MaxPool2d(2) -> the input spatial size must be 2x2.
    assert (h, w) == (2, 2), "DynamicRuleBasedTransformer requires 2x2 spatial input"
    nimg = 2 * b
    group = ((nimg + 7) // 8) * 8
    imgs = jnp.concatenate([src, tgt], axis=0)                   # (2B, Cin, H, W)
    patches = _conv1_patches(imgs, group)                        # (H*W*group, 9*Cin)

    kernel = functools.partial(
        _fused_model_kernel, n_enc=n_enc, n_dec=n_dec, n_spatial=h * w,
        group=group, nimg=nimg, n_src=b, f=feature_dim, input_dim=input_dim)

    # Single grid-less invocation: all (~1.1 MB of packed, mostly-bf16) weights and
    # every activation stay VMEM-resident for the duration of the kernel.
    # NOTE: the per-call floor is this weight DMA + launch overhead.  If invoked
    # repeatedly, grow the batch (extra rows are nearly free on the MXU up to ~128)
    # or keep weights VMEM-resident across calls to amortize it; on v7x a batch
    # large enough to be worth splitting should also get a parallel grid axis so
    # both TensorCores are used.
    return pl.pallas_call(
        kernel,
        out_shape=jax.ShapeDtypeStruct((b, input_dim), jnp.float32),
        compiler_params=pltpu.CompilerParams(vmem_limit_bytes=32 * 1024 * 1024),
    )(patches, p["w_c1"], p["w_c2"], p["w_sq"], p["w_ffn1"], p["w_ffn2"],
      p["b_ffn1"], p["w_out"], p["vecs"])


# ----------------------------------------------------------------------------
# Parameters: PyTorch-layout init + one-time kernel-friendly packing
# ----------------------------------------------------------------------------
def init_params(key, input_dim, feature_dim, n_enc, n_dec, d_ff=2048):
    keys = iter(jax.random.split(key, 1024))

    def nrm(shape, scale=0.05):
        return scale * jax.random.normal(next(keys), shape, dtype=jnp.float32)

    f = feature_dim

    def attn():
        return dict(in_proj_w=nrm((3 * f, f)), in_proj_b=nrm((3 * f,)),
                    out_w=nrm((f, f)), out_b=nrm((f,)))

    def enc_layer():
        return dict(self_attn=attn(),
                    lin1_w=nrm((d_ff, f)), lin1_b=nrm((d_ff,)),
                    lin2_w=nrm((f, d_ff)), lin2_b=nrm((f,)),
                    norm1_w=jnp.ones((f,), jnp.float32), norm1_b=jnp.zeros((f,), jnp.float32),
                    norm2_w=jnp.ones((f,), jnp.float32), norm2_b=jnp.zeros((f,), jnp.float32))

    def dec_layer():
        d = enc_layer()
        d["cross_attn"] = attn()
        d["norm3_w"] = jnp.ones((f,), jnp.float32)
        d["norm3_b"] = jnp.zeros((f,), jnp.float32)
        return d

    fe = dict(conv1_w=nrm((64, input_dim, 3, 3)), conv1_b=nrm((64,)),
              conv2_w=nrm((feature_dim, 64, 3, 3)), conv2_b=nrm((feature_dim,)))
    return dict(fe=fe,
                encoder=[enc_layer() for _ in range(n_enc)],
                decoder=[dec_layer() for _ in range(n_dec)],
                out_w=nrm((input_dim, f)), out_b=nrm((input_dim,)))


def prepare_params(params, input_dim, feature_dim, n_enc, n_dec):
    """One-time packing of PyTorch-layout parameters into kernel-friendly blobs."""
    f = feature_dim
    bf16 = jnp.bfloat16

    def fuse_attn(a):
        # seq_len == 1:  attn(x) == out_proj(v_proj(x)) == x @ (Wv^T Wo^T) + (bv Wo^T + bo)
        wv = a["in_proj_w"][2 * f:3 * f]                          # V rows of [Wq; Wk; Wv]
        bv = a["in_proj_b"][2 * f:3 * f]
        w_fused = wv.T @ a["out_w"].T                             # (F, F), fused in f32
        b_fused = bv @ a["out_w"].T + a["out_b"]                  # (F,)
        return w_fused, b_fused

    enc, dec = params["encoder"], params["decoder"]
    sa = [fuse_attn(lp["self_attn"]) for lp in enc + dec]
    ca = [fuse_attn(lp["cross_attn"]) for lp in dec]

    # Every fused 32x32 attention matrix, concatenated lane-wise:
    #   [enc_sa_0 | enc_sa_1 | dec_sa_0 | dec_sa_1 | dec_ca_0 | dec_ca_1]
    w_sq = jnp.concatenate([w for w, _ in sa] + [w for w, _ in ca], axis=1).astype(bf16)

    layers = enc + dec
    w_ffn1 = jnp.stack([lp["lin1_w"].T for lp in layers]).astype(bf16)       # (L, F, d_ff)
    # Down-projections concatenated lane-wise -> (d_ff, L*F): lane-dense in HBM.
    w_ffn2 = jnp.concatenate([lp["lin2_w"].T for lp in layers], axis=1).astype(bf16)
    b_ffn1 = jnp.stack([lp["lin1_b"] for lp in layers]).astype(jnp.float32)  # (L, d_ff)

    cin = params["fe"]["conv1_w"].shape[1]
    w_c1 = jnp.transpose(params["fe"]["conv1_w"], (2, 3, 1, 0)).reshape(9 * cin, -1).astype(bf16)
    w_c2 = params["fe"]["conv2_w"][:, :, 1, 1].T.astype(bf16)                # centre tap (64, F)
    w_out = params["out_w"].T.astype(bf16)                                   # (F, input_dim)

    # All small f32 vectors (biases, LayerNorm params) packed one-per-row into a
    # single (rows, 128) f32 array, indexed with static row constants in-kernel.
    n_rows = _V_LAYER0 + _ENC_ROWS * n_enc + _DEC_ROWS * n_dec
    rows = [None] * n_rows

    def pack(v):
        v = jnp.asarray(v, jnp.float32).reshape(-1)
        return jnp.pad(v, (0, 128 - v.shape[0]))

    rows[_V_CONV1_B] = pack(params["fe"]["conv1_b"])
    rows[_V_CONV2_B] = pack(params["fe"]["conv2_b"])
    rows[_V_OUT_B] = pack(params["out_b"])
    rows[_V_CA_B] = pack(jnp.concatenate([b for _, b in ca]))
    for l, lp in enumerate(enc):
        base = _enc_base(l)
        rows[base + 0] = pack(sa[l][1])
        rows[base + 1] = pack(lp["lin2_b"])
        rows[base + 2] = pack(lp["norm1_w"])
        rows[base + 3] = pack(lp["norm1_b"])
        rows[base + 4] = pack(lp["norm2_w"])
        rows[base + 5] = pack(lp["norm2_b"])
    for l, lp in enumerate(dec):
        base = _dec_base(l, n_enc)
        rows[base + 0] = pack(sa[n_enc + l][1])
        rows[base + 1] = pack(lp["lin2_b"])
        rows[base + 2] = pack(lp["norm1_w"])
        rows[base + 3] = pack(lp["norm1_b"])
        rows[base + 4] = pack(lp["norm2_w"])
        rows[base + 5] = pack(lp["norm2_b"])
        rows[base + 6] = pack(lp["norm3_w"])
        rows[base + 7] = pack(lp["norm3_b"])
    vecs = jnp.stack(rows)                                                   # (n_rows, 128)

    return dict(w_c1=w_c1, w_c2=w_c2, w_sq=w_sq, w_ffn1=w_ffn1, w_ffn2=w_ffn2,
                b_ffn1=b_ffn1, w_out=w_out, vecs=vecs)


# ----------------------------------------------------------------------------
# Pure-JAX reference (full general math, PyTorch layout, f32) for checking
# ----------------------------------------------------------------------------
def reference_forward(src, tgt, params, n_heads):
    def conv_relu(x, w, b):
        y = jax.lax.conv_general_dilated(
            x, w, window_strides=(1, 1), padding=((1, 1), (1, 1)),
            dimension_numbers=("NCHW", "OIHW", "NCHW"))
        return jax.nn.relu(y + b[None, :, None, None])

    def feats(x, fp):
        y = conv_relu(x, fp["conv1_w"], fp["conv1_b"])
        y = jax.lax.reduce_window(y, -jnp.inf, jax.lax.max,
                                  (1, 1, 2, 2), (1, 1, 2, 2), "VALID")
        y = conv_relu(y, fp["conv2_w"], fp["conv2_b"])
        return y.reshape(y.shape[0], -1)

    def mha(q, k, v, ap):
        s_q, n, e = q.shape
        s_k = k.shape[0]
        dh = e // n_heads
        wq, wk, wv = jnp.split(ap["in_proj_w"], 3, axis=0)
        bq, bk, bv = jnp.split(ap["in_proj_b"], 3)
        qp, kp, vp = q @ wq.T + bq, k @ wk.T + bk, v @ wv.T + bv

        def heads(x, s):
            return x.reshape(s, n, n_heads, dh).transpose(1, 2, 0, 3)

        qh, kh, vh = heads(qp, s_q), heads(kp, s_k), heads(vp, s_k)
        scores = jnp.einsum("nhqd,nhkd->nhqk", qh, kh) / math.sqrt(dh)
        attn = jax.nn.softmax(scores, axis=-1)
        o = jnp.einsum("nhqk,nhkd->nhqd", attn, vh)
        o = o.transpose(2, 0, 1, 3).reshape(s_q, n, e)
        return o @ ap["out_w"].T + ap["out_b"]

    def ln(x, g, b):
        m = jnp.mean(x, -1, keepdims=True)
        v = jnp.mean((x - m) ** 2, -1, keepdims=True)
        return (x - m) / jnp.sqrt(v + 1e-5) * g + b

    def ffn(x, lp):
        h = jax.nn.relu(x @ lp["lin1_w"].T + lp["lin1_b"])
        return h @ lp["lin2_w"].T + lp["lin2_b"]

    def enc_layer(x, lp):
        x = ln(x + mha(x, x, x, lp["self_attn"]), lp["norm1_w"], lp["norm1_b"])
        return ln(x + ffn(x, lp), lp["norm2_w"], lp["norm2_b"])

    def dec_layer(x, mem, lp):
        x = ln(x + mha(x, x, x, lp["self_attn"]), lp["norm1_w"], lp["norm1_b"])
        x = ln(x + mha(x, mem, mem, lp["cross_attn"]), lp["norm2_w"], lp["norm2_b"])
        return ln(x + ffn(x, lp), lp["norm3_w"], lp["norm3_b"])

    s = feats(src, params["fe"])[None]
    t = feats(tgt, params["fe"])[None]
    for lp in params["encoder"]:
        s = enc_layer(s, lp)
    for lp in params["decoder"]:
        t = dec_layer(t, s, lp)
    return t[0] @ params["out_w"].T + params["out_b"]


# ----------------------------------------------------------------------------
if __name__ == "__main__":
    input_dim, feature_dim, n_heads = 4, 32, 8
    n_enc, n_dec = 2, 2
    B, H, W = 2, 2, 2   # 2x2 spatial so Flatten yields exactly feature_dim features

    key = jax.random.PRNGKey(0)
    k_src, k_tgt = jax.random.split(key)
    src = jax.random.normal(k_src, (B, input_dim, H, W), dtype=jnp.float32)
    tgt = jax.random.normal(k_tgt, (B, input_dim, H, W), dtype=jnp.float32)

    params = init_params(jax.random.PRNGKey(42), input_dim, feature_dim, n_enc, n_dec)
    prepped = prepare_params(params, input_dim, feature_dim, n_enc, n_dec)

    fwd = jax.jit(functools.partial(pallas_forward, input_dim=input_dim,
                                    feature_dim=feature_dim, n_enc=n_enc, n_dec=n_dec))
    out = jax.block_until_ready(fwd(src, tgt, prepped))

    assert out.shape == (B, input_dim), out.shape
    assert bool(jnp.all(jnp.isfinite(out)))

    # Numerical check against a pure-f32 JAX reference of the PyTorch module.
    # (bf16 matmul weights/operands introduce a small, bounded drift.)
    ref = jax.jit(functools.partial(reference_forward, n_heads=n_heads))(src, tgt, params)
    max_err = float(jnp.max(jnp.abs(out - ref)))
    assert bool(jnp.allclose(out, ref, rtol=3e-2, atol=3e-2)), max_err

    print("KERNEL_OK")
</pallas_src>

<mosaic_0001>
module attributes {stable_mosaic.version = 11 : i64} {
  func.func @_fused_model_kernel(%arg0: memref<32x36xf32, #tpu.memory_space<vmem>>, %arg1: memref<36x64xbf16, #tpu.memory_space<vmem>>, %arg2: memref<64x32xbf16, #tpu.memory_space<vmem>>, %arg3: memref<32x192xbf16, #tpu.memory_space<vmem>>, %arg4: memref<4x32x2048xbf16, #tpu.memory_space<vmem>>, %arg5: memref<2048x128xbf16, #tpu.memory_space<vmem>>, %arg6: memref<4x2048xf32, #tpu.memory_space<vmem>>, %arg7: memref<32x4xbf16, #tpu.memory_space<vmem>>, %arg8: memref<32x128xf32, #tpu.memory_space<vmem>>, %arg9: memref<2x4xf32, #tpu.memory_space<vmem>>) attributes {dimension_semantics = [], scalar_prefetch = 0 : i64, scratch_operands = 0 : i64, tpu.core_type = #tpu.core_type<tc>} {
    %c0 = arith.constant 0 : index
    %c0_0 = arith.constant 0 : index
    %0 = vector.load %arg0[%c0, %c0_0] : memref<32x36xf32, #tpu.memory_space<vmem>>, vector<32x36xf32>
    %c0_1 = arith.constant 0 : index
    %c0_2 = arith.constant 0 : index
    %1 = vector.load %arg1[%c0_1, %c0_2] : memref<36x64xbf16, #tpu.memory_space<vmem>>, vector<36x64xbf16>
    %2 = arith.truncf %0 : vector<32x36xf32> to vector<32x36xbf16>
    %cst = arith.constant dense<0.000000e+00> : vector<32x64xf32>
    %3 = tpu.matmul %2, %1, %cst {dimension_numbers = #tpu.dot_dimension_numbers<[1], [0], [0], [1], [0, 0, 1, 1], [], []>} : vector<32x36xbf16>, vector<36x64xbf16>, vector<32x64xf32> -> vector<32x64xf32>
    %4 = vector.extract_strided_slice %3 {offsets = [0, 0], sizes = [8, 64], strides = [1, 1]} : vector<32x64xf32> to vector<8x64xf32>
    %5 = vector.extract_strided_slice %3 {offsets = [8, 0], sizes = [8, 64], strides = [1, 1]} : vector<32x64xf32> to vector<8x64xf32>
    %6 = arith.maximumf %4, %5 : vector<8x64xf32>
    %7 = vector.extract_strided_slice %3 {offsets = [16, 0], sizes = [8, 64], strides = [1, 1]} : vector<32x64xf32> to vector<8x64xf32>
    %8 = arith.maximumf %6, %7 : vector<8x64xf32>
    %9 = vector.extract_strided_slice %3 {offsets = [24, 0], sizes = [8, 64], strides = [1, 1]} : vector<32x64xf32> to vector<8x64xf32>
    %10 = arith.maximumf %8, %9 : vector<8x64xf32>
    %c0_3 = arith.constant 0 : index
    %c0_4 = arith.constant 0 : index
    %11 = vector.load %arg8[%c0_3, %c0_4] : memref<32x128xf32, #tpu.memory_space<vmem>>, vector<1x64xf32>
    %12 = vector.broadcast %11 : vector<1x64xf32> to vector<8x64xf32>
    %13 = arith.addf %10, %12 : vector<8x64xf32>
    %cst_5 = arith.constant 0.000000e+00 : f32
    %14 = vector.broadcast %cst_5 : f32 to vector<8x64xf32>
    %15 = arith.maximumf %13, %14 : vector<8x64xf32>
    %c0_6 = arith.constant 0 : index
    %c0_7 = arith.constant 0 : index
    %16 = vector.load %arg2[%c0_6, %c0_7] : memref<64x32xbf16, #tpu.memory_space<vmem>>, vector<64x32xbf16>
    %17 = arith.truncf %15 : vector<8x64xf32> to vector<8x64xbf16>
    %cst_8 = arith.constant dense<0.000000e+00> : vector<8x32xf32>
    %18 = tpu.matmul %17, %16, %cst_8 {dimension_numbers = #tpu.dot_dimension_numbers<[1], [0], [0], [1], [0, 0, 1, 1], [], []>} : vector<8x64xbf16>, vector<64x32xbf16>, vector<8x32xf32> -> vector<8x32xf32>
    %c1 = arith.constant 1 : index
    %c0_9 = arith.constant 0 : index
    %19 = vector.load %arg8[%c1, %c0_9] : memref<32x128xf32, #tpu.memory_space<vmem>>, vector<1x32xf32>
    %20 = vector.broadcast %19 : vector<1x32xf32> to vector<8x32xf32>
    %21 = arith.addf %18, %20 : vector<8x32xf32>
    %cst_10 = arith.constant 0.000000e+00 : f32
    %22 = vector.broadcast %cst_10 : f32 to vector<8x32xf32>
    %23 = arith.maximumf %21, %22 : vector<8x32xf32>
    %24 = vector.extract_strided_slice %23 {offsets = [0, 0], sizes = [2, 32], strides = [1, 1]} : vector<8x32xf32> to vector<2x32xf32>
    %25 = vector.extract_strided_slice %23 {offsets = [2, 0], sizes = [2, 32], strides = [1, 1]} : vector<8x32xf32> to vector<2x32xf32>
    %c0_11 = arith.constant 0 : index
    %c0_12 = arith.constant 0 : index
    %26 = vector.load %arg3[%c0_11, %c0_12] : memref<32x192xbf16, #tpu.memory_space<vmem>>, vector<32x192xbf16>
    %27 = arith.truncf %24 : vector<2x32xf32> to vector<2x32xbf16>
    %cst_13 = arith.constant dense<0.000000e+00> : vector<2x192xf32>
    %28 = tpu.matmul %27, %26, %cst_13 {dimension_numbers = #tpu.dot_dimension_numbers<[1], [0], [0], [1], [0, 0, 1, 1], [], []>} : vector<2x32xbf16>, vector<32x192xbf16>, vector<2x192xf32> -> vector<2x192xf32>
    %29 = vector.extract_strided_slice %28 {offsets = [0, 0], sizes = [2, 32], strides = [1, 1]} : vector<2x192xf32> to vector<2x32xf32>
    %c4 = arith.constant 4 : index
    %c0_14 = arith.constant 0 : index
    %30 = vector.load %arg8[%c4, %c0_14] : memref<32x128xf32, #tpu.memory_space<vmem>>, vector<1x32xf32>
    %31 = vector.broadcast %30 : vector<1x32xf32> to vector<2x32xf32>
    %32 = arith.addf %29, %31 : vector<2x32xf32>
    %33 = arith.addf %24, %32 : vector<2x32xf32>
    %c6 = arith.constant 6 : index
    %c0_15 = arith.constant 0 : index
    %34 = vector.load %arg8[%c6, %c0_15] : memref<32x128xf32, #tpu.memory_space<vmem>>, vector<1x32xf32>
    %c7 = arith.constant 7 : index
    %c0_16 = arith.constant 0 : index
    %35 = vector.load %arg8[%c7, %c0_16] : memref<32x128xf32, #tpu.memory_space<vmem>>, vector<1x32xf32>
    %cst_17 = arith.constant dense<0.000000e+00> : vector<2xf32>
    %36 = vector.multi_reduction <add>, %33, %cst_17 [1] : vector<2x32xf32> to vector<2xf32>
    %37 = vector.shape_cast %36 : vector<2xf32> to vector<2x1xf32>
    %cst_18 = arith.constant 3.200000e+01 : f32
    %38 = vector.broadcast %cst_18 : f32 to vector<2x1xf32>
    %39 = arith.divf %37, %38 : vector<2x1xf32>
    %40 = vector.broadcast %39 : vector<2x1xf32> to vector<2x32xf32>
    %41 = arith.subf %33, %40 : vector<2x32xf32>
    %42 = arith.mulf %41, %41 : vector<2x32xf32>
    %cst_19 = arith.constant dense<0.000000e+00> : vector<2xf32>
    %43 = vector.multi_reduction <add>, %42, %cst_19 [1] : vector<2x32xf32> to vector<2xf32>
    %44 = vector.shape_cast %43 : vector<2xf32> to vector<2x1xf32>
    %cst_20 = arith.constant 3.200000e+01 : f32
    %45 = vector.broadcast %cst_20 : f32 to vector<2x1xf32>
    %46 = arith.divf %44, %45 : vector<2x1xf32>
    %cst_21 = arith.constant 9.99999974E-6 : f32
    %47 = vector.broadcast %cst_21 : f32 to vector<2x1xf32>
    %48 = arith.addf %46, %47 : vector<2x1xf32>
    %49 = math.rsqrt %48 : vector<2x1xf32>
    %50 = vector.broadcast %49 : vector<2x1xf32> to vector<2x32xf32>
    %51 = arith.mulf %41, %50 : vector<2x32xf32>
    %52 = vector.broadcast %34 : vector<1x32xf32> to vector<2x32xf32>
    %53 = arith.mulf %51, %52 : vector<2x32xf32>
    %54 = vector.broadcast %35 : vector<1x32xf32> to vector<2x32xf32>
    %55 = arith.addf %53, %54 : vector<2x32xf32>
    %c0_22 = arith.constant 0 : index
    %c0_23 = arith.constant 0 : index
    %c0_24 = arith.constant 0 : index
    %56 = vector.load %arg4[%c0_22, %c0_23, %c0_24] : memref<4x32x2048xbf16, #tpu.memory_space<vmem>>, vector<1x32x2048xbf16>
    %57 = vector.shape_cast %56 : vector<1x32x2048xbf16> to vector<32x2048xbf16>
    %58 = arith.truncf %55 : vector<2x32xf32> to vector<2x32xbf16>
    %cst_25 = arith.constant dense<0.000000e+00> : vector<2x2048xf32>
    %59 = tpu.matmul %58, %57, %cst_25 {dimension_numbers = #tpu.dot_dimension_numbers<[1], [0], [0], [1], [0, 0, 1, 1], [], []>} : vector<2x32xbf16>, vector<32x2048xbf16>, vector<2x2048xf32> -> vector<2x2048xf32>
    %c0_26 = arith.constant 0 : index
    %c0_27 = arith.constant 0 : index
    %60 = vector.load %arg6[%c0_26, %c0_27] : memref<4x2048xf32, #tpu.memory_space<vmem>>, vector<1x2048xf32>
    %61 = vector.broadcast %60 : vector<1x2048xf32> to vector<2x2048xf32>
    %62 = arith.addf %59, %61 : vector<2x2048xf32>
    %cst_28 = arith.constant 0.000000e+00 : f32
    %63 = vector.broadcast %cst_28 : f32 to vector<2x2048xf32>
    %64 = arith.maximumf %62, %63 : vector<2x2048xf32>
    %c0_29 = arith.constant 0 : index
    %c0_30 = arith.constant 0 : index
    %65 = vector.load %arg5[%c0_29, %c0_30] : memref<2048x128xbf16, #tpu.memory_space<vmem>>, vector<2048x128xbf16>
    %66 = arith.truncf %64 : vector<2x2048xf32> to vector<2x2048xbf16>
    %cst_31 = arith.constant dense<0.000000e+00> : vector<2x128xf32>
    %67 = tpu.matmul %66, %65, %cst_31 {dimension_numbers = #tpu.dot_dimension_numbers<[1], [0], [0], [1], [0, 0, 1, 1], [], []>} : vector<2x2048xbf16>, vector<2048x128xbf16>, vector<2x128xf32> -> vector<2x128xf32>
    %68 = vector.extract_strided_slice %67 {offsets = [0, 0], sizes = [2, 32], strides = [1, 1]} : vector<2x128xf32> to vector<2x32xf32>
    %c5 = arith.constant 5 : index
    %c0_32 = arith.constant 0 : index
    %69 = vector.load %arg8[%c5, %c0_32] : memref<32x128xf32, #tpu.memory_space<vmem>>, vector<1x32xf32>
    %70 = vector.broadcast %69 : vector<1x32xf32> to vector<2x32xf32>
    %71 = arith.addf %68, %70 : vector<2x32xf32>
    %72 = arith.addf %55, %71 : vector<2x32xf32>
    %c8 = arith.constant 8 : index
    %c0_33 = arith.constant 0 : index
    %73 = vector.load %arg8[%c8, %c0_33] : memref<32x128xf32, #tpu.memory_space<vmem>>, vector<1x32xf32>
    %c9 = arith.constant 9 : index
    %c0_34 = arith.constant 0 : index
    %74 = vector.load %arg8[%c9, %c0_34] : memref<32x128xf32, #tpu.memory_space<vmem>>, vector<1x32xf32>
    %cst_35 = arith.constant dense<0.000000e+00> : vector<2xf32>
    %75 = vector.multi_reduction <add>, %72, %cst_35 [1] : vector<2x32xf32> to vector<2xf32>
    %76 = vector.shape_cast %75 : vector<2xf32> to vector<2x1xf32>
    %cst_36 = arith.constant 3.200000e+01 : f32
    %77 = vector.broadcast %cst_36 : f32 to vector<2x1xf32>
    %78 = arith.divf %76, %77 : vector<2x1xf32>
    %79 = vector.broadcast %78 : vector<2x1xf32> to vector<2x32xf32>
    %80 = arith.subf %72, %79 : vector<2x32xf32>
    %81 = arith.mulf %80, %80 : vector<2x32xf32>
    %cst_37 = arith.constant dense<0.000000e+00> : vector<2xf32>
    %82 = vector.multi_reduction <add>, %81, %cst_37 [1] : vector<2x32xf32> to vector<2xf32>
    %83 = vector.shape_cast %82 : vector<2xf32> to vector<2x1xf32>
    %cst_38 = arith.constant 3.200000e+01 : f32
    %84 = vector.broadcast %cst_38 : f32 to vector<2x1xf32>
    %85 = arith.divf %83, %84 : vector<2x1xf32>
    %cst_39 = arith.constant 9.99999974E-6 : f32
    %86 = vector.broadcast %cst_39 : f32 to vector<2x1xf32>
    %87 = arith.addf %85, %86 : vector<2x1xf32>
    %88 = math.rsqrt %87 : vector<2x1xf32>
    %89 = vector.broadcast %88 : vector<2x1xf32> to vector<2x32xf32>
    %90 = arith.mulf %80, %89 : vector<2x32xf32>
    %91 = vector.broadcast %73 : vector<1x32xf32> to vector<2x32xf32>
    %92 = arith.mulf %90, %91 : vector<2x32xf32>
    %93 = vector.broadcast %74 : vector<1x32xf32> to vector<2x32xf32>
    %94 = arith.addf %92, %93 : vector<2x32xf32>
    %c0_40 = arith.constant 0 : index
    %c0_41 = arith.constant 0 : index
    %95 = vector.load %arg3[%c0_40, %c0_41] : memref<32x192xbf16, #tpu.memory_space<vmem>>, vector<32x192xbf16>
    %96 = arith.truncf %94 : vector<2x32xf32> to vector<2x32xbf16>
    %cst_42 = arith.constant dense<0.000000e+00> : vector<2x192xf32>
    %97 = tpu.matmul %96, %95, %cst_42 {dimension_numbers = #tpu.dot_dimension_numbers<[1], [0], [0], [1], [0, 0, 1, 1], [], []>} : vector<2x32xbf16>, vector<32x192xbf16>, vector<2x192xf32> -> vector<2x192xf32>
    %98 = vector.extract_strided_slice %97 {offsets = [0, 32], sizes = [2, 32], strides = [1, 1]} : vector<2x192xf32> to vector<2x32xf32>
    %c10 = arith.constant 10 : index
    %c0_43 = arith.constant 0 : index
    %99 = vector.load %arg8[%c10, %c0_43] : memref<32x128xf32, #tpu.memory_space<vmem>>, vector<1x32xf32>
    %100 = vector.broadcast %99 : vector<1x32xf32> to vector<2x32xf32>
    %101 = arith.addf %98, %100 : vector<2x32xf32>
    %102 = arith.addf %94, %101 : vector<2x32xf32>
    %c12 = arith.constant 12 : index
    %c0_44 = arith.constant 0 : index
    %103 = vector.load %arg8[%c12, %c0_44] : memref<32x128xf32, #tpu.memory_space<vmem>>, vector<1x32xf32>
    %c13 = arith.constant 13 : index
    %c0_45 = arith.constant 0 : index
    %104 = vector.load %arg8[%c13, %c0_45] : memref<32x128xf32, #tpu.memory_space<vmem>>, vector<1x32xf32>
    %cst_46 = arith.constant dense<0.000000e+00> : vector<2xf32>
    %105 = vector.multi_reduction <add>, %102, %cst_46 [1] : vector<2x32xf32> to vector<2xf32>
    %106 = vector.shape_cast %105 : vector<2xf32> to vector<2x1xf32>
    %cst_47 = arith.constant 3.200000e+01 : f32
    %107 = vector.broadcast %cst_47 : f32 to vector<2x1xf32>
    %108 = arith.divf %106, %107 : vector<2x1xf32>
    %109 = vector.broadcast %108 : vector<2x1xf32> to vector<2x32xf32>
    %110 = arith.subf %102, %109 : vector<2x32xf32>
    %111 = arith.mulf %110, %110 : vector<2x32xf32>
    %cst_48 = arith.constant dense<0.000000e+00> : vector<2xf32>
    %112 = vector.multi_reduction <add>, %111, %cst_48 [1] : vector<2x32xf32> to vector<2xf32>
    %113 = vector.shape_cast %112 : vector<2xf32> to vector<2x1xf32>
    %cst_49 = arith.constant 3.200000e+01 : f32
    %114 = vector.broadcast %cst_49 : f32 to vector<2x1xf32>
    %115 = arith.divf %113, %114 : vector<2x1xf32>
    %cst_50 = arith.constant 9.99999974E-6 : f32
    %116 = vector.broadcast %cst_50 : f32 to vector<2x1xf32>
    %117 = arith.addf %115, %116 : vector<2x1xf32>
    %118 = math.rsqrt %117 : vector<2x1xf32>
    %119 = vector.broadcast %118 : vector<2x1xf32> to vector<2x32xf32>
    %120 = arith.mulf %110, %119 : vector<2x32xf32>
    %121 = vector.broadcast %103 : vector<1x32xf32> to vector<2x32xf32>
    %122 = arith.mulf %120, %121 : vector<2x32xf32>
    %123 = vector.broadcast %104 : vector<1x32xf32> to vector<2x32xf32>
    %124 = arith.addf %122, %123 : vector<2x32xf32>
    %c1_51 = arith.constant 1 : index
    %c0_52 = arith.constant 0 : index
    %c0_53 = arith.constant 0 : index
    %125 = vector.load %arg4[%c1_51, %c0_52, %c0_53] : memref<4x32x2048xbf16, #tpu.memory_space<vmem>>, vector<1x32x2048xbf16>
    %126 = vector.shape_cast %125 : vector<1x32x2048xbf16> to vector<32x2048xbf16>
    %127 = arith.truncf %124 : vector<2x32xf32> to vector<2x32xbf16>
    %cst_54 = arith.constant dense<0.000000e+00> : vector<2x2048xf32>
    %128 = tpu.matmul %127, %126, %cst_54 {dimension_numbers = #tpu.dot_dimension_numbers<[1], [0], [0], [1], [0, 0, 1, 1], [], []>} : vector<2x32xbf16>, vector<32x2048xbf16>, vector<2x2048xf32> -> vector<2x2048xf32>
    %c1_55 = arith.constant 1 : index
    %c0_56 = arith.constant 0 : index
    %129 = vector.load %arg6[%c1_55, %c0_56] : memref<4x2048xf32, #tpu.memory_space<vmem>>, vector<1x2048xf32>
    %130 = vector.broadcast %129 : vector<1x2048xf32> to vector<2x2048xf32>
    %131 = arith.addf %128, %130 : vector<2x2048xf32>
    %cst_57 = arith.constant 0.000000e+00 : f32
    %132 = vector.broadcast %cst_57 : f32 to vector<2x2048xf32>
    %133 = arith.maximumf %131, %132 : vector<2x2048xf32>
    %c0_58 = arith.constant 0 : index
    %c0_59 = arith.constant 0 : index
    %134 = vector.load %arg5[%c0_58, %c0_59] : memref<2048x128xbf16, #tpu.memory_space<vmem>>, vector<2048x128xbf16>
    %135 = arith.truncf %133 : vector<2x2048xf32> to vector<2x2048xbf16>
    %cst_60 = arith.constant dense<0.000000e+00> : vector<2x128xf32>
    %136 = tpu.matmul %135, %134, %cst_60 {dimension_numbers = #tpu.dot_dimension_numbers<[1], [0], [0], [1], [0, 0, 1, 1], [], []>} : vector<2x2048xbf16>, vector<2048x128xbf16>, vector<2x128xf32> -> vector<2x128xf32>
    %137 = vector.extract_strided_slice %136 {offsets = [0, 32], sizes = [2, 32], strides = [1, 1]} : vector<2x128xf32> to vector<2x32xf32>
    %c11 = arith.constant 11 : index
    %c0_61 = arith.constant 0 : index
    %138 = vector.load %arg8[%c11, %c0_61] : memref<32x128xf32, #tpu.memory_space<vmem>>, vector<1x32xf32>
    %139 = vector.broadcast %138 : vector<1x32xf32> to vector<2x32xf32>
    %140 = arith.addf %137, %139 : vector<2x32xf32>
    %141 = arith.addf %124, %140 : vector<2x32xf32>
    %c14 = arith.constant 14 : index
    %c0_62 = arith.constant 0 : index
    %142 = vector.load %arg8[%c14, %c0_62] : memref<32x128xf32, #tpu.memory_space<vmem>>, vector<1x32xf32>
    %c15 = arith.constant 15 : index
    %c0_63 = arith.constant 0 : index
    %143 = vector.load %arg8[%c15, %c0_63] : memref<32x128xf32, #tpu.memory_space<vmem>>, vector<1x32xf32>
    %cst_64 = arith.constant dense<0.000000e+00> : vector<2xf32>
    %144 = vector.multi_reduction <add>, %141, %cst_64 [1] : vector<2x32xf32> to vector<2xf32>
    %145 = vector.shape_cast %144 : vector<2xf32> to vector<2x1xf32>
    %cst_65 = arith.constant 3.200000e+01 : f32
    %146 = vector.broadcast %cst_65 : f32 to vector<2x1xf32>
    %147 = arith.divf %145, %146 : vector<2x1xf32>
    %148 = vector.broadcast %147 : vector<2x1xf32> to vector<2x32xf32>
    %149 = arith.subf %141, %148 : vector<2x32xf32>
    %150 = arith.mulf %149, %149 : vector<2x32xf32>
    %cst_66 = arith.constant dense<0.000000e+00> : vector<2xf32>
    %151 = vector.multi_reduction <add>, %150, %cst_66 [1] : vector<2x32xf32> to vector<2xf32>
    %152 = vector.shape_cast %151 : vector<2xf32> to vector<2x1xf32>
    %cst_67 = arith.constant 3.200000e+01 : f32
    %153 = vector.broadcast %cst_67 : f32 to vector<2x1xf32>
    %154 = arith.divf %152, %153 : vector<2x1xf32>
    %cst_68 = arith.constant 9.99999974E-6 : f32
    %155 = vector.broadcast %cst_68 : f32 to vector<2x1xf32>
    %156 = arith.addf %154, %155 : vector<2x1xf32>
    %157 = math.rsqrt %156 : vector<2x1xf32>
    %158 = vector.broadcast %157 : vector<2x1xf32> to vector<2x32xf32>
    %159 = arith.mulf %149, %158 : vector<2x32xf32>
    %160 = vector.broadcast %142 : vector<1x32xf32> to vector<2x32xf32>
    %161 = arith.mulf %159, %160 : vector<2x32xf32>
    %162 = vector.broadcast %143 : vector<1x32xf32> to vector<2x32xf32>
    %163 = arith.addf %161, %162 : vector<2x32xf32>
    %c0_69 = arith.constant 0 : index
    %c0_70 = arith.constant 0 : index
    %164 = vector.load %arg3[%c0_69, %c0_70] : memref<32x192xbf16, #tpu.memory_space<vmem>>, vector<32x192xbf16>
    %165 = arith.truncf %163 : vector<2x32xf32> to vector<2x32xbf16>
    %cst_71 = arith.constant dense<0.000000e+00> : vector<2x192xf32>
    %166 = tpu.matmul %165, %164, %cst_71 {dimension_numbers = #tpu.dot_dimension_numbers<[1], [0], [0], [1], [0, 0, 1, 1], [], []>} : vector<2x32xbf16>, vector<32x192xbf16>, vector<2x192xf32> -> vector<2x192xf32>
    %167 = vector.extract_strided_slice %166 {offsets = [0, 128], sizes = [2, 64], strides = [1, 1]} : vector<2x192xf32> to vector<2x64xf32>
    %c3 = arith.constant 3 : index
    %c0_72 = arith.constant 0 : index
    %168 = vector.load %arg8[%c3, %c0_72] : memref<32x128xf32, #tpu.memory_space<vmem>>, vector<1x64xf32>
    %169 = vector.broadcast %168 : vector<1x64xf32> to vector<2x64xf32>
    %170 = arith.addf %167, %169 : vector<2x64xf32>
    %c0_73 = arith.constant 0 : index
    %c0_74 = arith.constant 0 : index
    %171 = vector.load %arg3[%c0_73, %c0_74] : memref<32x192xbf16, #tpu.memory_space<vmem>>, vector<32x192xbf16>
    %172 = arith.truncf %25 : vector<2x32xf32> to vector<2x32xbf16>
    %cst_75 = arith.constant dense<0.000000e+00> : vector<2x192xf32>
    %173 = tpu.matmul %172, %171, %cst_75 {dimension_numbers = #tpu.dot_dimension_numbers<[1], [0], [0], [1], [0, 0, 1, 1], [], []>} : vector<2x32xbf16>, vector<32x192xbf16>, vector<2x192xf32> -> vector<2x192xf32>
    %174 = vector.extract_strided_slice %173 {offsets = [0, 64], sizes = [2, 32], strides = [1, 1]} : vector<2x192xf32> to vector<2x32xf32>
    %c16 = arith.constant 16 : index
    %c0_76 = arith.constant 0 : index
    %175 = vector.load %arg8[%c16, %c0_76] : memref<32x128xf32, #tpu.memory_space<vmem>>, vector<1x32xf32>
    %176 = vector.broadcast %175 : vector<1x32xf32> to vector<2x32xf32>
    %177 = arith.addf %174, %176 : vector<2x32xf32>
    %178 = arith.addf %25, %177 : vector<2x32xf32>
    %c18 = arith.constant 18 : index
    %c0_77 = arith.constant 0 : index
    %179 = vector.load %arg8[%c18, %c0_77] : memref<32x128xf32, #tpu.memory_space<vmem>>, vector<1x32xf32>
    %c19 = arith.constant 19 : index
    %c0_78 = arith.constant 0 : index
    %180 = vector.load %arg8[%c19, %c0_78] : memref<32x128xf32, #tpu.memory_space<vmem>>, vector<1x32xf32>
    %cst_79 = arith.constant dense<0.000000e+00> : vector<2xf32>
    %181 = vector.multi_reduction <add>, %178, %cst_79 [1] : vector<2x32xf32> to vector<2xf32>
    %182 = vector.shape_cast %181 : vector<2xf32> to vector<2x1xf32>
    %cst_80 = arith.constant 3.200000e+01 : f32
    %183 = vector.broadcast %cst_80 : f32 to vector<2x1xf32>
    %184 = arith.divf %182, %183 : vector<2x1xf32>
    %185 = vector.broadcast %184 : vector<2x1xf32> to vector<2x32xf32>
    %186 = arith.subf %178, %185 : vector<2x32xf32>
    %187 = arith.mulf %186, %186 : vector<2x32xf32>
    %cst_81 = arith.constant dense<0.000000e+00> : vector<2xf32>
    %188 = vector.multi_reduction <add>, %187, %cst_81 [1] : vector<2x32xf32> to vector<2xf32>
    %189 = vector.shape_cast %188 : vector<2xf32> to vector<2x1xf32>
    %cst_82 = arith.constant 3.200000e+01 : f32
    %190 = vector.broadcast %cst_82 : f32 to vector<2x1xf32>
    %191 = arith.divf %189, %190 : vector<2x1xf32>
    %cst_83 = arith.constant 9.99999974E-6 : f32
    %192 = vector.broadcast %cst_83 : f32 to vector<2x1xf32>
    %193 = arith.addf %191, %192 : vector<2x1xf32>
    %194 = math.rsqrt %193 : vector<2x1xf32>
    %195 = vector.broadcast %194 : vector<2x1xf32> to vector<2x32xf32>
    %196 = arith.mulf %186, %195 : vector<2x32xf32>
    %197 = vector.broadcast %179 : vector<1x32xf32> to vector<2x32xf32>
    %198 = arith.mulf %196, %197 : vector<2x32xf32>
    %199 = vector.broadcast %180 : vector<1x32xf32> to vector<2x32xf32>
    %200 = arith.addf %198, %199 : vector<2x32xf32>
    %201 = vector.extract_strided_slice %170 {offsets = [0, 0], sizes = [2, 32], strides = [1, 1]} : vector<2x64xf32> to vector<2x32xf32>
    %202 = arith.addf %200, %201 : vector<2x32xf32>
    %c20 = arith.constant 20 : index
    %c0_84 = arith.constant 0 : index
    %203 = vector.load %arg8[%c20, %c0_84] : memref<32x128xf32, #tpu.memory_space<vmem>>, vector<1x32xf32>
    %c21 = arith.constant 21 : index
    %c0_85 = arith.constant 0 : index
    %204 = vector.load %arg8[%c21, %c0_85] : memref<32x128xf32, #tpu.memory_space<vmem>>, vector<1x32xf32>
    %cst_86 = arith.constant dense<0.000000e+00> : vector<2xf32>
    %205 = vector.multi_reduction <add>, %202, %cst_86 [1] : vector<2x32xf32> to vector<2xf32>
    %206 = vector.shape_cast %205 : vector<2xf32> to vector<2x1xf32>
    %cst_87 = arith.constant 3.200000e+01 : f32
    %207 = vector.broadcast %cst_87 : f32 to vector<2x1xf32>
    %208 = arith.divf %206, %207 : vector<2x1xf32>
    %209 = vector.broadcast %208 : vector<2x1xf32> to vector<2x32xf32>
    %210 = arith.subf %202, %209 : vector<2x32xf32>
    %211 = arith.mulf %210, %210 : vector<2x32xf32>
    %cst_88 = arith.constant dense<0.000000e+00> : vector<2xf32>
    %212 = vector.multi_reduction <add>, %211, %cst_88 [1] : vector<2x32xf32> to vector<2xf32>
    %213 = vector.shape_cast %212 : vector<2xf32> to vector<2x1xf32>
    %cst_89 = arith.constant 3.200000e+01 : f32
    %214 = vector.broadcast %cst_89 : f32 to vector<2x1xf32>
    %215 = arith.divf %213, %214 : vector<2x1xf32>
    %cst_90 = arith.constant 9.99999974E-6 : f32
    %216 = vector.broadcast %cst_90 : f32 to vector<2x1xf32>
    %217 = arith.addf %215, %216 : vector<2x1xf32>
    %218 = math.rsqrt %217 : vector<2x1xf32>
    %219 = vector.broadcast %218 : vector<2x1xf32> to vector<2x32xf32>
    %220 = arith.mulf %210, %219 : vector<2x32xf32>
    %221 = vector.broadcast %203 : vector<1x32xf32> to vector<2x32xf32>
    %222 = arith.mulf %220, %221 : vector<2x32xf32>
    %223 = vector.broadcast %204 : vector<1x32xf32> to vector<2x32xf32>
    %224 = arith.addf %222, %223 : vector<2x32xf32>
    %c2 = arith.constant 2 : index
    %c0_91 = arith.constant 0 : index
    %c0_92 = arith.constant 0 : index
    %225 = vector.load %arg4[%c2, %c0_91, %c0_92] : memref<4x32x2048xbf16, #tpu.memory_space<vmem>>, vector<1x32x2048xbf16>
    %226 = vector.shape_cast %225 : vector<1x32x2048xbf16> to vector<32x2048xbf16>
    %227 = arith.truncf %224 : vector<2x32xf32> to vector<2x32xbf16>
    %cst_93 = arith.constant dense<0.000000e+00> : vector<2x2048xf32>
    %228 = tpu.matmul %227, %226, %cst_93 {dimension_numbers = #tpu.dot_dimension_numbers<[1], [0], [0], [1], [0, 0, 1, 1], [], []>} : vector<2x32xbf16>, vector<32x2048xbf16>, vector<2x2048xf32> -> vector<2x2048xf32>
    %c2_94 = arith.constant 2 : index
    %c0_95 = arith.constant 0 : index
    %229 = vector.load %arg6[%c2_94, %c0_95] : memref<4x2048xf32, #tpu.memory_space<vmem>>, vector<1x2048xf32>
    %230 = vector.broadcast %229 : vector<1x2048xf32> to vector<2x2048xf32>
    %231 = arith.addf %228, %230 : vector<2x2048xf32>
    %cst_96 = arith.constant 0.000000e+00 : f32
    %232 = vector.broadcast %cst_96 : f32 to vector<2x2048xf32>
    %233 = arith.maximumf %231, %232 : vector<2x2048xf32>
    %c0_97 = arith.constant 0 : index
    %c0_98 = arith.constant 0 : index
    %234 = vector.load %arg5[%c0_97, %c0_98] : memref<2048x128xbf16, #tpu.memory_space<vmem>>, vector<2048x128xbf16>
    %235 = arith.truncf %233 : vector<2x2048xf32> to vector<2x2048xbf16>
    %cst_99 = arith.constant dense<0.000000e+00> : vector<2x128xf32>
    %236 = tpu.matmul %235, %234, %cst_99 {dimension_numbers = #tpu.dot_dimension_numbers<[1], [0], [0], [1], [0, 0, 1, 1], [], []>} : vector<2x2048xbf16>, vector<2048x128xbf16>, vector<2x128xf32> -> vector<2x128xf32>
    %237 = vector.extract_strided_slice %236 {offsets = [0, 64], sizes = [2, 32], strides = [1, 1]} : vector<2x128xf32> to vector<2x32xf32>
    %c17 = arith.constant 17 : index
    %c0_100 = arith.constant 0 : index
    %238 = vector.load %arg8[%c17, %c0_100] : memref<32x128xf32, #tpu.memory_space<vmem>>, vector<1x32xf32>
    %239 = vector.broadcast %238 : vector<1x32xf32> to vector<2x32xf32>
    %240 = arith.addf %237, %239 : vector<2x32xf32>
    %241 = arith.addf %224, %240 : vector<2x32xf32>
    %c22 = arith.constant 22 : index
    %c0_101 = arith.constant 0 : index
    %242 = vector.load %arg8[%c22, %c0_101] : memref<32x128xf32, #tpu.memory_space<vmem>>, vector<1x32xf32>
    %c23 = arith.constant 23 : index
    %c0_102 = arith.constant 0 : index
    %243 = vector.load %arg8[%c23, %c0_102] : memref<32x128xf32, #tpu.memory_space<vmem>>, vector<1x32xf32>
    %cst_103 = arith.constant dense<0.000000e+00> : vector<2xf32>
    %244 = vector.multi_reduction <add>, %241, %cst_103 [1] : vector<2x32xf32> to vector<2xf32>
    %245 = vector.shape_cast %244 : vector<2xf32> to vector<2x1xf32>
    %cst_104 = arith.constant 3.200000e+01 : f32
    %246 = vector.broadcast %cst_104 : f32 to vector<2x1xf32>
    %247 = arith.divf %245, %246 : vector<2x1xf32>
    %248 = vector.broadcast %247 : vector<2x1xf32> to vector<2x32xf32>
    %249 = arith.subf %241, %248 : vector<2x32xf32>
    %250 = arith.mulf %249, %249 : vector<2x32xf32>
    %cst_105 = arith.constant dense<0.000000e+00> : vector<2xf32>
    %251 = vector.multi_reduction <add>, %250, %cst_105 [1] : vector<2x32xf32> to vector<2xf32>
    %252 = vector.shape_cast %251 : vector<2xf32> to vector<2x1xf32>
    %cst_106 = arith.constant 3.200000e+01 : f32
    %253 = vector.broadcast %cst_106 : f32 to vector<2x1xf32>
    %254 = arith.divf %252, %253 : vector<2x1xf32>
    %cst_107 = arith.constant 9.99999974E-6 : f32
    %255 = vector.broadcast %cst_107 : f32 to vector<2x1xf32>
    %256 = arith.addf %254, %255 : vector<2x1xf32>
    %257 = math.rsqrt %256 : vector<2x1xf32>
    %258 = vector.broadcast %257 : vector<2x1xf32> to vector<2x32xf32>
    %259 = arith.mulf %249, %258 : vector<2x32xf32>
    %260 = vector.broadcast %242 : vector<1x32xf32> to vector<2x32xf32>
    %261 = arith.mulf %259, %260 : vector<2x32xf32>
    %262 = vector.broadcast %243 : vector<1x32xf32> to vector<2x32xf32>
    %263 = arith.addf %261, %262 : vector<2x32xf32>
    %c0_108 = arith.constant 0 : index
    %c0_109 = arith.constant 0 : index
    %264 = vector.load %arg3[%c0_108, %c0_109] : memref<32x192xbf16, #tpu.memory_space<vmem>>, vector<32x192xbf16>
    %265 = arith.truncf %263 : vector<2x32xf32> to vector<2x32xbf16>
    %cst_110 = arith.constant dense<0.000000e+00> : vector<2x192xf32>
    %266 = tpu.matmul %265, %264, %cst_110 {dimension_numbers = #tpu.dot_dimension_numbers<[1], [0], [0], [1], [0, 0, 1, 1], [], []>} : vector<2x32xbf16>, vector<32x192xbf16>, vector<2x192xf32> -> vector<2x192xf32>
    %267 = vector.extract_strided_slice %266 {offsets = [0, 96], sizes = [2, 32], strides = [1, 1]} : vector<2x192xf32> to vector<2x32xf32>
    %c24 = arith.constant 24 : index
    %c0_111 = arith.constant 0 : index
    %268 = vector.load %arg8[%c24, %c0_111] : memref<32x128xf32, #tpu.memory_space<vmem>>, vector<1x32xf32>
    %269 = vector.broadcast %268 : vector<1x32xf32> to vector<2x32xf32>
    %270 = arith.addf %267, %269 : vector<2x32xf32>
    %271 = arith.addf %263, %270 : vector<2x32xf32>
    %c26 = arith.constant 26 : index
    %c0_112 = arith.constant 0 : index
    %272 = vector.load %arg8[%c26, %c0_112] : memref<32x128xf32, #tpu.memory_space<vmem>>, vector<1x32xf32>
    %c27 = arith.constant 27 : index
    %c0_113 = arith.constant 0 : index
    %273 = vector.load %arg8[%c27, %c0_113] : memref<32x128xf32, #tpu.memory_space<vmem>>, vector<1x32xf32>
    %cst_114 = arith.constant dense<0.000000e+00> : vector<2xf32>
    %274 = vector.multi_reduction <add>, %271, %cst_114 [1] : vector<2x32xf32> to vector<2xf32>
    %275 = vector.shape_cast %274 : vector<2xf32> to vector<2x1xf32>
    %cst_115 = arith.constant 3.200000e+01 : f32
    %276 = vector.broadcast %cst_115 : f32 to vector<2x1xf32>
    %277 = arith.divf %275, %276 : vector<2x1xf32>
    %278 = vector.broadcast %277 : vector<2x1xf32> to vector<2x32xf32>
    %279 = arith.subf %271, %278 : vector<2x32xf32>
    %280 = arith.mulf %279, %279 : vector<2x32xf32>
    %cst_116 = arith.constant dense<0.000000e+00> : vector<2xf32>
    %281 = vector.multi_reduction <add>, %280, %cst_116 [1] : vector<2x32xf32> to vector<2xf32>
    %282 = vector.shape_cast %281 : vector<2xf32> to vector<2x1xf32>
    %cst_117 = arith.constant 3.200000e+01 : f32
    %283 = vector.broadcast %cst_117 : f32 to vector<2x1xf32>
    %284 = arith.divf %282, %283 : vector<2x1xf32>
    %cst_118 = arith.constant 9.99999974E-6 : f32
    %285 = vector.broadcast %cst_118 : f32 to vector<2x1xf32>
    %286 = arith.addf %284, %285 : vector<2x1xf32>
    %287 = math.rsqrt %286 : vector<2x1xf32>
    %288 = vector.broadcast %287 : vector<2x1xf32> to vector<2x32xf32>
    %289 = arith.mulf %279, %288 : vector<2x32xf32>
    %290 = vector.broadcast %272 : vector<1x32xf32> to vector<2x32xf32>
    %291 = arith.mulf %289, %290 : vector<2x32xf32>
    %292 = vector.broadcast %273 : vector<1x32xf32> to vector<2x32xf32>
    %293 = arith.addf %291, %292 : vector<2x32xf32>
    %294 = vector.extract_strided_slice %170 {offsets = [0, 32], sizes = [2, 32], strides = [1, 1]} : vector<2x64xf32> to vector<2x32xf32>
    %295 = arith.addf %293, %294 : vector<2x32xf32>
    %c28 = arith.constant 28 : index
    %c0_119 = arith.constant 0 : index
    %296 = vector.load %arg8[%c28, %c0_119] : memref<32x128xf32, #tpu.memory_space<vmem>>, vector<1x32xf32>
    %c29 = arith.constant 29 : index
    %c0_120 = arith.constant 0 : index
    %297 = vector.load %arg8[%c29, %c0_120] : memref<32x128xf32, #tpu.memory_space<vmem>>, vector<1x32xf32>
    %cst_121 = arith.constant dense<0.000000e+00> : vector<2xf32>
    %298 = vector.multi_reduction <add>, %295, %cst_121 [1] : vector<2x32xf32> to vector<2xf32>
    %299 = vector.shape_cast %298 : vector<2xf32> to vector<2x1xf32>
    %cst_122 = arith.constant 3.200000e+01 : f32
    %300 = vector.broadcast %cst_122 : f32 to vector<2x1xf32>
    %301 = arith.divf %299, %300 : vector<2x1xf32>
    %302 = vector.broadcast %301 : vector<2x1xf32> to vector<2x32xf32>
    %303 = arith.subf %295, %302 : vector<2x32xf32>
    %304 = arith.mulf %303, %303 : vector<2x32xf32>
    %cst_123 = arith.constant dense<0.000000e+00> : vector<2xf32>
    %305 = vector.multi_reduction <add>, %304, %cst_123 [1] : vector<2x32xf32> to vector<2xf32>
    %306 = vector.shape_cast %305 : vector<2xf32> to vector<2x1xf32>
    %cst_124 = arith.constant 3.200000e+01 : f32
    %307 = vector.broadcast %cst_124 : f32 to vector<2x1xf32>
    %308 = arith.divf %306, %307 : vector<2x1xf32>
    %cst_125 = arith.constant 9.99999974E-6 : f32
    %309 = vector.broadcast %cst_125 : f32 to vector<2x1xf32>
    %310 = arith.addf %308, %309 : vector<2x1xf32>
    %311 = math.rsqrt %310 : vector<2x1xf32>
    %312 = vector.broadcast %311 : vector<2x1xf32> to vector<2x32xf32>
    %313 = arith.mulf %303, %312 : vector<2x32xf32>
    %314 = vector.broadcast %296 : vector<1x32xf32> to vector<2x32xf32>
    %315 = arith.mulf %313, %314 : vector<2x32xf32>
    %316 = vector.broadcast %297 : vector<1x32xf32> to vector<2x32xf32>
    %317 = arith.addf %315, %316 : vector<2x32xf32>
    %c3_126 = arith.constant 3 : index
    %c0_127 = arith.constant 0 : index
    %c0_128 = arith.constant 0 : index
    %318 = vector.load %arg4[%c3_126, %c0_127, %c0_128] : memref<4x32x2048xbf16, #tpu.memory_space<vmem>>, vector<1x32x2048xbf16>
    %319 = vector.shape_cast %318 : vector<1x32x2048xbf16> to vector<32x2048xbf16>
    %320 = arith.truncf %317 : vector<2x32xf32> to vector<2x32xbf16>
    %cst_129 = arith.constant dense<0.000000e+00> : vector<2x2048xf32>
    %321 = tpu.matmul %320, %319, %cst_129 {dimension_numbers = #tpu.dot_dimension_numbers<[1], [0], [0], [1], [0, 0, 1, 1], [], []>} : vector<2x32xbf16>, vector<32x2048xbf16>, vector<2x2048xf32> -> vector<2x2048xf32>
    %c3_130 = arith.constant 3 : index
    %c0_131 = arith.constant 0 : index
    %322 = vector.load %arg6[%c3_130, %c0_131] : memref<4x2048xf32, #tpu.memory_space<vmem>>, vector<1x2048xf32>
    %323 = vector.broadcast %322 : vector<1x2048xf32> to vector<2x2048xf32>
    %324 = arith.addf %321, %323 : vector<2x2048xf32>
    %cst_132 = arith.constant 0.000000e+00 : f32
    %325 = vector.broadcast %cst_132 : f32 to vector<2x2048xf32>
    %326 = arith.maximumf %324, %325 : vector<2x2048xf32>
    %c0_133 = arith.constant 0 : index
    %c0_134 = arith.constant 0 : index
    %327 = vector.load %arg5[%c0_133, %c0_134] : memref<2048x128xbf16, #tpu.memory_space<vmem>>, vector<2048x128xbf16>
    %328 = arith.truncf %326 : vector<2x2048xf32> to vector<2x2048xbf16>
    %cst_135 = arith.constant dense<0.000000e+00> : vector<2x128xf32>
    %329 = tpu.matmul %328, %327, %cst_135 {dimension_numbers = #tpu.dot_dimension_numbers<[1], [0], [0], [1], [0, 0, 1, 1], [], []>} : vector<2x2048xbf16>, vector<2048x128xbf16>, vector<2x128xf32> -> vector<2x128xf32>
    %330 = vector.extract_strided_slice %329 {offsets = [0, 96], sizes = [2, 32], strides = [1, 1]} : vector<2x128xf32> to vector<2x32xf32>
    %c25 = arith.constant 25 : index
    %c0_136 = arith.constant 0 : index
    %331 = vector.load %arg8[%c25, %c0_136] : memref<32x128xf32, #tpu.memory_space<vmem>>, vector<1x32xf32>
    %332 = vector.broadcast %331 : vector<1x32xf32> to vector<2x32xf32>
    %333 = arith.addf %330, %332 : vector<2x32xf32>
    %334 = arith.addf %317, %333 : vector<2x32xf32>
    %c30 = arith.constant 30 : index
    %c0_137 = arith.constant 0 : index
    %335 = vector.load %arg8[%c30, %c0_137] : memref<32x128xf32, #tpu.memory_space<vmem>>, vector<1x32xf32>
    %c31 = arith.constant 31 : index
    %c0_138 = arith.constant 0 : index
    %336 = vector.load %arg8[%c31, %c0_138] : memref<32x128xf32, #tpu.memory_space<vmem>>, vector<1x32xf32>
    %cst_139 = arith.constant dense<0.000000e+00> : vector<2xf32>
    %337 = vector.multi_reduction <add>, %334, %cst_139 [1] : vector<2x32xf32> to vector<2xf32>
    %338 = vector.shape_cast %337 : vector<2xf32> to vector<2x1xf32>
    %cst_140 = arith.constant 3.200000e+01 : f32
    %339 = vector.broadcast %cst_140 : f32 to vector<2x1xf32>
    %340 = arith.divf %338, %339 : vector<2x1xf32>
    %341 = vector.broadcast %340 : vector<2x1xf32> to vector<2x32xf32>
    %342 = arith.subf %334, %341 : vector<2x32xf32>
    %343 = arith.mulf %342, %342 : vector<2x32xf32>
    %cst_141 = arith.constant dense<0.000000e+00> : vector<2xf32>
    %344 = vector.multi_reduction <add>, %343, %cst_141 [1] : vector<2x32xf32> to vector<2xf32>
    %345 = vector.shape_cast %344 : vector<2xf32> to vector<2x1xf32>
    %cst_142 = arith.constant 3.200000e+01 : f32
    %346 = vector.broadcast %cst_142 : f32 to vector<2x1xf32>
    %347 = arith.divf %345, %346 : vector<2x1xf32>
    %cst_143 = arith.constant 9.99999974E-6 : f32
    %348 = vector.broadcast %cst_143 : f32 to vector<2x1xf32>
    %349 = arith.addf %347, %348 : vector<2x1xf32>
    %350 = math.rsqrt %349 : vector<2x1xf32>
    %351 = vector.broadcast %350 : vector<2x1xf32> to vector<2x32xf32>
    %352 = arith.mulf %342, %351 : vector<2x32xf32>
    %353 = vector.broadcast %335 : vector<1x32xf32> to vector<2x32xf32>
    %354 = arith.mulf %352, %353 : vector<2x32xf32>
    %355 = vector.broadcast %336 : vector<1x32xf32> to vector<2x32xf32>
    %356 = arith.addf %354, %355 : vector<2x32xf32>
    %c0_144 = arith.constant 0 : index
    %c0_145 = arith.constant 0 : index
    %357 = vector.load %arg7[%c0_144, %c0_145] : memref<32x4xbf16, #tpu.memory_space<vmem>>, vector<32x4xbf16>
    %358 = arith.truncf %356 : vector<2x32xf32> to vector<2x32xbf16>
    %cst_146 = arith.constant dense<0.000000e+00> : vector<2x4xf32>
    %359 = tpu.matmul %358, %357, %cst_146 {dimension_numbers = #tpu.dot_dimension_numbers<[1], [0], [0], [1], [0, 0, 1, 1], [], []>} : vector<2x32xbf16>, vector<32x4xbf16>, vector<2x4xf32> -> vector<2x4xf32>
    %c2_147 = arith.constant 2 : index
    %c0_148 = arith.constant 0 : index
    %360 = vector.load %arg8[%c2_147, %c0_148] : memref<32x128xf32, #tpu.memory_space<vmem>>, vector<1x4xf32>
    %361 = vector.broadcast %360 : vector<1x4xf32> to vector<2x4xf32>
    %362 = arith.addf %359, %361 : vector<2x4xf32>
    %c0_149 = arith.constant 0 : index
    %c0_150 = arith.constant 0 : index
    %363 = vector.load %arg9[%c0_149, %c0_150] : memref<2x4xf32, #tpu.memory_space<vmem>>, vector<2x4xf32>
    tpu.vector_store %arg9[%c0_149, %c0_150], %362 {strides = array<i32>} : memref<2x4xf32, #tpu.memory_space<vmem>>, vector<2x4xf32>,
    return
  }
}

</mosaic_0001>

<bundles_post_ra>
// kernel: pallas_forward.1
= control target key start
LH: loop header
LB: loop body
LE: loop exit
PB: predicated region body
PF: predicated region fallthrough
CT: control target
= control target key end

     0   :  { %14 = vsyncpa [#allocation3], 0  ;;  %s8821_s0 = inlined_call_operand.vmem [shape: f32[32,36], index: 0, kind: input, shape index: {}]   ;;  %s8822_s1 = inlined_call_operand.vmem [shape: bf16[36,64], index: 1, kind: input, shape index: {}]   ;;  %s8823_s2 = inlined_call_operand.vmem [shape: bf16[64,32], index: 2, kind: input, shape index: {}]   ;;  %s8824_s3 = inlined_call_operand.vmem [shape: bf16[32,192], index: 3, kind: input, shape index: {}]   ;;  %s8825_s4 = inlined_call_operand.hbm [shape: bf16[4,32,2048], index: 4, kind: input, shape index: {}]   ;;  %s8826_s5 = inlined_call_operand.hbm [shape: bf16[2048,128], index: 5, kind: input, shape index: {}]   ;;  %s8827_s6 = inlined_call_operand.vmem [shape: f32[4,2048], index: 6, kind: input, shape index: {}]   ;;  %s8828_s7 = inlined_call_operand.vmem [shape: bf16[32,4], index: 7, kind: input, shape index: {}]   ;;  %s8829_s8 = inlined_call_operand.vmem [shape: f32[32,128], index: 8, kind: input, shape index: {}]   ;;  %s8830_s9 = inlined_call_operand.hbm [shape: f32[2,4], index: 9, kind: output, shape index: {}]  }
   0x1   :  { %15 = vsyncpa [#allocation6], 0 }
   0x2   :  { %16 = vsyncpa [#allocation4], 0  ;;  %s7384_s30 = smov [#allocation2]  }
   0x3   :  { %s30_s10 = sshll.u32 %s7384_s30, 4  ;;  %s31_s10 = int_to_ptr.vmem [resolvable:$true] %s30_s10 }
   0x4   :  { %s7326_s11 = scalar_lea.vmem %s31_s10, 16384  ;;  %p7331_p1 = scmp.lt.s32.totalorder %s31_s10, %s31_s10 }
   0x5   :  { %p7327_p0 = scmp.ne.s32.totalorder %s31_s10, %s7326_s11  ;;  %p7332_p2 = scmp.lt.s32.totalorder %s7326_s11, %s7326_s11 }
   0x7   :  { %p7333_p3 = por %p7332_p2, %p7331_p1 }
   0x9   :  { %p7334_p4 = pnand %p7333_p3, %p7327_p0 }
   0xb   :  { %7337 = shalt.err (!%p7334_p4)
}
   0xc   :  { %s7385_s12 = smov 1024   ;;  %s7386_s13 = smov 64  }
   0xd   :  { %36 = dma.hbm_to_vmem [thread:$0]  %s8825_s4, 16384, %s31_s10, [#allocation3], %s7385_s12, %s7385_s12, %s7386_s13  }
   0xe   :  { %s7387_s16 = smov [#allocation5]  }
   0xf   :  { %s42_s17 = sshll.u32 %s7387_s16, 4  ;;  %s43_s17 = int_to_ptr.vmem [resolvable:$true] %s42_s17 }
  0x10   :  { %s7346_s18 = scalar_lea.vmem %s43_s17, 16384  ;;  %p7351_p6 = scmp.lt.s32.totalorder %s43_s17, %s43_s17 }
  0x11   :  { %p7347_p5 = scmp.ne.s32.totalorder %s43_s17, %s7346_s18  ;;  %p7352_p7 = scmp.lt.s32.totalorder %s7346_s18, %s7346_s18 }
  0x13   :  { %p7353_p8 = por %p7352_p7, %p7351_p6 }
  0x15   :  { %p7354_p9 = pnand %p7353_p8, %p7347_p5 }
  0x17   :  { %7357 = shalt.err (!%p7354_p9)
}
  0x18   :  { %s7388_s19 = smov 4  }
  0x19   :  { %48 = dma.hbm_to_vmem [thread:$0]  %s8826_s5, 16384, %s43_s17, [#allocation6], %s7386_s13, %s7386_s13, %s7388_s19  }
  0x1a   :  { %7378 = dma.done.wait [#allocation3], 16384  }
  0x1b   :  { %7379 = vsyncadd [#allocation3], 4294950912 }
  0x1c   :  { %7380 = dma.done.wait [#allocation6], 16384  }
  0x1d   :  { %7381 = vsyncadd [#allocation6], 4294950912  ;;  %vm95_vm0 = vcmask 1041408   ;;  %v6935_v0 = vld [vmem:[%s8822_s1 + $0x10] ss:$0 sps:$4 sm:$0x33]  }
  0x1e   :  { %v6936_v1 = vld [vmem:[%s8822_s1 + $0x8] sm:$0xff]   ;;  %6923 = vmatprep.subr.msk.bf16.mxu0 %vm95_vm0, %v6935_v0  ;;  %v97_v2 = vsel %vm95_vm0, %v6935_v0, 0  ;;  %v62_v3 = vld [vmem:[%s8821_s0] sm:$0xff]  ;;  %vm88_vm1 = vcmask 293888   ;;  %v64_v7 = vld [vmem:[%s8821_s0 + $0x10] sm:$0xff]  ;;  %v8831_v11 = vmov 0.0  }
  0x1f   :  { %6894 = vmatpush3.bf16.msra.mxu0 %v97_v2  ;;  %v6937_v4 = vld [vmem:[%s8822_s1] sm:$0xff]   ;;  %v63_v5 = vld [vmem:[%s8821_s0 + $0x8] sm:$0xff]  ;;  %v65_v8 = vld [vmem:[%s8821_s0 + $0x18] sm:$0xff]  ;;  %6903 = vmatprep.subr.bf16.mxu1 %v8831_v11  ;;  %vm7390_vm2 = vmmov 0   ;;  %vm196_vm3 = vcmask 523264   ;;  %v8844_v30 = vmov 0  }
  0x20   :  { %6895 = vmatprep.subr.bf16.mxu0 %v6936_v1  ;;  %v71_v6 = vpack.c.bf16 %v63_v5, %v62_v3  ;;  %v72_v9 = vpack.c.bf16 %v65_v8, %v64_v7  ;;  %v6938_v10 = vld [vmem:[%s8823_s2 + $0x18] sm:$0xff]   ;;  %v6939_v12 = vld [vmem:[%s8823_s2 + $0x10] sm:$0xff]   ;;  %v6940_v13 = vld [vmem:[%s8823_s2 + $0x8] sm:$0xff]   ;;  %6911 = vmatprep.mubr.msk.bf16.mxu1 %vm7390_vm2, %v8831_v11  ;;  %vm266_vm4 = vcmask 261120   ;;  %vm319_vm5 = vcmask 254976   ;;  %s7392_s5 = smov 32  }
  0x21   :  { %6904 = vmatpush3.bf16.msra.mxu1 %v6938_v10  ;;  %v6941_v14 = vld [vmem:[%s8823_s2] sm:$0xff]   ;;  %v6942_v15 = vld [vmem:[%s8824_s3 + $0x14] ss:$8 sps:$4 sm:$0xff]   ;;  %v6944_v16 = vld [vmem:[%s8824_s3 + $0x10] ss:$8 sps:$4 sm:$0xff]   ;;  %s7393_s10 = smov 96  }
  0x22   :  { %6899 = vmatprep.mubr.msk.bf16.mxu0 %vm88_vm1, %v71_v6  ;;  %6905 = vmatprep.subr.bf16.mxu1 %v8831_v11  ;;  %v5832_v23 = vld [vmem:[%s8829_s8] ss:$0 sm:$0xff]  ;;  %v6945_v28 = vld [vmem:[%s8824_s3 + $0x4] ss:$8 sps:$4 sm:$0xff]   ;;  %v5833_v31 = vld [vmem:[%s8829_s8 + $0x1] ss:$0 sm:$0xff] }
  0x23   :  { %6896 = vmatpush3.bf16.msra.mxu0 %v6936_v1  ;;  %v6947_v29 = vld [vmem:[%s8824_s3] ss:$8 sps:$4 sm:$0xff]   ;;  %v5844_v39 = vld [vmem:[%s8829_s8 + $0x4] ss:$0 sm:$0xff]  ;;  %v370_v5 = vld [vmem:[#allocation2 + $0xd0] sm:$0xff]  ;;  %vm3561_vm6 = vcmask 257026  }
  0x24   :  { %6897 = vmatprep.subr.bf16.mxu0 %v6937_v4  ;;  %v360_v52 = vld [vmem:[#allocation2 + $0x80] sm:$0xff]  ;;  %v361_v54 = vld [vmem:[#allocation2 + $0x88] sm:$0xff]  ;;  %v363_v6 = vld [vmem:[#allocation2 + $0x98] sm:$0xff]  ;;  %s7394_s25 = smov [#allocation7]   ;;  %vm5809_vm7 = vcmask 25600  }
  0x25   :  { %6906 = vmatpush3.bf16.msra.mxu1 %v6939_v12  ;;  %v368_v53 = vld [vmem:[#allocation2 + $0xc0] sm:$0xff]  ;;  %v369_v56 = vld [vmem:[#allocation2 + $0xc8] sm:$0xff]  ;;  %v371_v8 = vld [vmem:[#allocation2 + $0xd8] sm:$0xff] }
  0x26   :  { %6907 = vmatprep.subr.bf16.mxu1 %v8831_v11  ;;  %v5865_v55 = vcombine.high %v360_v52, %v368_v53  ;;  %v5864_v57 = vcombine.low %v360_v52, %v368_v53  ;;  %v5866_v58 = vcombine.low %v361_v54, %v369_v56  ;;  %v5867_v59 = vcombine.high %v361_v54, %v369_v56  ;;  %v344_v60 = vld [vmem:[#allocation2] sm:$0xff]  ;;  %v345_v62 = vld [vmem:[#allocation2 + $0x8] sm:$0xff]  ;;  %v350_v56 = vld [vmem:[#allocation2 + $0x30] sm:$0xff] }
  0x27   :  { %6898 = vmatpush3.bf16.msra.mxu0 %v6937_v4  ;;  %v352_v61 = vld [vmem:[#allocation2 + $0x40] sm:$0xff]  ;;  %v353_v0 = vld [vmem:[#allocation2 + $0x48] sm:$0xff]  ;;  %v362_v4 = vld [vmem:[#allocation2 + $0x90] sm:$0xff]  ;;  %v5870_v10 = vcombine.low %v363_v6, %v371_v8  ;;  %v5871_v12 = vcombine.high %v363_v6, %v371_v8 }
  0x28   :  { %282 = vmatprep.subr.bf16.mxu0 %v6942_v15  ;;  %v5849_v63 = vcombine.high %v344_v60, %v352_v61  ;;  %v5848_v1 = vcombine.low %v344_v60, %v352_v61  ;;  %v5850_v2 = vcombine.low %v345_v62, %v353_v0  ;;  %v5851_v3 = vcombine.high %v345_v62, %v353_v0  ;;  %v6952_v6 = vld [vmem:[#allocation5 + $0x70] sm:$0xff]  }
  0x29   :  { %6908 = vmatpush3.bf16.msra.mxu1 %v6940_v13  ;;  %v5869_v7 = vcombine.high %v362_v4, %v370_v5  ;;  %v6954_v8 = vld [vmem:[#allocation5 + $0x30] sm:$0xff]  }
  0x2a   :  { %6900 = vmatmul.mubr.msk.bf16.vlgmr.msra.gmra.mxu0 %vm88_vm1, %v72_v9  ;;  %6909 = vmatprep.subr.bf16.mxu1 %v8831_v11  ;;  %v5868_v9 = vcombine.low %v362_v4, %v370_v5  ;;  %v6950_v4 = vld [vmem:[#allocation5 + $0x38] sm:$0xff]  }
  0x2b   :  { %283 = vmatpush1.bf16.msra.mxu0 %v6944_v16  ;;  %302 = vmatprep.mubr.bf16.mxu0 %v8844_v30  ;;  %v6951_v5 = vld [vmem:[#allocation5 + $0xb8] sm:$0xff]  }
  0x2c   :  { %284 = vmatprep.subr.bf16.mxu0 %v6945_v28 }
  0x2d   :  { %6910 = vmatpush3.bf16.msra.mxu1 %v6941_v14 }
  0x2e   :  { %637 = vmatprep.subr.bf16.mxu1 %v5865_v55 }
  0x2f   :  { %285 = vmatpush1.bf16.msra.mxu0 %v6947_v29  ;;  %v364_v29 = vld [vmem:[#allocation2 + $0xa0] sm:$0xff] }
  0x30   :  { %678 = vmatprep.subr.bf16.mxu0 %v5867_v59  ;;  %v359_v59 = vld [vmem:[#allocation2 + $0x78] sm:$0xff] }
  0xea   :  { %v6901_v17 = vpop.f32.mrf.mxu0 }
  0xec   :  { %v133_v18 = vpop.f32.mrf.mxu0 }
  0xee   :  { %v6902_v19 = vpop.f32.mrf.mxu0 }
  0xf0   :  { %v136_v20 = vpop.f32.mrf.mxu0 }
  0xf1   :  { %v148_v21 = vmax.f32 %v133_v18, %v136_v20 }
  0xf3   :  { %v149_v22 = vmax.f32 %v148_v21, %v6901_v17  ;;  %v5845_v17 = vld [vmem:[%s8829_s8 + $0x6] ss:$0 sm:$0xff]  ;;  %v346_v21 = vld [vmem:[#allocation2 + $0x10] sm:$0xff] }
  0xf5   :  { %v150_v24 = vmax.f32 %v149_v22, %v6902_v19  ;;  %v5846_v19 = vld [vmem:[%s8829_s8 + $0x7] ss:$0 sm:$0xff]  ;;  %v354_v22 = vld [vmem:[#allocation2 + $0x50] sm:$0xff] }
  0xf7   :  { %v156_v25 = vadd.f32 %v5832_v23, %v150_v24  ;;  %v347_v23 = vld [vmem:[#allocation2 + $0x18] sm:$0xff] }
  0xf8   :  { %v355_v24 = vld [vmem:[#allocation2 + $0x58] sm:$0xff] }
  0xf9   :  { %v157_v26 = vmax.f32 %v156_v25, 0.0  ;;  %v5855_v28 = vcombine.high %v347_v23, %v355_v24 }
  0xfb   :  { %v166_v27 = vpack.c.bf16 %v157_v26, %v157_v26 }
  0xfd   :  { %6912 = vmatmul.mubr.msk.bf16.vlgmr.msra.gmra.mxu1 %vm196_vm3, %v166_v27  ;;  %v5853_v27 = vcombine.high %v346_v21, %v354_v22 }
  0xfe   :  { %657 = vmatprep.mubr.bf16.mxu1 %v8844_v30  ;;  %638 = vmatpush1.bf16.msra.mxu1 %v5864_v57  ;;  %v358_v57 = vld [vmem:[#allocation2 + $0x70] sm:$0xff] }
  0xff   :  { %639 = vmatprep.subr.bf16.mxu1 %v5849_v63  ;;  %v5861_v62 = vcombine.high %v350_v56, %v358_v57  ;;  %v5860_v0 = vcombine.low %v350_v56, %v358_v57 }
 0x102   :  { %640 = vmatpush1.bf16.msra.mxu1 %v5848_v1 }
 0x103   :  { %719 = vmatprep.subr.bf16.mxu1 %v5869_v7  ;;  %v6953_v7 = vld [vmem:[#allocation5 + $0xf0] sm:$0xff]  }
 0x1bd   :  { %v234_v32 = vpop.f32.mrf.mxu1 }
 0x1be   :  { %v235_v33 = vadd.f32 %v5833_v31, %v234_v32  ;;  %v372_v31 = vld [vmem:[#allocation2 + $0xe0] sm:$0xff]  ;;  %v365_v32 = vld [vmem:[#allocation2 + $0xa8] sm:$0xff] }
 0x1bf   :  { %v6913_v34 = vpop.f32.mrf.mxu1 }
 0x1c0   :  { %v7513_v35 = vmax.f32 %v235_v33, 0.0  ;;  %v373_v33 = vld [vmem:[#allocation2 + $0xe8] sm:$0xff]  ;;  %v5852_v34 = vcombine.low %v346_v21, %v354_v22  ;;  %v6966_v21 = vld [vmem:[#allocation5 + $0x18] sm:$0xff]  }
 0x1c1   :  { %v237_v36 = vpop.f32.mrf.mxu1  ;;  %v6967_v22 = vld [vmem:[#allocation5 + $0x98] sm:$0xff]  }
 0x1c2   :  { %8954 = vst [vmem:[#allocation11_spill] sm:$0xff] %v7513_v35  ;;  %v7517_v37 = vpack.c.bf16 %v7513_v35, %v7513_v35  ;;  %v5854_v36 = vcombine.low %v347_v23, %v355_v24  ;;  %v6968_v23 = vld [vmem:[#allocation5 + $0x50] sm:$0xff]  }
 0x1c3   :  { %v6914_v38 = vpop.f32.mrf.mxu1  ;;  %v6969_v24 = vld [vmem:[#allocation5 + $0xd0] sm:$0xff]  }
 0x1c4   :  { %8955 = vst [vmem:[#allocation12_spill] sm:$0xff] %v7517_v37  ;;  %5843 = vmatmul.mubr.msk.bf16.vlgmr.msra.gmra.mxu0 %vm266_vm4, %v7517_v37  ;;  %v5873_v38 = vcombine.high %v364_v29, %v372_v31 }
 0x1c5   :  { %698 = vmatprep.mubr.bf16.mxu0 %v8844_v30  ;;  %679 = vmatpush1.bf16.msra.mxu0 %v5866_v58  ;;  %v351_v58 = vld [vmem:[#allocation2 + $0x38] sm:$0xff] }
 0x1c6   :  { %680 = vmatprep.subr.bf16.mxu0 %v5851_v3  ;;  %v5863_v63 = vcombine.high %v351_v58, %v359_v59  ;;  %v5862_v1 = vcombine.low %v351_v58, %v359_v59  ;;  %v6949_v3 = vld [vmem:[#allocation5 + $0xf8] sm:$0xff]  }
 0x1c9   :  { %681 = vmatpush1.bf16.msra.mxu0 %v5850_v2  ;;  %v6948_v2 = vld [vmem:[#allocation5 + $0x78] sm:$0xff]  }
 0x1ca   :  { %760 = vmatprep.subr.bf16.mxu0 %v5871_v12  ;;  %v6957_v12 = vld [vmem:[#allocation5 + $0xe8] sm:$0xff]  }
 0x284   :  { %v304_v40 = vpop.f32.mrf.mxu0 }
 0x285   :  { %v315_v41 = vadd.f32 %v5844_v39, %v304_v40  ;;  %v5875_v39 = vcombine.high %v365_v32, %v373_v33  ;;  %v348_v40 = vld [vmem:[#allocation2 + $0x20] sm:$0xff] }
 0x286   :  { %v306_v42 = vpop.f32.mrf.mxu0 }
 0x287   :  { %v316_v43 = vadd.f32 %v315_v41, %v7513_v35  ;;  %v356_v41 = vld [vmem:[#allocation2 + $0x60] sm:$0xff]  ;;  %v349_v42 = vld [vmem:[#allocation2 + $0x28] sm:$0xff] }
 0x288   :  { %v307_v44 = vpop.f32.mrf.mxu0  ;;  %v5856_v52 = vcombine.low %v348_v40, %v356_v41 }
 0x289   :  { %v320_v45 = vsel %vm319_vm5, %v316_v43, 0.0  ;;  %v5872_v44 = vcombine.low %v364_v29, %v372_v31  ;;  %v6973_v29 = vld [vmem:[#allocation5 + $0xc8] sm:$0xff]  }
 0x28a   :  { %321 = vadd.xlane.f32.xlu0 %v320_v45  ;;  %v308_v46 = vpop.f32.mrf.mxu0  ;;  %v5874_v45 = vcombine.low %v365_v32, %v373_v33  ;;  %v6974_v31 = vld [vmem:[#allocation5 + $0x8] sm:$0xff]   ;;  %v6976_v33 = vld [vmem:[#allocation5 + $0x40] sm:$0xff]  }
 0x28b   :  { %v5857_v46 = vcombine.high %v348_v40, %v356_v41  ;;  %v6975_v32 = vld [vmem:[#allocation5 + $0x88] sm:$0xff]   ;;  %v6981_v40 = vld [vmem:[#allocation5 + $0x1f8] sm:$0xff]   ;;  %v382_v41 = vlaneseq }
 0x313   :  { %v322_v47 = vpop.xlane.xlu0 %321 }
 0x314   :  { %v324_v48 = vmul.f32 0.03125, %v322_v47 }
 0x316   :  { %v325_v49 = vsub.f32 %v316_v43, %v324_v48  ;;  %v357_v43 = vld [vmem:[#allocation2 + $0x68] sm:$0xff]  ;;  %v366_v48 = vld [vmem:[#allocation2 + $0xb0] sm:$0xff] }
 0x317   :  { %v5859_v47 = vcombine.high %v349_v42, %v357_v43  ;;  %v5858_v53 = vcombine.low %v349_v42, %v357_v43  ;;  %v7562_v42 = vshrl.u32 %v382_v41, 7 }
 0x318   :  { %v326_v50 = vmul.f32 %v325_v49, %v325_v49 }
 0x319   :  { %v7565_v43 = vsub.s32 0, %v7562_v42 }
 0x31a   :  { %v327_v51 = vsel %vm319_vm5, %v326_v50, 0.0  ;;  %v367_v50 = vld [vmem:[#allocation2 + $0xb8] sm:$0xff] }
 0x31b   :  { %328 = vadd.xlane.f32.xlu0 %v327_v51  ;;  %v375_v51 = vld [vmem:[#allocation2 + $0xf8] sm:$0xff] }
 0x31c   :  { %v5879_v55 = vcombine.high %v367_v50, %v375_v51  ;;  %v5878_v61 = vcombine.low %v367_v50, %v375_v51 }
 0x3a4   :  { %v329_v13 = vpop.xlane.xlu0 %328 }
 0x3a5   :  { %v330_v14 = vmul.f32 0.03125, %v329_v13  ;;  %v6958_v13 = vld [vmem:[#allocation5 + $0x28] sm:$0xff]  }
 0x3a7   :  { %v331_v15 = vadd.f32 1e-05, %v330_v14  ;;  %v6959_v14 = vld [vmem:[#allocation5 + $0xa8] sm:$0xff]  }
 0x3a9   :  { %7078 = vrsqrt.f32 %v331_v15  ;;  %v6960_v15 = vld [vmem:[#allocation5 + $0x60] sm:$0xff]  }
 0x3b6   :  { %v7079_v16 = vpop.eup %7078 }
 0x3b7   :  { %v333_v18 = vmul.f32 %v7079_v16, %v325_v49  ;;  %v374_v49 = vld [vmem:[#allocation2 + $0xf0] sm:$0xff]  ;;  %v6961_v16 = vld [vmem:[#allocation5 + $0xe0] sm:$0xff]  }
 0x3b8   :  { %v5877_v54 = vcombine.high %v366_v48, %v374_v49  ;;  %v5876_v60 = vcombine.low %v366_v48, %v374_v49 }
 0x3b9   :  { %v338_v20 = vmul.f32 %v5845_v17, %v333_v18  ;;  %v6962_v17 = vld [vmem:[#allocation5 + $0x20] sm:$0xff]  }
 0x3ba   :  { %v6963_v18 = vld [vmem:[#allocation5 + $0xa0] sm:$0xff]  }
 0x3bb   :  { %v7534_v25 = vadd.f32 %v5846_v19, %v338_v20  ;;  %v6964_v19 = vld [vmem:[#allocation5 + $0x58] sm:$0xff]  }
 0x3bc   :  { %v6965_v20 = vld [vmem:[#allocation5 + $0xd8] sm:$0xff]  }
 0x3bd   :  { %v7538_v26 = vpack.c.bf16 %v7534_v25, %v7534_v25 }
 0x3bf   :  { %5880 = vmatmul.mubr.msk.bf16.vlgmr.msra.gmra.mxu1 %vm266_vm4, %v7538_v26  ;;  %5881 = vmatmul.mubr.msk.bf16.vlgmr.msra.gmra.mxu0 %vm266_vm4, %v7538_v26 }
 0x3c0   :  { %720 = vmatpush1.bf16.msra.mxu1 %v5868_v9  ;;  %761 = vmatpush1.bf16.msra.mxu0 %v5870_v10  ;;  %v6955_v9 = vld [vmem:[#allocation5 + $0xb0] sm:$0xff]   ;;  %v6956_v10 = vld [vmem:[#allocation5 + $0x68] sm:$0xff]  }
 0x3c1   :  { %721 = vmatprep.subr.bf16.mxu1 %v5853_v27  ;;  %762 = vmatprep.subr.bf16.mxu0 %v5855_v28  ;;  %v6971_v27 = vld [vmem:[#allocation5 + $0x90] sm:$0xff]   ;;  %v6972_v28 = vld [vmem:[#allocation5 + $0x48] sm:$0xff]  }
 0x3c2   :  { %739 = vmatprep.mubr.bf16.mxu1 %v8844_v30  ;;  %780 = vmatprep.mubr.bf16.mxu0 %v8844_v30 }
 0x3c4   :  { %722 = vmatpush1.bf16.msra.mxu1 %v5852_v34  ;;  %763 = vmatpush1.bf16.msra.mxu0 %v5854_v36  ;;  %v6977_v34 = vld [vmem:[#allocation5 + $0xc0] sm:$0xff]  }
 0x3c5   :  { %801 = vmatprep.subr.bf16.mxu1 %v5873_v38  ;;  %842 = vmatprep.subr.bf16.mxu0 %v5875_v39  ;;  %v6978_v36 = vld [vmem:[#allocation5] sm:$0xff]   ;;  %v6980_v39 = vld [vmem:[#allocation5 + $0x178] sm:$0xff]  }
 0x3c6   :  { %v6979_v38 = vld [vmem:[#allocation5 + $0x80] sm:$0xff]  }
 0x3c7   :  { %5882 = vmatmul.mubr.msk.bf16.vlgmr.msra.gmra.mxu1 %vm266_vm4, %v7538_v26  ;;  %5883 = vmatmul.mubr.msk.bf16.vlgmr.msra.gmra.mxu0 %vm266_vm4, %v7538_v26 }
 0x3c8   :  { %802 = vmatpush1.bf16.msra.mxu1 %v5872_v44  ;;  %843 = vmatpush1.bf16.msra.mxu0 %v5874_v45  ;;  %v7568_v44 = vsub.s32 2, %v7562_v42  ;;  %v7573_v45 = vld [vmem:[%s8827_s6] ss:$4 sm:$0xff] }
 0x3c9   :  { %803 = vmatprep.subr.bf16.mxu1 %v5857_v46  ;;  %844 = vmatprep.subr.bf16.mxu0 %v5859_v47  ;;  %v7576_v46 = vsub.s32 1, %v7562_v42  ;;  %v7579_v47 = vsub.s32 3, %v7562_v42  ;;  %v385_v48 = vrot.slane %v7573_v45, %v7565_v43 }
 0x3ca   :  { %821 = vmatprep.mubr.bf16.mxu1 %v8844_v30  ;;  %862 = vmatprep.mubr.bf16.mxu0 %v8844_v30  ;;  %v393_v49 = vrot.slane %v7573_v45, %v7568_v44 }
 0x3cb   :  { %v389_v50 = vrot.slane %v7573_v45, %v7576_v46  ;;  %v397_v51 = vrot.slane %v7573_v45, %v7579_v47 }
 0x3cc   :  { %804 = vmatpush1.bf16.msra.mxu1 %v5856_v52  ;;  %845 = vmatpush1.bf16.msra.mxu0 %v5858_v53 }
 0x3cd   :  { %883 = vmatprep.subr.bf16.mxu1 %v5877_v54  ;;  %924 = vmatprep.subr.bf16.mxu0 %v5879_v55 }
 0x3cf   :  { %5884 = vmatmul.mubr.msk.bf16.vlgmr.msra.gmra.mxu1 %vm266_vm4, %v7538_v26  ;;  %5885 = vmatmul.mubr.msk.bf16.vlgmr.msra.gmra.mxu0 %vm266_vm4, %v7538_v26 }
 0x3d0   :  { %884 = vmatpush1.bf16.msra.mxu1 %v5876_v60  ;;  %925 = vmatpush1.bf16.msra.mxu0 %v5878_v61  ;;  %v7590_v60 = vsub.s32 5, %v7562_v42  ;;  %v7593_v61 = vsub.s32 7, %v7562_v42 }
 0x3d1   :  { %885 = vmatprep.subr.bf16.mxu1 %v5861_v62  ;;  %926 = vmatprep.subr.bf16.mxu0 %v5863_v63 }
 0x3d2   :  { %903 = vmatprep.mubr.bf16.mxu1 %v8844_v30  ;;  %944 = vmatprep.mubr.bf16.mxu0 %v8844_v30 }
 0x3d4   :  { %886 = vmatpush1.bf16.msra.mxu1 %v5860_v0  ;;  %927 = vmatpush1.bf16.msra.mxu0 %v5862_v1 }
 0x3d5   :  { %6186 = vmatprep.subr.bf16.mxu1 %v6948_v2  ;;  %6208 = vmatprep.subr.bf16.mxu0 %v6949_v3 }
 0x3d7   :  { %5886 = vmatmul.mubr.msk.bf16.vlgmr.msra.gmra.mxu1 %vm266_vm4, %v7538_v26  ;;  %5887 = vmatmul.mubr.msk.bf16.vlgmr.msra.gmra.mxu0 %vm266_vm4, %v7538_v26  ;;  %v6970_v26 = vld [vmem:[#allocation5 + $0x10] sm:$0xff]  }
 0x3d8   :  { %6187 = vmatpush3.bf16.msra.mxu1 %v6950_v4  ;;  %6209 = vmatpush3.bf16.msra.mxu0 %v6951_v5 }
 0x3d9   :  { %6188 = vmatprep.subr.bf16.mxu1 %v6952_v6  ;;  %6210 = vmatprep.subr.bf16.mxu0 %v6953_v7 }
 0x3dc   :  { %6189 = vmatpush3.bf16.msra.mxu1 %v6954_v8  ;;  %6211 = vmatpush3.bf16.msra.mxu0 %v6955_v9  ;;  %v405_v8 = vrot.slane %v7573_v45, %v7590_v60  ;;  %v413_v9 = vrot.slane %v7573_v45, %v7593_v61 }
 0x3dd   :  { %6190 = vmatprep.subr.bf16.mxu1 %v6956_v10  ;;  %6212 = vmatprep.subr.bf16.mxu0 %v6957_v12  ;;  %v6982_v10 = vld [vmem:[#allocation5 + $0x138] sm:$0xff]  }
 0x3de   :  { %v6983_v12 = vld [vmem:[#allocation5 + $0x1b8] sm:$0xff]  }
 0x3e0   :  { %6191 = vmatpush3.bf16.msra.mxu1 %v6958_v13  ;;  %6213 = vmatpush3.bf16.msra.mxu0 %v6959_v14 }
 0x3e1   :  { %6192 = vmatprep.subr.bf16.mxu1 %v6960_v15  ;;  %6214 = vmatprep.subr.bf16.mxu0 %v6961_v16 }
 0x3e4   :  { %6193 = vmatpush3.bf16.msra.mxu1 %v6962_v17  ;;  %6215 = vmatpush3.bf16.msra.mxu0 %v6963_v18  ;;  %v6984_v17 = vld [vmem:[#allocation5 + $0x170] sm:$0xff]  }
 0x3e5   :  { %6194 = vmatprep.subr.bf16.mxu1 %v6964_v19  ;;  %6216 = vmatprep.subr.bf16.mxu0 %v6965_v20  ;;  %v6985_v18 = vld [vmem:[#allocation5 + $0x1f0] sm:$0xff]  }
 0x3e8   :  { %6195 = vmatpush3.bf16.msra.mxu1 %v6966_v21  ;;  %6217 = vmatpush3.bf16.msra.mxu0 %v6967_v22 }
 0x3e9   :  { %6196 = vmatprep.subr.bf16.mxu1 %v6968_v23  ;;  %6218 = vmatprep.subr.bf16.mxu0 %v6969_v24  ;;  %v6986_v23 = vld [vmem:[#allocation5 + $0x130] sm:$0xff]  }
 0x3ea   :  { %v6987_v24 = vld [vmem:[#allocation5 + $0x1b0] sm:$0xff]  }
 0x3ec   :  { %6197 = vmatpush3.bf16.msra.mxu1 %v6970_v26  ;;  %6219 = vmatpush3.bf16.msra.mxu0 %v6971_v27 }
 0x3ed   :  { %6198 = vmatprep.subr.bf16.mxu1 %v6972_v28  ;;  %6220 = vmatprep.subr.bf16.mxu0 %v6973_v29  ;;  %v6988_v28 = vld [vmem:[#allocation5 + $0x168] sm:$0xff]  }
 0x3ee   :  { %v6989_v29 = vld [vmem:[#allocation5 + $0x1e8] sm:$0xff]  }
 0x3f0   :  { %6199 = vmatpush3.bf16.msra.mxu1 %v6974_v31  ;;  %6221 = vmatpush3.bf16.msra.mxu0 %v6975_v32 }
 0x3f1   :  { %6200 = vmatprep.subr.bf16.mxu1 %v6976_v33  ;;  %6222 = vmatprep.subr.bf16.mxu0 %v6977_v34 }
 0x3f4   :  { %6201 = vmatpush3.bf16.msra.mxu1 %v6978_v36  ;;  %6223 = vmatpush3.bf16.msra.mxu0 %v6979_v38 }
 0x3f5   :  { %6230 = vmatprep.subr.bf16.mxu1 %v6980_v39  ;;  %6252 = vmatprep.subr.bf16.mxu0 %v6981_v40  ;;  %v6990_v39 = vld [vmem:[#allocation5 + $0x128] sm:$0xff]  }
 0x3f6   :  { %v6991_v40 = vld [vmem:[#allocation5 + $0x1a8] sm:$0xff]  }
 0x47f   :  { %v659_v52 = vpop.f32.mrf.mxu1  ;;  %v700_v53 = vpop.f32.mrf.mxu0 }
 0x480   :  { %v660_v54 = vadd.f32 %v659_v52, %v385_v48  ;;  %v701_v55 = vadd.f32 %v700_v53, %v393_v49  ;;  %v6992_v49 = vld [vmem:[#allocation5 + $0x160] sm:$0xff]   ;;  %v7608_v53 = vsub.s32 6, %v7562_v42 }
 0x481   :  { %v661_v56 = vpop.f32.mrf.mxu1  ;;  %v702_v57 = vpop.f32.mrf.mxu0 }
 0x482   :  { %v662_v58 = vadd.f32 %v661_v56, %v389_v50  ;;  %v703_v59 = vadd.f32 %v702_v57, %v397_v51  ;;  %v953_v62 = vmax.f32 %v660_v54, 0.0  ;;  %v955_v63 = vmax.f32 %v701_v55, 0.0  ;;  %v6993_v50 = vld [vmem:[#allocation5 + $0x1e0] sm:$0xff]   ;;  %8956 = vst [vmem:[#allocation13_spill] sm:$0xff] %v7608_v53 }
 0x483   :  { %v663_v0 = vpop.f32.mrf.mxu1  ;;  %v704_v1 = vpop.f32.mrf.mxu0  ;;  %v6994_v54 = vld [vmem:[#allocation5 + $0x120] sm:$0xff]  }
 0x484   :  { %v954_v2 = vmax.f32 %v662_v58, 0.0  ;;  %v956_v3 = vmax.f32 %v703_v59, 0.0  ;;  %v1225_v13 = vpack.c.bf16 %v953_v62, %v953_v62  ;;  %v1227_v14 = vpack.c.bf16 %v955_v63, %v955_v63  ;;  %v6995_v55 = vld [vmem:[#allocation5 + $0x1a0] sm:$0xff]   ;;  %v6996_v59 = vld [vmem:[#allocation5 + $0x158] sm:$0xff]  }
 0x485   :  { %v664_v4 = vpop.f32.mrf.mxu1  ;;  %v705_v5 = vpop.f32.mrf.mxu0  ;;  %v7613_v56 = vld [vmem:[%s8827_s6 + $0x20] ss:$4 sm:$0xff] }
 0x486   :  { %v1226_v6 = vpack.c.bf16 %v954_v2, %v954_v2  ;;  %v1228_v7 = vpack.c.bf16 %v956_v3, %v956_v3  ;;  %v6997_v62 = vld [vmem:[#allocation5 + $0x1d8] sm:$0xff]   ;;  %v441_v63 = vrot.slane %v7613_v56, %v7608_v53  ;;  %v7618_v4 = vsub.s32 4, %v7562_v42 }
 0x487   :  { %v7599_v15 = vpop.f32.mrf.mxu1  ;;  %v7601_v16 = vpop.f32.mrf.mxu0  ;;  %v6998_v2 = vld [vmem:[#allocation5 + $0x118] sm:$0xff]  }
 0x488   :  { %2041 = vmatprep.mubr.bf16.mxu1 %v1226_v6  ;;  %2081 = vmatprep.mubr.bf16.mxu0 %v1228_v7  ;;  %v6999_v3 = vld [vmem:[#allocation5 + $0x198] sm:$0xff]   ;;  %v7000_v7 = vld [vmem:[#allocation5 + $0x150] sm:$0xff]   ;;  %v401_v42 = vrot.slane %v7573_v45, %v7618_v4 }
 0x489   :  { %v743_v19 = vpop.f32.mrf.mxu1  ;;  %v784_v20 = vpop.f32.mrf.mxu0  ;;  %2042 = vmatmul.mubr.bf16.vlgmr.msra.gmra.mxu1 %v1225_v13  ;;  %2082 = vmatmul.mubr.bf16.vlgmr.msra.gmra.mxu0 %v1227_v14  ;;  %v7002_v13 = vld [vmem:[#allocation5 + $0x110] sm:$0xff]  }
 0x48a   :  { %v744_v21 = vadd.f32 %v743_v19, %v405_v8  ;;  %v785_v22 = vadd.f32 %v784_v20, %v413_v9  ;;  %6231 = vmatpush3.bf16.msra.mxu1 %v6982_v10  ;;  %6253 = vmatpush3.bf16.msra.mxu0 %v6983_v12  ;;  %v7001_v8 = vld [vmem:[#allocation5 + $0x1d0] sm:$0xff]   ;;  %v7004_v20 = vld [vmem:[#allocation5 + $0x148] sm:$0xff]  }
 0x48b   :  { %v745_v26 = vpop.f32.mrf.mxu1  ;;  %v786_v27 = vpop.f32.mrf.mxu0  ;;  %6232 = vmatprep.subr.bf16.mxu1 %v6984_v17  ;;  %6254 = vmatprep.subr.bf16.mxu0 %v6985_v18  ;;  %v7003_v14 = vld [vmem:[#allocation5 + $0x190] sm:$0xff]   ;;  %v409_v17 = vrot.slane %v7573_v45, %v7608_v53  ;;  %v742_v45 = vadd.f32 %v7599_v15, %v401_v42  ;;  %v7028_v42 = vld [vmem:[#allocation5 + $0x258] sm:$0xff]  }
 0x48c   :  { %v958_v31 = vmax.f32 %v744_v21, 0.0  ;;  %v960_v32 = vmax.f32 %v785_v22, 0.0  ;;  %v7005_v21 = vld [vmem:[#allocation5 + $0x1c8] sm:$0xff]   ;;  %v421_v22 = vrot.slane %v7613_v56, %v7576_v46 }
 0x48d   :  { %v746_v33 = vpop.f32.mrf.mxu1  ;;  %v787_v34 = vpop.f32.mrf.mxu0  ;;  %v7006_v27 = vld [vmem:[#allocation5 + $0x108] sm:$0xff]  }
 0x48e   :  { %v1230_v36 = vpack.c.bf16 %v958_v31, %v958_v31  ;;  %v1232_v38 = vpack.c.bf16 %v960_v32, %v960_v32  ;;  %6233 = vmatpush3.bf16.msra.mxu1 %v6986_v23  ;;  %6255 = vmatpush3.bf16.msra.mxu0 %v6987_v24  ;;  %v429_v23 = vrot.slane %v7613_v56, %v7579_v47  ;;  %v7008_v31 = vld [vmem:[#allocation5 + $0x140] sm:$0xff]  }
 0x48f   :  { %v7603_v41 = vpop.f32.mrf.mxu1  ;;  %v7605_v48 = vpop.f32.mrf.mxu0  ;;  %6234 = vmatprep.subr.bf16.mxu1 %v6988_v28  ;;  %6256 = vmatprep.subr.bf16.mxu0 %v6989_v29  ;;  %v7007_v28 = vld [vmem:[#allocation5 + $0x188] sm:$0xff]   ;;  %v783_v29 = vadd.f32 %v7601_v16, %v409_v17  ;;  %v7009_v32 = vld [vmem:[#allocation5 + $0x1c0] sm:$0xff]   ;;  %v7014_v16 = vld [vmem:[#allocation5 + $0x238] sm:$0xff]  }
 0x490   :  { %2121 = vmatprep.mubr.bf16.mxu1 %v1230_v36  ;;  %2161 = vmatprep.mubr.bf16.mxu0 %v1232_v38  ;;  %v7010_v36 = vld [vmem:[#allocation5 + $0x100] sm:$0xff]   ;;  %v7029_v17 = vld [vmem:[#allocation5 + $0x2d8] sm:$0xff]  }
 0x491   :  { %v825_v51 = vpop.f32.mrf.mxu1  ;;  %v866_v52 = vpop.f32.mrf.mxu0  ;;  %v7011_v38 = vld [vmem:[#allocation5 + $0x180] sm:$0xff]  }
 0x492   :  { %6235 = vmatpush3.bf16.msra.mxu1 %v6990_v39  ;;  %6257 = vmatpush3.bf16.msra.mxu0 %v6991_v40  ;;  %v826_v33 = vadd.f32 %v825_v51, %v421_v22  ;;  %v867_v34 = vadd.f32 %v866_v52, %v429_v23  ;;  %v957_v39 = vmax.f32 %v742_v45, 0.0  ;;  %v959_v40 = vmax.f32 %v783_v29, 0.0  ;;  %v7015_v51 = vld [vmem:[#allocation5 + $0x2b8] sm:$0xff]   ;;  %v7034_v22 = vld [vmem:[#allocation5 + $0x210] sm:$0xff]  }
 0x493   :  { %v827_v57 = vpop.f32.mrf.mxu1  ;;  %v868_v58 = vpop.f32.mrf.mxu0  ;;  %6236 = vmatprep.subr.bf16.mxu1 %v6992_v49  ;;  %6258 = vmatprep.subr.bf16.mxu0 %v6993_v50  ;;  %v7012_v49 = vld [vmem:[#allocation5 + $0x278] sm:$0xff]   ;;  %v417_v23 = vrot.slane %v7613_v56, %v7565_v43  ;;  %v437_v45 = vrot.slane %v7613_v56, %v7590_v60  ;;  %v445_v29 = vrot.slane %v7613_v56, %v7593_v61 }
 0x494   :  { %v7013_v50 = vld [vmem:[#allocation5 + $0x2f8] sm:$0xff]   ;;  %v964_v15 = vmax.f32 %v867_v34, 0.0  ;;  %v1231_v57 = vpack.c.bf16 %v959_v40, %v959_v40  ;;  %v7016_v58 = vld [vmem:[#allocation5 + $0x270] sm:$0xff]   ;;  %v7668_v34 = vld [vmem:[#allocation5 + $0x240] sm:$0xff]  }
 0x495   :  { %v828_v0 = vpop.f32.mrf.mxu1  ;;  %v869_v1 = vpop.f32.mrf.mxu0 }
 0x496   :  { %6237 = vmatpush3.bf16.msra.mxu1 %v6994_v54  ;;  %6259 = vmatpush3.bf16.msra.mxu0 %v6995_v55  ;;  %v962_v54 = vmax.f32 %v826_v33, 0.0  ;;  %v1229_v55 = vpack.c.bf16 %v957_v39, %v957_v39  ;;  %v7019_v0 = vld [vmem:[#allocation5 + $0x2b0] sm:$0xff]   ;;  %v7020_v1 = vld [vmem:[#allocation5 + $0x268] sm:$0xff]  }
 0x497   :  { %v7620_v5 = vpop.f32.mrf.mxu1  ;;  %v946_v6 = vpop.f32.mrf.mxu0  ;;  %6238 = vmatprep.subr.bf16.mxu1 %v6996_v59  ;;  %6260 = vmatprep.subr.bf16.mxu0 %v6997_v62  ;;  %v7017_v59 = vld [vmem:[#allocation5 + $0x2f0] sm:$0xff]   ;;  %v1236_v62 = vpack.c.bf16 %v964_v15, %v964_v15  ;;  %v7666_v33 = vld [vmem:[#allocation5 + $0x288] sm:$0xff]   ;;  %v7686_v15 = vld [vmem:[#allocation5 + $0x3f8] sm:$0xff]  }
 0x498   :  { %v7622_v9 = vadd.f32 %v946_v6, %v441_v63  ;;  %v1234_v52 = vpack.c.bf16 %v962_v54, %v962_v54  ;;  %v7018_v63 = vld [vmem:[#allocation5 + $0x230] sm:$0xff]   ;;  %v7023_v6 = vld [vmem:[#allocation5 + $0x2a8] sm:$0xff]  }
 0x499   :  { %v7624_v10 = vpop.f32.mrf.mxu1  ;;  %v7626_v12 = vpop.f32.mrf.mxu0 }
 0x49a   :  { %6239 = vmatpush3.bf16.msra.mxu1 %v6998_v2  ;;  %6261 = vmatpush3.bf16.msra.mxu0 %v6999_v3  ;;  %v7021_v2 = vld [vmem:[#allocation5 + $0x2e8] sm:$0xff]   ;;  %v908_v39 = vadd.f32 %v7624_v10, %v437_v45  ;;  %v949_v40 = vadd.f32 %v7626_v12, %v445_v29  ;;  %v7749_v45 = vld [vmem:[#allocation5 + $0x310] sm:$0xff]   ;;  %v433_v29 = vrot.slane %v7613_v56, %v7618_v4 }
 0x49b   :  { %v909_v18 = vpop.f32.mrf.mxu1  ;;  %v950_v19 = vpop.f32.mrf.mxu0  ;;  %6240 = vmatprep.subr.bf16.mxu1 %v7000_v7  ;;  %6262 = vmatprep.subr.bf16.mxu0 %v7001_v8  ;;  %v7022_v3 = vld [vmem:[#allocation5 + $0x228] sm:$0xff]   ;;  %v7024_v7 = vld [vmem:[#allocation5 + $0x260] sm:$0xff]   ;;  %8965 = vst [vmem:[#allocation22_spill] sm:$0xff] %v7749_v45 }
 0x49c   :  { %v7025_v8 = vld [vmem:[#allocation5 + $0x2e0] sm:$0xff]   ;;  %v7030_v18 = vld [vmem:[#allocation5 + $0x218] sm:$0xff]   ;;  %v966_v10 = vmax.f32 %v908_v39, 0.0  ;;  %v968_v12 = vmax.f32 %v949_v40, 0.0  ;;  %v7760_v39 = vld [vmem:[#allocation5 + $0x3c8] sm:$0xff]  }
 0x49d   :  { %v910_v24 = vpop.f32.mrf.mxu1  ;;  %v951_v26 = vpop.f32.mrf.mxu0  ;;  %v7638_v19 = vld [vmem:[#allocation5 + $0x298] sm:$0xff]   ;;  %8968 = vst [vmem:[#allocation25_spill] sm:$0xff] %v7760_v39  ;;  %v7763_v40 = vld [vmem:[#allocation5 + $0x308] sm:$0xff]  }
 0x49e   :  { %6241 = vmatpush3.bf16.msra.mxu1 %v7002_v13  ;;  %6263 = vmatpush3.bf16.msra.mxu0 %v7003_v14  ;;  %v7026_v13 = vld [vmem:[#allocation5 + $0x220] sm:$0xff]   ;;  %v7648_v24 = vld [vmem:[#allocation5 + $0x290] sm:$0xff]   ;;  %v7650_v26 = vld [vmem:[#allocation5 + $0x248] sm:$0xff]   ;;  %8969 = vst [vmem:[#allocation26_spill] sm:$0xff] %v7763_v40 }
 0x49f   :  { %6242 = vmatprep.subr.bf16.mxu1 %v7004_v20  ;;  %6264 = vmatprep.subr.bf16.mxu0 %v7005_v21  ;;  %v7027_v14 = vld [vmem:[#allocation5 + $0x2a0] sm:$0xff]   ;;  %v7640_v20 = vld [vmem:[#allocation5 + $0x250] sm:$0xff]  }
 0x4a0   :  { %v7642_v21 = vld [vmem:[#allocation5 + $0x2d0] sm:$0xff]  }
 0x4a2   :  { %6243 = vmatpush3.bf16.msra.mxu1 %v7006_v27  ;;  %6265 = vmatpush3.bf16.msra.mxu0 %v7007_v28  ;;  %v425_v27 = vrot.slane %v7613_v56, %v7568_v44  ;;  %v7655_v28 = vld [vmem:[#allocation5 + $0x2c8] sm:$0xff]  }
 0x4a3   :  { %6244 = vmatprep.subr.bf16.mxu1 %v7008_v31  ;;  %6266 = vmatprep.subr.bf16.mxu0 %v7009_v32  ;;  %v7661_v31 = vld [vmem:[#allocation5 + $0x208] sm:$0xff]   ;;  %v824_v32 = vadd.f32 %v7603_v41, %v417_v23  ;;  %v7677_v41 = vld [vmem:[#allocation5 + $0x200] sm:$0xff]   ;;  %v7743_v23 = vld [vmem:[#allocation5 + $0x350] sm:$0xff]  }
 0x4a4   :  { %8963 = vst [vmem:[#allocation20_spill] sm:$0xff] %v7743_v23  ;;  %v7768_v56 = vld [vmem:[#allocation5 + $0x388] sm:$0xff]  }
 0x4a5   :  { %8970 = vst [vmem:[#allocation27_spill] sm:$0xff] %v7768_v56 }
 0x4a6   :  { %6245 = vmatpush3.bf16.msra.mxu1 %v7010_v36  ;;  %6267 = vmatpush3.bf16.msra.mxu0 %v7011_v38  ;;  %v865_v36 = vadd.f32 %v7605_v48, %v425_v27  ;;  %v7672_v38 = vld [vmem:[#allocation5 + $0x2c0] sm:$0xff]   ;;  %v7683_v48 = vld [vmem:[#allocation5 + $0x378] sm:$0xff]   ;;  %v7746_v27 = vld [vmem:[#allocation5 + $0x3d0] sm:$0xff]  }
 0x4a7   :  { %6274 = vmatprep.subr.bf16.mxu1 %v7012_v49  ;;  %6296 = vmatprep.subr.bf16.mxu0 %v7013_v50  ;;  %v961_v49 = vmax.f32 %v824_v32, 0.0  ;;  %v7681_v50 = vld [vmem:[#allocation5 + $0x280] sm:$0xff]   ;;  %8964 = vst [vmem:[#allocation21_spill] sm:$0xff] %v7746_v27  ;;  %v7755_v32 = vld [vmem:[#allocation5 + $0x390] sm:$0xff]  }
 0x4a8   :  { %v963_v54 = vmax.f32 %v865_v36, 0.0  ;;  %8966 = vst [vmem:[#allocation23_spill] sm:$0xff] %v7755_v32  ;;  %v7757_v36 = vld [vmem:[#allocation5 + $0x348] sm:$0xff]  }
 0x4a9   :  { %2122 = vmatmul.mubr.bf16.vlgmr.msra.gmra.mxu1 %v1229_v55  ;;  %2162 = vmatmul.mubr.bf16.vlgmr.msra.gmra.mxu0 %v1231_v57  ;;  %v1233_v55 = vpack.c.bf16 %v961_v49, %v961_v49  ;;  %v7693_v57 = vld [vmem:[#allocation5 + $0x3b8] sm:$0xff]   ;;  %8967 = vst [vmem:[#allocation24_spill] sm:$0xff] %v7757_v36  ;;  %v906_v49 = vadd.f32 %v7620_v5, %v433_v29  ;;  %v7780_v5 = vld [vmem:[#allocation5 + $0x380] sm:$0xff]  }
 0x4aa   :  { %6275 = vmatpush3.bf16.msra.mxu1 %v7014_v16  ;;  %2201 = vmatprep.mubr.bf16.mxu1 %v1234_v52  ;;  %v7689_v16 = vld [vmem:[#allocation5 + $0x338] sm:$0xff]   ;;  %v7696_v52 = vld [vmem:[#allocation5 + $0x370] sm:$0xff]   ;;  %8974 = vst [vmem:[#allocation31_spill] sm:$0xff] %v7780_v5 }
 0x4ab   :  { %6297 = vmatpush3.bf16.msra.mxu0 %v7015_v51  ;;  %2241 = vmatprep.mubr.bf16.mxu0 %v1236_v62  ;;  %v1235_v51 = vpack.c.bf16 %v963_v54, %v963_v54  ;;  %v1240_v62 = vpack.c.bf16 %v968_v12, %v968_v12  ;;  %v7770_v54 = vld [vmem:[#allocation5 + $0x340] sm:$0xff]  }
 0x4ac   :  { %6276 = vmatprep.subr.bf16.mxu1 %v7016_v58  ;;  %6298 = vmatprep.subr.bf16.mxu0 %v7017_v59  ;;  %v1238_v58 = vpack.c.bf16 %v966_v10, %v966_v10  ;;  %v7698_v59 = vld [vmem:[#allocation5 + $0x3f0] sm:$0xff]   ;;  %8971 = vst [vmem:[#allocation28_spill] sm:$0xff] %v7770_v54  ;;  %v7773_v10 = vld [vmem:[#allocation5 + $0x3c0] sm:$0xff]  }
 0x4ad   :  { %8972 = vst [vmem:[#allocation29_spill] sm:$0xff] %v7773_v10  ;;  %v7776_v12 = vld [vmem:[#allocation5 + $0x300] sm:$0xff]  }
 0x4ae   :  { %6277 = vmatpush3.bf16.msra.mxu1 %v7018_v63  ;;  %v7701_v63 = vld [vmem:[#allocation5 + $0x330] sm:$0xff]   ;;  %8973 = vst [vmem:[#allocation30_spill] sm:$0xff] %v7776_v12 }
 0x4af   :  { %6299 = vmatpush3.bf16.msra.mxu0 %v7019_v0  ;;  %6278 = vmatprep.subr.bf16.mxu1 %v7020_v1  ;;  %v7704_v0 = vld [vmem:[#allocation5 + $0x3b0] sm:$0xff]   ;;  %v7706_v1 = vld [vmem:[#allocation5 + $0x368] sm:$0xff]  }
 0x4b0   :  { %6300 = vmatprep.subr.bf16.mxu0 %v7021_v2  ;;  %v7709_v2 = vld [vmem:[#allocation5 + $0x3e8] sm:$0xff]  }
 0x4b2   :  { %6279 = vmatpush3.bf16.msra.mxu1 %v7022_v3  ;;  %v7713_v3 = vld [vmem:[#allocation5 + $0x328] sm:$0xff]  }
 0x4b3   :  { %6301 = vmatpush3.bf16.msra.mxu0 %v7023_v6  ;;  %6280 = vmatprep.subr.bf16.mxu1 %v7024_v7  ;;  %v7717_v6 = vld [vmem:[#allocation5 + $0x3a8] sm:$0xff]   ;;  %v7719_v7 = vld [vmem:[#allocation5 + $0x360] sm:$0xff]  }
 0x4b4   :  { %6302 = vmatprep.subr.bf16.mxu0 %v7025_v8  ;;  %v7722_v8 = vld [vmem:[#allocation5 + $0x3e0] sm:$0xff]  }
 0x4b6   :  { %6281 = vmatpush3.bf16.msra.mxu1 %v7026_v13  ;;  %v7725_v13 = vld [vmem:[#allocation5 + $0x320] sm:$0xff]  }
 0x4b7   :  { %6303 = vmatpush3.bf16.msra.mxu0 %v7027_v14  ;;  %6282 = vmatprep.subr.bf16.mxu1 %v7028_v42  ;;  %8957 = vst [vmem:[#allocation14_spill] sm:$0xff] %v7725_v13  ;;  %v7729_v14 = vld [vmem:[#allocation5 + $0x3a0] sm:$0xff]   ;;  %v7731_v42 = vld [vmem:[#allocation5 + $0x358] sm:$0xff]  }
 0x4b8   :  { %6304 = vmatprep.subr.bf16.mxu0 %v7029_v17  ;;  %8958 = vst [vmem:[#allocation15_spill] sm:$0xff] %v7729_v14  ;;  %8959 = vst [vmem:[#allocation16_spill] sm:$0xff] %v7731_v42  ;;  %v7734_v17 = vld [vmem:[#allocation5 + $0x3d8] sm:$0xff]  }
 0x4b9   :  { %8960 = vst [vmem:[#allocation17_spill] sm:$0xff] %v7734_v17 }
 0x4ba   :  { %6283 = vmatpush3.bf16.msra.mxu1 %v7030_v18  ;;  %v7737_v18 = vld [vmem:[#allocation5 + $0x318] sm:$0xff]  }
 0x4bb   :  { %6305 = vmatpush3.bf16.msra.mxu0 %v7638_v19  ;;  %6284 = vmatprep.subr.bf16.mxu1 %v7640_v20  ;;  %8961 = vst [vmem:[#allocation18_spill] sm:$0xff] %v7737_v18 }
 0x4bc   :  { %6306 = vmatprep.subr.bf16.mxu0 %v7642_v21 }
 0x4be   :  { %6285 = vmatpush3.bf16.msra.mxu1 %v7034_v22  ;;  %v7741_v22 = vld [vmem:[#allocation5 + $0x398] sm:$0xff]  }
 0x4bf   :  { %6307 = vmatpush3.bf16.msra.mxu0 %v7648_v24  ;;  %6286 = vmatprep.subr.bf16.mxu1 %v7650_v26  ;;  %8962 = vst [vmem:[#allocation19_spill] sm:$0xff] %v7741_v22 }
 0x4c0   :  { %6308 = vmatprep.subr.bf16.mxu0 %v7655_v28 }
 0x4c2   :  { %6287 = vmatpush3.bf16.msra.mxu1 %v7661_v31 }
 0x4c3   :  { %6309 = vmatpush3.bf16.msra.mxu0 %v7666_v33  ;;  %6288 = vmatprep.subr.bf16.mxu1 %v7668_v34 }
 0x4c4   :  { %6310 = vmatprep.subr.bf16.mxu0 %v7672_v38 }
 0x4c6   :  { %6289 = vmatpush3.bf16.msra.mxu1 %v7677_v41 }
 0x4c7   :  { %6311 = vmatpush3.bf16.msra.mxu0 %v7681_v50  ;;  %6318 = vmatprep.subr.bf16.mxu1 %v7683_v48 }
 0x4c8   :  { %6340 = vmatprep.subr.bf16.mxu0 %v7686_v15 }
 0x4c9   :  { %2202 = vmatmul.mubr.bf16.vlgmr.msra.gmra.mxu1 %v1233_v55  ;;  %v965_v55 = vmax.f32 %v906_v49, 0.0  ;;  %v7801_v49 = vld [vmem:[%s8824_s3 + $0x4] ss:$8 sps:$4 sm:$0xff]  }
 0x4ca   :  { %2242 = vmatmul.mubr.bf16.vlgmr.msra.gmra.mxu0 %v1235_v51  ;;  %6319 = vmatpush3.bf16.msra.mxu1 %v7689_v16  ;;  %v967_v51 = vmax.f32 %v7622_v9, 0.0  ;;  %v7795_v9 = vld [vmem:[%s8824_s3 + $0x10] ss:$8 sps:$4 sm:$0xff]   ;;  %8977 = vst [vmem:[#allocation34_spill] sm:$0xff] %v7801_v49 }
 0x4cb   :  { %2281 = vmatprep.mubr.bf16.mxu1 %v1238_v58  ;;  %6341 = vmatpush3.bf16.msra.mxu0 %v7693_v57  ;;  %v1237_v58 = vpack.c.bf16 %v965_v55, %v965_v55  ;;  %8976 = vst [vmem:[#allocation33_spill] sm:$0xff] %v7795_v9  ;;  %v7809_v55 = vld [vmem:[%s8824_s3] ss:$8 sps:$4 sm:$0xff]  }
 0x4cc   :  { %2321 = vmatprep.mubr.bf16.mxu0 %v1240_v62  ;;  %6320 = vmatprep.subr.bf16.mxu1 %v7696_v52  ;;  %v7789_v62 = vld [vmem:[%s8824_s3 + $0x14] ss:$8 sps:$4 sm:$0xff]   ;;  %v1239_v29 = vpack.c.bf16 %v967_v51, %v967_v51  ;;  %8978 = vst [vmem:[#allocation35_spill] sm:$0xff] %v7809_v55 }
 0x4cd   :  { %6342 = vmatprep.subr.bf16.mxu0 %v7698_v59  ;;  %8975 = vst [vmem:[#allocation32_spill] sm:$0xff] %v7789_v62 }
 0x4ce   :  { %6321 = vmatpush3.bf16.msra.mxu1 %v7701_v63 }
 0x4cf   :  { %6343 = vmatpush3.bf16.msra.mxu0 %v7704_v0  ;;  %6322 = vmatprep.subr.bf16.mxu1 %v7706_v1 }
 0x4d0   :  { %6344 = vmatprep.subr.bf16.mxu0 %v7709_v2 }
 0x4d2   :  { %6323 = vmatpush3.bf16.msra.mxu1 %v7713_v3 }
 0x4d3   :  { %6345 = vmatpush3.bf16.msra.mxu0 %v7717_v6  ;;  %6324 = vmatprep.subr.bf16.mxu1 %v7719_v7 }
 0x4d4   :  { %6346 = vmatprep.subr.bf16.mxu0 %v7722_v8 }
 0x4d6   :  { %6325 = vmatpush3.bf16.msra.mxu1 %v7725_v13 }
 0x4d7   :  { %6347 = vmatpush3.bf16.msra.mxu0 %v7729_v14  ;;  %6326 = vmatprep.subr.bf16.mxu1 %v7731_v42 }
 0x4d8   :  { %6348 = vmatprep.subr.bf16.mxu0 %v7734_v17 }
 0x4da   :  { %6327 = vmatpush3.bf16.msra.mxu1 %v7737_v18 }
 0x4db   :  { %6349 = vmatpush3.bf16.msra.mxu0 %v7741_v22  ;;  %6328 = vmatprep.subr.bf16.mxu1 %v7743_v23 }
 0x4dc   :  { %6350 = vmatprep.subr.bf16.mxu0 %v7746_v27 }
 0x4de   :  { %6329 = vmatpush3.bf16.msra.mxu1 %v7749_v45 }
 0x4df   :  { %6351 = vmatpush3.bf16.msra.mxu0 %v7755_v32  ;;  %6330 = vmatprep.subr.bf16.mxu1 %v7757_v36 }
 0x4e0   :  { %6352 = vmatprep.subr.bf16.mxu0 %v7760_v39 }
 0x4e2   :  { %6331 = vmatpush3.bf16.msra.mxu1 %v7763_v40 }
 0x4e3   :  { %6353 = vmatpush3.bf16.msra.mxu0 %v7768_v56  ;;  %6332 = vmatprep.subr.bf16.mxu1 %v7770_v54 }
 0x4e4   :  { %6354 = vmatprep.subr.bf16.mxu0 %v7773_v10 }
 0x4e6   :  { %6333 = vmatpush3.bf16.msra.mxu1 %v7776_v12 }
 0x4e7   :  { %6355 = vmatpush3.bf16.msra.mxu0 %v7780_v5  ;;  %2377 = vmatprep.subr.bf16.mxu1 %v7789_v62 }
 0x4e9   :  { %2282 = vmatmul.mubr.bf16.vlgmr.msra.gmra.mxu1 %v1237_v58 }
 0x4ea   :  { %2322 = vmatmul.mubr.bf16.vlgmr.msra.gmra.mxu0 %v1239_v29  ;;  %2378 = vmatpush1.bf16.msra.mxu1 %v7795_v9 }
 0x4eb   :  { %2379 = vmatprep.subr.bf16.mxu1 %v7801_v49  ;;  %2397 = vmatprep.mubr.bf16.mxu1 %v8844_v30 }
 0x4ec   :  { %2760 = vmatprep.mubr.bf16.mxu0 %v8844_v30 }
 0x4ee   :  { %2380 = vmatpush1.bf16.msra.mxu1 %v7809_v55 }
 0x549   :  { %v6202_v51 = vpop.f32.mrf.mxu1  ;;  %v6224_v58 = vpop.f32.mrf.mxu0 }
 0x54b   :  { %v6203_v29 = vpop.f32.mrf.mxu1  ;;  %v6225_v11 = vpop.f32.mrf.mxu0 }
 0x54c   :  { %v6204_v35 = vadd.f32 %v6203_v29, %v6202_v51  ;;  %v6226_v37 = vadd.f32 %v6225_v11, %v6224_v58 }
 0x54d   :  { %v6205_v9 = vpop.f32.mrf.mxu1  ;;  %v6227_v62 = vpop.f32.mrf.mxu0 }
 0x54e   :  { %v2084_v49 = vadd.f32 %v6226_v37, %v6204_v35 }
 0x54f   :  { %v6206_v5 = vpop.f32.mrf.mxu1  ;;  %v6228_v12 = vpop.f32.mrf.mxu0 }
 0x569   :  { %v6246_v10 = vpop.f32.mrf.mxu1  ;;  %v6268_v30 = vpop.f32.mrf.mxu0 }
 0x56b   :  { %v6247_v54 = vpop.f32.mrf.mxu1  ;;  %v6269_v56 = vpop.f32.mrf.mxu0 }
 0x56c   :  { %v6248_v62 = vadd.f32 %v6247_v54, %v6246_v10  ;;  %v6270_v37 = vadd.f32 %v6269_v56, %v6268_v30  ;;  %v6016_v54 = vld [vmem:[%s8829_s8 + $0x5] ss:$0 sm:$0xff] }
 0x56d   :  { %v6249_v40 = vpop.f32.mrf.mxu1  ;;  %v6271_v39 = vpop.f32.mrf.mxu0 }
 0x56e   :  { %v2124_v35 = vadd.f32 %v6248_v62, %v2084_v49 }
 0x56f   :  { %v6250_v36 = vpop.f32.mrf.mxu1  ;;  %v6272_v32 = vpop.f32.mrf.mxu0 }
 0x570   :  { %v2164_v5 = vadd.f32 %v6270_v37, %v2124_v35  ;;  %v6018_v35 = vld [vmem:[%s8829_s8 + $0x9] ss:$0 sm:$0xff] }
 0x589   :  { %v6290_v55 = vpop.f32.mrf.mxu1 }
 0x58a   :  { %v6312_v45 = vpop.f32.mrf.mxu0 }
 0x58b   :  { %v6291_v27 = vpop.f32.mrf.mxu1 }
 0x58c   :  { %v6313_v23 = vpop.f32.mrf.mxu0  ;;  %v6292_v12 = vadd.f32 %v6291_v27, %v6290_v55  ;;  %v6020_v55 = vld [vmem:[%s8829_s8 + $0xa] ss:$0 sm:$0xff] }
 0x58d   :  { %v6293_v22 = vpop.f32.mrf.mxu1  ;;  %v6314_v18 = vadd.f32 %v6313_v23, %v6312_v45  ;;  %2411 = vrot.lane.b32.xlu0 %v6020_v55, %s7392_s5  ;;  %v2471_v55 = vld [vmem:[#allocation2 + $0x1c8] sm:$0xff] }
 0x58e   :  { %v6315_v51 = vpop.f32.mrf.mxu0  ;;  %v2204_v58 = vadd.f32 %v6292_v12, %v2164_v5 }
 0x58f   :  { %v6294_v11 = vpop.f32.mrf.mxu1 }
 0x590   :  { %v6316_v9 = vpop.f32.mrf.mxu0  ;;  %v2244_v36 = vadd.f32 %v6314_v18, %v2204_v58  ;;  %v8979_v58 = vmov 0  }
 0x591   :  { %v6017_v9 = vld [vmem:[%s8829_s8 + $0x8] ss:$0 sm:$0xff] }
 0x5a9   :  { %v6334_v29 = vpop.f32.mrf.mxu1 }
 0x5aa   :  { %v6356_v40 = vpop.f32.mrf.mxu0 }
 0x5ab   :  { %v6335_v39 = vpop.f32.mrf.mxu1 }
 0x5ac   :  { %v6336_v32 = vadd.f32 %v6335_v39, %v6334_v29  ;;  %v6357_v17 = vpop.f32.mrf.mxu0 }
 0x5ad   :  { %v6337_v42 = vpop.f32.mrf.mxu1  ;;  %v6358_v13 = vadd.f32 %v6357_v17, %v6356_v40 }
 0x5ae   :  { %v2284_v14 = vadd.f32 %v6336_v32, %v2244_v36  ;;  %v6359_v22 = vpop.f32.mrf.mxu0 }
 0x5af   :  { %v6338_v51 = vpop.f32.mrf.mxu1 }
 0x5b0   :  { %v2324_v30 = vadd.f32 %v6358_v13, %v2284_v14  ;;  %v6360_v27 = vpop.f32.mrf.mxu0 }
 0x5b2   :  { %v2334_v56 = vadd.f32 %v6016_v54, %v2324_v30 }
 0x5b4   :  { %v2335_v10 = vadd.f32 %v2334_v56, %v7534_v25 }
 0x5b6   :  { %v2338_v23 = vsel %vm319_vm5, %v2335_v10, 0.0 }
 0x5b7   :  { %2339 = vadd.xlane.f32.xlu1 %v2338_v23 }
 0x5ff   :  { %v2412_v29 = vpop.permute.xlu0 %2411 }
 0x640   :  { %v2340_v18 = vpop.xlane.xlu1 %2339 }
 0x641   :  { %v2341_v45 = vmul.f32 0.03125, %v2340_v18 }
 0x643   :  { %v2342_v49 = vsub.f32 %v2335_v10, %v2341_v45  ;;  %v2462_v45 = vld [vmem:[#allocation2 + $0x180] sm:$0xff] }
 0x645   :  { %v2343_v42 = vmul.f32 %v2342_v49, %v2342_v49 }
 0x647   :  { %v2344_v17 = vsel %vm319_vm5, %v2343_v42, 0.0  ;;  %v2463_v42 = vld [vmem:[#allocation2 + $0x188] sm:$0xff] }
 0x648   :  { %2345 = vadd.xlane.f32.xlu1 %v2344_v17 }
 0x6d1   :  { %v2346_v13 = vpop.xlane.xlu1 %2345 }
 0x6d2   :  { %v2347_v14 = vmul.f32 0.03125, %v2346_v13 }
 0x6d4   :  { %v2348_v25 = vadd.f32 1e-05, %v2347_v14  ;;  %v6043_v14 = vcombine.low %v2463_v42, %v2471_v55 }
 0x6d6   :  { %7080 = vrsqrt.f32 %v2348_v25  ;;  %v6044_v25 = vcombine.high %v2463_v42, %v2471_v55  ;;  %v6022_v42 = vld [vmem:[%s8829_s8 + $0xd] ss:$0 sm:$0xff]  ;;  %v2448_v55 = vld [vmem:[#allocation2 + $0x110] sm:$0xff] }
 0x6d8   :  { %2781 = vmatprep.subr.bf16.mxu1 %v6044_v25  ;;  %v2457_v25 = vld [vmem:[#allocation2 + $0x158] sm:$0xff] }
 0x6e3   :  { %v7081_v11 = vpop.eup %7080 }
 0x6e4   :  { %v2350_v62 = vmul.f32 %v7081_v11, %v2342_v49  ;;  %v2470_v49 = vld [vmem:[#allocation2 + $0x1c0] sm:$0xff] }
 0x6e5   :  { %v6042_v17 = vcombine.high %v2462_v45, %v2470_v49  ;;  %v6041_v13 = vcombine.low %v2462_v45, %v2470_v49  ;;  %v2446_v11 = vld [vmem:[#allocation2 + $0x100] sm:$0xff]  ;;  %v6021_v45 = vld [vmem:[%s8829_s8 + $0xc] ss:$0 sm:$0xff] }
 0x6e6   :  { %v2355_v37 = vmul.f32 %v6017_v9, %v2350_v62  ;;  %v2454_v9 = vld [vmem:[#allocation2 + $0x140] sm:$0xff]  ;;  %v2447_v62 = vld [vmem:[#allocation2 + $0x108] sm:$0xff] }
 0x6e7   :  { %2740 = vmatprep.subr.bf16.mxu0 %v6042_v17 }
 0x6e8   :  { %v2360_v12 = vadd.f32 %v6018_v35, %v2355_v37  ;;  %2741 = vmatpush1.bf16.msra.mxu0 %v6041_v13  ;;  %v6026_v35 = vcombine.high %v2446_v11, %v2454_v9  ;;  %v2455_v37 = vld [vmem:[#allocation2 + $0x148] sm:$0xff]  ;;  %v2456_v13 = vld [vmem:[#allocation2 + $0x150] sm:$0xff] }
 0x6ea   :  { %v2361_v5 = vpack.c.bf16 %v2360_v12, %v2360_v12  ;;  %2742 = vmatprep.subr.bf16.mxu0 %v6026_v35 }
 0x6ec   :  { %6019 = vmatmul.mubr.msk.bf16.vlgmr.msra.gmra.mxu1 %vm266_vm4, %v2361_v5  ;;  %v6027_v5 = vcombine.low %v2447_v62, %v2455_v37 }
 0x6ed   :  { %2801 = vmatprep.mubr.bf16.mxu1 %v8979_v58  ;;  %2782 = vmatpush1.bf16.msra.mxu1 %v6043_v14  ;;  %v2449_v14 = vld [vmem:[#allocation2 + $0x118] sm:$0xff] }
 0x6ee   :  { %v6032_v35 = vcombine.high %v2449_v14, %v2457_v25 }
 0x7ac   :  { %v2399_v40 = vpop.f32.mrf.mxu1 }
 0x7ad   :  { %v2414_v39 = vadd.f32 %v2412_v29, %v2399_v40  ;;  %v6028_v29 = vcombine.high %v2447_v62, %v2455_v37  ;;  %v2464_v40 = vld [vmem:[#allocation2 + $0x190] sm:$0xff]  ;;  %v6030_v62 = vcombine.high %v2448_v55, %v2456_v13  ;;  %v2466_v37 = vld [vmem:[#allocation2 + $0x1a0] sm:$0xff] }
 0x7ae   :  { %v2401_v36 = vpop.f32.mrf.mxu1 }
 0x7af   :  { %2416 = vrot.lane.b32.xlu1 %v2414_v39, %s7393_s10  ;;  %2783 = vmatprep.subr.bf16.mxu1 %v6028_v29  ;;  %v2472_v39 = vld [vmem:[#allocation2 + $0x1d0] sm:$0xff]  ;;  %v2465_v36 = vld [vmem:[#allocation2 + $0x198] sm:$0xff]  ;;  %v6029_v29 = vcombine.low %v2448_v55, %v2456_v13 }
 0x7b0   :  { %v2402_v32 = vpop.f32.mrf.mxu1  ;;  %2784 = vmatpush1.bf16.msra.mxu1 %v6027_v5  ;;  %v2475_v5 = vld [vmem:[#allocation2 + $0x1e8] sm:$0xff] }
 0x7b1   :  { %v6045_v32 = vcombine.low %v2464_v40, %v2472_v39 }
 0x7b2   :  { %v2403_v22 = vpop.f32.mrf.mxu1 }
 0x7b3   :  { %v6046_v22 = vcombine.high %v2464_v40, %v2472_v39  ;;  %v6031_v40 = vcombine.low %v2449_v14, %v2457_v25  ;;  %v2452_v25 = vld [vmem:[#allocation2 + $0x130] sm:$0xff] }
 0x821   :  { %v2417_v51 = vpop.permute.xlu1 %2416 }
 0x822   :  { %v2419_v54 = vadd.f32 %v2417_v51, %v2360_v12  ;;  %v6025_v12 = vcombine.low %v2446_v11, %v2454_v9  ;;  %v2473_v51 = vld [vmem:[#allocation2 + $0x1d8] sm:$0xff] }
 0x824   :  { %v2422_v30 = vsel %vm319_vm5, %v2419_v54, 0.0  ;;  %2743 = vmatpush1.bf16.msra.mxu0 %v6025_v12  ;;  %v2474_v12 = vld [vmem:[#allocation2 + $0x1e0] sm:$0xff] }
 0x825   :  { %2423 = vadd.xlane.f32.xlu1 %v2422_v30  ;;  %v6048_v30 = vcombine.high %v2465_v36, %v2473_v51  ;;  %2822 = vmatprep.subr.bf16.mxu0 %v6046_v22  ;;  %v6050_v39 = vcombine.high %v2466_v37, %v2474_v12  ;;  %v2450_v22 = vld [vmem:[#allocation2 + $0x120] sm:$0xff] }
 0x827   :  { %2863 = vmatprep.subr.bf16.mxu1 %v6048_v30  ;;  %v2451_v30 = vld [vmem:[#allocation2 + $0x128] sm:$0xff] }
 0x8ae   :  { %v2424_v27 = vpop.xlane.xlu1 %2423 }
 0x8af   :  { %v2425_v56 = vmul.f32 0.03125, %v2424_v27 }
 0x8b1   :  { %v2426_v10 = vsub.f32 %v2419_v54, %v2425_v56  ;;  %v6047_v54 = vcombine.low %v2465_v36, %v2473_v51  ;;  %v2458_v51 = vld [vmem:[#allocation2 + $0x160] sm:$0xff] }
 0x8b3   :  { %v2427_v23 = vmul.f32 %v2426_v10, %v2426_v10 }
 0x8b5   :  { %v2428_v18 = vsel %vm319_vm5, %v2427_v23, 0.0 }
 0x8b6   :  { %2429 = vadd.xlane.f32.xlu0 %v2428_v18 }
 0x93f   :  { %v2430_v27 = vpop.xlane.xlu0 %2429 }
 0x940   :  { %v2431_v56 = vmul.f32 0.03125, %v2430_v27  ;;  %v2459_v27 = vld [vmem:[#allocation2 + $0x168] sm:$0xff] }
 0x941   :  { %v6035_v55 = vcombine.low %v2451_v30, %v2459_v27 }
 0x942   :  { %v2432_v23 = vadd.f32 1e-05, %v2431_v56  ;;  %v6049_v56 = vcombine.low %v2466_v37, %v2474_v12  ;;  %v2461_v37 = vld [vmem:[#allocation2 + $0x178] sm:$0xff] }
 0x944   :  { %7082 = vrsqrt.f32 %v2432_v23 }
 0x951   :  { %v7083_v18 = vpop.eup %7082 }
 0x952   :  { %v2434_v49 = vmul.f32 %v7083_v18, %v2426_v10  ;;  %v2467_v10 = vld [vmem:[#allocation2 + $0x1a8] sm:$0xff]  ;;  %v2468_v18 = vld [vmem:[#allocation2 + $0x1b0] sm:$0xff] }
 0x953   :  { %v6052_v36 = vcombine.high %v2467_v10, %v2475_v5  ;;  %v6051_v23 = vcombine.low %v2467_v10, %v2475_v5 }
 0x954   :  { %v2439_v17 = vmul.f32 %v6021_v45, %v2434_v49  ;;  %v2476_v45 = vld [vmem:[#allocation2 + $0x1f0] sm:$0xff]  ;;  %v2469_v49 = vld [vmem:[#allocation2 + $0x1b8] sm:$0xff] }
 0x955   :  { %v6054_v13 = vcombine.high %v2468_v18, %v2476_v45  ;;  %v6053_v12 = vcombine.low %v2468_v18, %v2476_v45  ;;  %v7897_v18 = vld [vmem:[#allocation5 + $0x28] sm:$0xff]  }
 0x956   :  { %v7839_v11 = vadd.f32 %v6022_v42, %v2439_v17  ;;  %v2477_v42 = vld [vmem:[#allocation2 + $0x1f8] sm:$0xff]  ;;  %v6033_v17 = vcombine.low %v2450_v22, %v2458_v51  ;;  %8986 = vst [vmem:[#allocation42_spill] sm:$0xff] %v7897_v18  ;;  %v7900_v45 = vld [vmem:[#allocation5 + $0xa8] sm:$0xff]  }
 0x957   :  { %v6056_v14 = vcombine.high %v2469_v49, %v2477_v42  ;;  %v6055_v10 = vcombine.low %v2469_v49, %v2477_v42  ;;  %8987 = vst [vmem:[#allocation43_spill] sm:$0xff] %v7900_v45  ;;  %v7903_v49 = vld [vmem:[#allocation5 + $0x60] sm:$0xff]  }
 0x958   :  { %v7843_v9 = vpack.c.bf16 %v7839_v11, %v7839_v11  ;;  %8988 = vst [vmem:[#allocation44_spill] sm:$0xff] %v7903_v49  ;;  %v7906_v42 = vld [vmem:[#allocation5 + $0xe0] sm:$0xff]  }
 0x959   :  { %8989 = vst [vmem:[#allocation45_spill] sm:$0xff] %v7906_v42 }
 0x95a   :  { %6057 = vmatmul.mubr.msk.bf16.vlgmr.msra.gmra.mxu0 %vm266_vm4, %v7843_v9  ;;  %6058 = vmatmul.mubr.msk.bf16.vlgmr.msra.gmra.mxu1 %vm266_vm4, %v7843_v9 }
 0x95b   :  { %2823 = vmatpush1.bf16.msra.mxu0 %v6045_v32  ;;  %2864 = vmatpush1.bf16.msra.mxu1 %v6047_v54  ;;  %v6034_v32 = vcombine.high %v2450_v22, %v2458_v51  ;;  %v6036_v54 = vcombine.high %v2451_v30, %v2459_v27  ;;  %v7866_v22 = vld [vmem:[#allocation5 + $0xf8] sm:$0xff]   ;;  %v7879_v27 = vld [vmem:[#allocation5 + $0x70] sm:$0xff]  }
 0x95c   :  { %2824 = vmatprep.subr.bf16.mxu0 %v6030_v62  ;;  %2865 = vmatprep.subr.bf16.mxu1 %v6032_v35  ;;  %v2460_v62 = vld [vmem:[#allocation2 + $0x170] sm:$0xff]  ;;  %v2453_v35 = vld [vmem:[#allocation2 + $0x138] sm:$0xff]  ;;  %8980 = vst [vmem:[#allocation36_spill] sm:$0xff] %v7879_v27 }
 0x95d   :  { %2842 = vmatprep.mubr.bf16.mxu0 %v8979_v58  ;;  %2883 = vmatprep.mubr.bf16.mxu1 %v8979_v58  ;;  %v6038_v5 = vcombine.high %v2452_v25, %v2460_v62  ;;  %v7873_v51 = vld [vmem:[#allocation5 + $0x38] sm:$0xff]  }
 0x95e   :  { %v7876_v30 = vld [vmem:[#allocation5 + $0xb8] sm:$0xff]  }
 0x95f   :  { %2825 = vmatpush1.bf16.msra.mxu0 %v6029_v29  ;;  %2866 = vmatpush1.bf16.msra.mxu1 %v6031_v40  ;;  %v6040_v29 = vcombine.high %v2453_v35, %v2461_v37  ;;  %v6037_v40 = vcombine.low %v2452_v25, %v2460_v62  ;;  %v7921_v25 = vld [vmem:[#allocation5 + $0x18] sm:$0xff]  }
 0x960   :  { %2904 = vmatprep.subr.bf16.mxu0 %v6050_v39  ;;  %2945 = vmatprep.subr.bf16.mxu1 %v6052_v36  ;;  %v6039_v39 = vcombine.low %v2453_v35, %v2461_v37  ;;  %v7863_v36 = vld [vmem:[#allocation5 + $0x78] sm:$0xff]   ;;  %8994 = vst [vmem:[#allocation50_spill] sm:$0xff] %v7921_v25  ;;  %v7927_v35 = vld [vmem:[#allocation5 + $0x50] sm:$0xff]  }
 0x961   :  { %v7924_v62 = vld [vmem:[#allocation5 + $0x98] sm:$0xff]   ;;  %8996 = vst [vmem:[#allocation52_spill] sm:$0xff] %v7927_v35  ;;  %v7930_v37 = vld [vmem:[#allocation5 + $0xd0] sm:$0xff]  }
 0x962   :  { %6059 = vmatmul.mubr.msk.bf16.vlgmr.msra.gmra.mxu0 %vm266_vm4, %v7843_v9  ;;  %6060 = vmatmul.mubr.msk.bf16.vlgmr.msra.gmra.mxu1 %vm266_vm4, %v7843_v9  ;;  %8995 = vst [vmem:[#allocation51_spill] sm:$0xff] %v7924_v62  ;;  %8997 = vst [vmem:[#allocation53_spill] sm:$0xff] %v7930_v37 }
 0x963   :  { %2905 = vmatpush1.bf16.msra.mxu0 %v6049_v56  ;;  %2946 = vmatpush1.bf16.msra.mxu1 %v6051_v23  ;;  %v7882_v56 = vld [vmem:[#allocation5 + $0xf0] sm:$0xff]  }
 0x964   :  { %2906 = vmatprep.subr.bf16.mxu0 %v6034_v32  ;;  %2947 = vmatprep.subr.bf16.mxu1 %v6036_v54  ;;  %8981 = vst [vmem:[#allocation37_spill] sm:$0xff] %v7882_v56  ;;  %v7885_v23 = vld [vmem:[#allocation5 + $0x30] sm:$0xff]   ;;  %v7891_v32 = vld [vmem:[#allocation5 + $0x68] sm:$0xff]  }
 0x965   :  { %2924 = vmatprep.mubr.bf16.mxu0 %v8979_v58  ;;  %2965 = vmatprep.mubr.bf16.mxu1 %v8979_v58  ;;  %8982 = vst [vmem:[#allocation38_spill] sm:$0xff] %v7885_v23  ;;  %8984 = vst [vmem:[#allocation40_spill] sm:$0xff] %v7891_v32  ;;  %v7894_v54 = vld [vmem:[#allocation5 + $0xe8] sm:$0xff]  }
 0x966   :  { %8985 = vst [vmem:[#allocation41_spill] sm:$0xff] %v7894_v54 }
 0x967   :  { %2907 = vmatpush1.bf16.msra.mxu0 %v6033_v17  ;;  %2948 = vmatpush1.bf16.msra.mxu1 %v6035_v55  ;;  %v7909_v17 = vld [vmem:[#allocation5 + $0x20] sm:$0xff]  }
 0x968   :  { %2986 = vmatprep.subr.bf16.mxu0 %v6054_v13  ;;  %3027 = vmatprep.subr.bf16.mxu1 %v6056_v14  ;;  %8990 = vst [vmem:[#allocation46_spill] sm:$0xff] %v7909_v17  ;;  %v7912_v55 = vld [vmem:[#allocation5 + $0xa0] sm:$0xff]   ;;  %v7915_v13 = vld [vmem:[#allocation5 + $0x58] sm:$0xff]  }
 0x969   :  { %8991 = vst [vmem:[#allocation47_spill] sm:$0xff] %v7912_v55  ;;  %8992 = vst [vmem:[#allocation48_spill] sm:$0xff] %v7915_v13  ;;  %v7918_v14 = vld [vmem:[#allocation5 + $0xd8] sm:$0xff]  }
 0x96a   :  { %6061 = vmatmul.mubr.msk.bf16.vlgmr.msra.gmra.mxu0 %vm266_vm4, %v7843_v9  ;;  %6062 = vmatmul.mubr.msk.bf16.vlgmr.msra.gmra.mxu1 %vm266_vm4, %v7843_v9  ;;  %8993 = vst [vmem:[#allocation49_spill] sm:$0xff] %v7918_v14 }
 0x96b   :  { %2987 = vmatpush1.bf16.msra.mxu0 %v6053_v12  ;;  %3028 = vmatpush1.bf16.msra.mxu1 %v6055_v10  ;;  %v7933_v12 = vld [vmem:[#allocation5 + $0x10] sm:$0xff]  }
 0x96c   :  { %2988 = vmatprep.subr.bf16.mxu0 %v6038_v5  ;;  %3029 = vmatprep.subr.bf16.mxu1 %v6040_v29  ;;  %8998 = vst [vmem:[#allocation54_spill] sm:$0xff] %v7933_v12  ;;  %v7936_v10 = vld [vmem:[#allocation5 + $0x90] sm:$0xff]   ;;  %v7939_v5 = vld [vmem:[#allocation5 + $0x48] sm:$0xff]  }
 0x96d   :  { %3006 = vmatprep.mubr.bf16.mxu0 %v8979_v58  ;;  %3047 = vmatprep.mubr.bf16.mxu1 %v8979_v58  ;;  %8999 = vst [vmem:[#allocation55_spill] sm:$0xff] %v7936_v10  ;;  %9000 = vst [vmem:[#allocation56_spill] sm:$0xff] %v7939_v5  ;;  %v7942_v29 = vld [vmem:[#allocation5 + $0xc8] sm:$0xff]  }
 0x96e   :  { %9001 = vst [vmem:[#allocation57_spill] sm:$0xff] %v7942_v29 }
 0x96f   :  { %2989 = vmatpush1.bf16.msra.mxu0 %v6037_v40  ;;  %3030 = vmatpush1.bf16.msra.mxu1 %v6039_v39  ;;  %v7945_v40 = vld [vmem:[#allocation5 + $0x8] sm:$0xff]  }
 0x970   :  { %6362 = vmatprep.subr.bf16.mxu0 %v7863_v36  ;;  %6384 = vmatprep.subr.bf16.mxu1 %v7866_v22  ;;  %9002 = vst [vmem:[#allocation58_spill] sm:$0xff] %v7945_v40  ;;  %v7948_v39 = vld [vmem:[#allocation5 + $0x88] sm:$0xff]  }
 0x971   :  { %9003 = vst [vmem:[#allocation59_spill] sm:$0xff] %v7948_v39 }
 0x972   :  { %6063 = vmatmul.mubr.msk.bf16.vlgmr.msra.gmra.mxu0 %vm266_vm4, %v7843_v9  ;;  %6064 = vmatmul.mubr.msk.bf16.vlgmr.msra.gmra.mxu1 %vm266_vm4, %v7843_v9  ;;  %v7888_v9 = vld [vmem:[#allocation5 + $0xb0] sm:$0xff]  }
 0x973   :  { %6363 = vmatpush3.bf16.msra.mxu0 %v7873_v51  ;;  %6385 = vmatpush3.bf16.msra.mxu1 %v7876_v30  ;;  %8983 = vst [vmem:[#allocation39_spill] sm:$0xff] %v7888_v9 }
 0x974   :  { %6364 = vmatprep.subr.bf16.mxu0 %v7879_v27  ;;  %6386 = vmatprep.subr.bf16.mxu1 %v7882_v56 }
 0x977   :  { %6365 = vmatpush3.bf16.msra.mxu0 %v7885_v23  ;;  %6387 = vmatpush3.bf16.msra.mxu1 %v7888_v9 }
 0x978   :  { %6366 = vmatprep.subr.bf16.mxu0 %v7891_v32  ;;  %6388 = vmatprep.subr.bf16.mxu1 %v7894_v54 }
 0x97b   :  { %6367 = vmatpush3.bf16.msra.mxu0 %v7897_v18  ;;  %6389 = vmatpush3.bf16.msra.mxu1 %v7900_v45 }
 0x97c   :  { %6368 = vmatprep.subr.bf16.mxu0 %v7903_v49  ;;  %6390 = vmatprep.subr.bf16.mxu1 %v7906_v42 }
 0x97f   :  { %6369 = vmatpush3.bf16.msra.mxu0 %v7909_v17  ;;  %6391 = vmatpush3.bf16.msra.mxu1 %v7912_v55 }
 0x980   :  { %6370 = vmatprep.subr.bf16.mxu0 %v7915_v13  ;;  %6392 = vmatprep.subr.bf16.mxu1 %v7918_v14 }
 0x983   :  { %6371 = vmatpush3.bf16.msra.mxu0 %v7921_v25  ;;  %6393 = vmatpush3.bf16.msra.mxu1 %v7924_v62 }
 0x984   :  { %6372 = vmatprep.subr.bf16.mxu0 %v7927_v35  ;;  %6394 = vmatprep.subr.bf16.mxu1 %v7930_v37 }
 0x987   :  { %6373 = vmatpush3.bf16.msra.mxu0 %v7933_v12  ;;  %6395 = vmatpush3.bf16.msra.mxu1 %v7936_v10  ;;  %v7951_v12 = vld [vmem:[#allocation5 + $0x40] sm:$0xff]  }
 0x988   :  { %6374 = vmatprep.subr.bf16.mxu0 %v7939_v5  ;;  %6396 = vmatprep.subr.bf16.mxu1 %v7942_v29  ;;  %9004 = vst [vmem:[#allocation60_spill] sm:$0xff] %v7951_v12  ;;  %v7954_v10 = vld [vmem:[#allocation5 + $0xc0] sm:$0xff]  }
 0x989   :  { %9005 = vst [vmem:[#allocation61_spill] sm:$0xff] %v7954_v10  ;;  %v7957_v5 = vld [vmem:[#allocation5] sm:$0xff]  }
 0x98a   :  { %9006 = vst [vmem:[#allocation62_spill] sm:$0xff] %v7957_v5  ;;  %v7960_v29 = vld [vmem:[#allocation5 + $0x80] sm:$0xff]  }
 0x98b   :  { %6375 = vmatpush3.bf16.msra.mxu0 %v7945_v40  ;;  %6397 = vmatpush3.bf16.msra.mxu1 %v7948_v39  ;;  %9007 = vst [vmem:[#allocation63_spill] sm:$0xff] %v7960_v29  ;;  %v7963_v40 = vld [vmem:[#allocation5 + $0x178] sm:$0xff]  }
 0x98c   :  { %6376 = vmatprep.subr.bf16.mxu0 %v7951_v12  ;;  %6398 = vmatprep.subr.bf16.mxu1 %v7954_v10  ;;  %9008 = vst [vmem:[#allocation64_spill] sm:$0xff] %v7963_v40  ;;  %v7966_v39 = vld [vmem:[#allocation5 + $0x1f8] sm:$0xff]   ;;  %v6065_v10 = vld [vmem:[%s8829_s8 + $0xb] ss:$0 sm:$0xff] }
 0x98d   :  { %9009 = vst [vmem:[#allocation65_spill] sm:$0xff] %v7966_v39  ;;  %3414 = vrot.lane.b32.xlu0 %v6065_v10, %s7392_s5 }
 0x98f   :  { %6377 = vmatpush3.bf16.msra.mxu0 %v7957_v5  ;;  %6399 = vmatpush3.bf16.msra.mxu1 %v7960_v29  ;;  %v7976_v5 = vld [vmem:[%s8827_s6 + $0x1] ss:$4 sm:$0xff] }
 0x990   :  { %6406 = vmatprep.subr.bf16.mxu0 %v7963_v40  ;;  %6428 = vmatprep.subr.bf16.mxu1 %v7966_v39  ;;  %v2488_v29 = vrot.slane %v7976_v5, %v7565_v43  ;;  %v2496_v40 = vrot.slane %v7976_v5, %v7568_v44  ;;  %v2492_v39 = vrot.slane %v7976_v5, %v7576_v46 }
 0x991   :  { %v2500_v12 = vrot.slane %v7976_v5, %v7579_v47  ;;  %v2508_v27 = vrot.slane %v7976_v5, %v7590_v60 }
 0xa1a   :  { %v2762_v37 = vpop.f32.mrf.mxu0  ;;  %v2803_v35 = vpop.f32.mrf.mxu1 }
 0xa1b   :  { %v2763_v10 = vadd.f32 %v2762_v37, %v2488_v29  ;;  %v2804_v62 = vadd.f32 %v2803_v35, %v2496_v40  ;;  %v2516_v35 = vrot.slane %v7976_v5, %v7593_v61 }
 0xa1c   :  { %v2764_v25 = vpop.f32.mrf.mxu0  ;;  %v2805_v14 = vpop.f32.mrf.mxu1 }
 0xa1d   :  { %v2765_v13 = vadd.f32 %v2764_v25, %v2492_v39  ;;  %v2806_v55 = vadd.f32 %v2805_v14, %v2500_v12  ;;  %v3056_v17 = vmax.f32 %v2763_v10, 0.0  ;;  %v3058_v42 = vmax.f32 %v2804_v62, 0.0  ;;  %v8006_v39 = vld [vmem:[#allocation5 + $0x130] sm:$0xff]  }
 0xa1e   :  { %v2766_v49 = vpop.f32.mrf.mxu0  ;;  %v2807_v45 = vpop.f32.mrf.mxu1  ;;  %9013 = vst [vmem:[#allocation69_spill] sm:$0xff] %v8006_v39  ;;  %v8009_v10 = vld [vmem:[#allocation5 + $0x1b0] sm:$0xff]  }
 0xa1f   :  { %v3057_v18 = vmax.f32 %v2765_v13, 0.0  ;;  %v3059_v54 = vmax.f32 %v2806_v55, 0.0  ;;  %v3072_v37 = vpack.c.bf16 %v3056_v17, %v3056_v17  ;;  %v3074_v29 = vpack.c.bf16 %v3058_v42, %v3058_v42  ;;  %v8000_v55 = vld [vmem:[#allocation5 + $0x170] sm:$0xff]   ;;  %9014 = vst [vmem:[#allocation70_spill] sm:$0xff] %v8009_v10 }
 0xa20   :  { %v2767_v32 = vpop.f32.mrf.mxu0  ;;  %v2808_v9 = vpop.f32.mrf.mxu1  ;;  %9011 = vst [vmem:[#allocation67_spill] sm:$0xff] %v8000_v55 }
 0xa21   :  { %v3073_v23 = vpack.c.bf16 %v3057_v18, %v3057_v18  ;;  %v3075_v56 = vpack.c.bf16 %v3059_v54, %v3059_v54  ;;  %v7994_v54 = vld [vmem:[#allocation5 + $0x138] sm:$0xff]  }
 0xa22   :  { %v7990_v25 = vpop.f32.mrf.mxu0  ;;  %v7992_v14 = vpop.f32.mrf.mxu1  ;;  %v7997_v18 = vld [vmem:[#allocation5 + $0x1b8] sm:$0xff]  }
 0xa23   :  { %3120 = vmatprep.mubr.bf16.mxu0 %v3073_v23  ;;  %3160 = vmatprep.mubr.bf16.mxu1 %v3075_v56  ;;  %9010 = vst [vmem:[#allocation66_spill] sm:$0xff] %v7997_v18  ;;  %v8003_v56 = vld [vmem:[#allocation5 + $0x1f0] sm:$0xff]  }
 0xa24   :  { %v2846_v45 = vpop.f32.mrf.mxu0  ;;  %v2887_v49 = vpop.f32.mrf.mxu1  ;;  %3121 = vmatmul.mubr.bf16.vlgmr.msra.gmra.mxu0 %v3072_v37  ;;  %3161 = vmatmul.mubr.bf16.vlgmr.msra.gmra.mxu1 %v3074_v29  ;;  %9012 = vst [vmem:[#allocation68_spill] sm:$0xff] %v8003_v56  ;;  %v8016_v29 = vld [vmem:[#allocation5 + $0x168] sm:$0xff]  }
 0xa25   :  { %v2847_v9 = vadd.f32 %v2846_v45, %v2508_v27  ;;  %v2888_v32 = vadd.f32 %v2887_v49, %v2516_v35  ;;  %6407 = vmatpush3.bf16.msra.mxu0 %v7994_v54  ;;  %6429 = vmatpush3.bf16.msra.mxu1 %v7997_v18  ;;  %9015 = vst [vmem:[#allocation71_spill] sm:$0xff] %v8016_v29  ;;  %v8019_v45 = vld [vmem:[#allocation5 + $0x1e8] sm:$0xff]   ;;  %v8081_v18 = vld [vmem:[#allocation5 + $0x110] sm:$0xff]  }
 0xa26   :  { %v2848_v42 = vpop.f32.mrf.mxu0  ;;  %v2889_v17 = vpop.f32.mrf.mxu1  ;;  %6408 = vmatprep.subr.bf16.mxu0 %v8000_v55  ;;  %6430 = vmatprep.subr.bf16.mxu1 %v8003_v56  ;;  %9016 = vst [vmem:[#allocation72_spill] sm:$0xff] %v8019_v45  ;;  %9029 = vst [vmem:[#allocation85_spill] sm:$0xff] %v8081_v18 }
 0xa27   :  { %v3061_v27 = vmax.f32 %v2847_v9, 0.0  ;;  %v3063_v23 = vmax.f32 %v2888_v32, 0.0  ;;  %v8022_v32 = vld [vmem:[#allocation5 + $0x128] sm:$0xff]  }
 0xa28   :  { %v2849_v13 = vpop.f32.mrf.mxu0  ;;  %v2890_v62 = vpop.f32.mrf.mxu1  ;;  %9017 = vst [vmem:[#allocation73_spill] sm:$0xff] %v8022_v32  ;;  %v8025_v42 = vld [vmem:[#allocation5 + $0x1a8] sm:$0xff]  }
 0xa29   :  { %v3077_v12 = vpack.c.bf16 %v3061_v27, %v3061_v27  ;;  %v3079_v40 = vpack.c.bf16 %v3063_v23, %v3063_v23  ;;  %6409 = vmatpush3.bf16.msra.mxu0 %v8006_v39  ;;  %6431 = vmatpush3.bf16.msra.mxu1 %v8009_v10  ;;  %9018 = vst [vmem:[#allocation74_spill] sm:$0xff] %v8025_v42  ;;  %v8031_v17 = vld [vmem:[%s8827_s6 + $0x21] ss:$4 sm:$0xff] }
 0xa2a   :  { %v8012_v35 = vpop.f32.mrf.mxu0  ;;  %v8014_v37 = vpop.f32.mrf.mxu1  ;;  %6410 = vmatprep.subr.bf16.mxu0 %v8016_v29  ;;  %6432 = vmatprep.subr.bf16.mxu1 %v8019_v45  ;;  %v8033_v13 = vld [vmem:[#allocation5 + $0x160] sm:$0xff]   ;;  %v8061_v29 = vld [vmem:[#allocation5 + $0x118] sm:$0xff]   ;;  %v8071_v10 = vld [vmem:[#allocation5 + $0x150] sm:$0xff]  }
 0xa2b   :  { %3200 = vmatprep.mubr.bf16.mxu0 %v3077_v12  ;;  %3240 = vmatprep.mubr.bf16.mxu1 %v3079_v40  ;;  %9019 = vst [vmem:[#allocation75_spill] sm:$0xff] %v8033_v13  ;;  %v8036_v62 = vld [vmem:[#allocation5 + $0x1e0] sm:$0xff]   ;;  %v2544_v12 = vrot.slane %v8031_v17, %v7608_v53  ;;  %9025 = vst [vmem:[#allocation81_spill] sm:$0xff] %v8061_v29  ;;  %v8074_v39 = vld [vmem:[#allocation5 + $0x1d0] sm:$0xff]  }
 0xa2c   :  { %v2928_v49 = vpop.f32.mrf.mxu0  ;;  %v2969_v9 = vpop.f32.mrf.mxu1  ;;  %9020 = vst [vmem:[#allocation76_spill] sm:$0xff] %v8036_v62  ;;  %v8044_v45 = vld [vmem:[#allocation5 + $0x1a0] sm:$0xff]   ;;  %9027 = vst [vmem:[#allocation83_spill] sm:$0xff] %v8071_v10 }
 0xa2d   :  { %6411 = vmatpush3.bf16.msra.mxu0 %v8022_v32  ;;  %6433 = vmatpush3.bf16.msra.mxu1 %v8025_v42  ;;  %v8041_v32 = vld [vmem:[#allocation5 + $0x120] sm:$0xff]   ;;  %9022 = vst [vmem:[#allocation78_spill] sm:$0xff] %v8044_v45  ;;  %9028 = vst [vmem:[#allocation84_spill] sm:$0xff] %v8074_v39 }
 0xa2e   :  { %v2930_v27 = vpop.f32.mrf.mxu0  ;;  %v2971_v23 = vpop.f32.mrf.mxu1  ;;  %6412 = vmatprep.subr.bf16.mxu0 %v8033_v13  ;;  %6434 = vmatprep.subr.bf16.mxu1 %v8036_v62  ;;  %9021 = vst [vmem:[#allocation77_spill] sm:$0xff] %v8041_v32  ;;  %v8049_v13 = vld [vmem:[#allocation5 + $0x158] sm:$0xff]  }
 0xa2f   :  { %9023 = vst [vmem:[#allocation79_spill] sm:$0xff] %v8049_v13  ;;  %v8052_v62 = vld [vmem:[#allocation5 + $0x1d8] sm:$0xff]  }
 0xa30   :  { %v2931_v40 = vpop.f32.mrf.mxu0  ;;  %v2972_v42 = vpop.f32.mrf.mxu1  ;;  %9024 = vst [vmem:[#allocation80_spill] sm:$0xff] %v8052_v62 }
 0xa31   :  { %6413 = vmatpush3.bf16.msra.mxu0 %v8041_v32  ;;  %6435 = vmatpush3.bf16.msra.mxu1 %v8044_v45  ;;  %v8064_v45 = vld [vmem:[#allocation5 + $0x198] sm:$0xff]  }
 0xa32   :  { %v8047_v27 = vpop.f32.mrf.mxu0  ;;  %v3049_v23 = vpop.f32.mrf.mxu1  ;;  %6414 = vmatprep.subr.bf16.mxu0 %v8049_v13  ;;  %6436 = vmatprep.subr.bf16.mxu1 %v8052_v62  ;;  %9026 = vst [vmem:[#allocation82_spill] sm:$0xff] %v8064_v45  ;;  %v2504_v13 = vrot.slane %v7976_v5, %v7618_v4  ;;  %v2512_v62 = vrot.slane %v7976_v5, %v7608_v53  ;;  %v8084_v5 = vld [vmem:[#allocation5 + $0x190] sm:$0xff]   ;;  %v8095_v53 = vld [vmem:[#allocation5 + $0x108] sm:$0xff]  }
 0xa33   :  { %v8055_v42 = vadd.f32 %v3049_v23, %v2544_v12 }
 0xa34   :  { %v8057_v40 = vpop.f32.mrf.mxu0  ;;  %v8059_v32 = vpop.f32.mrf.mxu1 }
 0xa35   :  { %6415 = vmatpush3.bf16.msra.mxu0 %v8061_v29  ;;  %6437 = vmatpush3.bf16.msra.mxu1 %v8064_v45  ;;  %v2524_v29 = vrot.slane %v8031_v17, %v7576_v46  ;;  %v2532_v45 = vrot.slane %v8031_v17, %v7579_v47 }
 0xa36   :  { %v3012_v12 = vpop.f32.mrf.mxu0  ;;  %v3053_v23 = vpop.f32.mrf.mxu1  ;;  %6416 = vmatprep.subr.bf16.mxu0 %v8071_v10  ;;  %6438 = vmatprep.subr.bf16.mxu1 %v8074_v39  ;;  %v8089_v39 = vld [vmem:[#allocation5 + $0x148] sm:$0xff]  }
 0xa37   :  { %v2845_v12 = vadd.f32 %v7990_v25, %v2504_v13  ;;  %v2886_v23 = vadd.f32 %v7992_v14, %v2512_v62  ;;  %v8092_v10 = vld [vmem:[#allocation5 + $0x1c8] sm:$0xff]   ;;  %v8101_v13 = vld [vmem:[#allocation5 + $0x140] sm:$0xff]  }
 0xa38   :  { %v3013_v56 = vpop.f32.mrf.mxu0  ;;  %v3054_v55 = vpop.f32.mrf.mxu1  ;;  %9031 = vst [vmem:[#allocation87_spill] sm:$0xff] %v8101_v13  ;;  %v8104_v62 = vld [vmem:[#allocation5 + $0x1c0] sm:$0xff]  }
 0xa39   :  { %6417 = vmatpush3.bf16.msra.mxu0 %v8081_v18  ;;  %6439 = vmatpush3.bf16.msra.mxu1 %v8084_v5  ;;  %v2929_v55 = vadd.f32 %v2928_v49, %v2524_v29  ;;  %v2970_v56 = vadd.f32 %v2969_v9, %v2532_v45  ;;  %v8098_v18 = vld [vmem:[#allocation5 + $0x188] sm:$0xff]   ;;  %v3060_v25 = vmax.f32 %v2845_v12, 0.0  ;;  %v3062_v14 = vmax.f32 %v2886_v23, 0.0  ;;  %9032 = vst [vmem:[#allocation88_spill] sm:$0xff] %v8104_v62  ;;  %v8107_v49 = vld [vmem:[#allocation5 + $0x100] sm:$0xff]  }
 0xa3a   :  { %6418 = vmatprep.subr.bf16.mxu0 %v8089_v39  ;;  %6440 = vmatprep.subr.bf16.mxu1 %v8092_v10  ;;  %9030 = vst [vmem:[#allocation86_spill] sm:$0xff] %v8098_v18  ;;  %v8110_v9 = vld [vmem:[#allocation5 + $0x180] sm:$0xff]  }
 0xa3b   :  { %v3065_v29 = vmax.f32 %v2929_v55, 0.0  ;;  %v3067_v45 = vmax.f32 %v2970_v56, 0.0  ;;  %9033 = vst [vmem:[#allocation89_spill] sm:$0xff] %v8110_v9  ;;  %v3076_v12 = vpack.c.bf16 %v3060_v25, %v3060_v25  ;;  %v3078_v23 = vpack.c.bf16 %v3062_v14, %v3062_v14  ;;  %v8125_v25 = vld [vmem:[#allocation5 + $0x270] sm:$0xff]  }
 0xa3c   :  { %v8128_v14 = vld [vmem:[#allocation5 + $0x2f0] sm:$0xff]  }
 0xa3d   :  { %6419 = vmatpush3.bf16.msra.mxu0 %v8095_v53  ;;  %6441 = vmatpush3.bf16.msra.mxu1 %v8098_v18  ;;  %v8113_v18 = vld [vmem:[#allocation5 + $0x278] sm:$0xff]   ;;  %v3081_v55 = vpack.c.bf16 %v3065_v29, %v3065_v29  ;;  %v3083_v56 = vpack.c.bf16 %v3067_v45, %v3067_v45  ;;  %9034 = vst [vmem:[#allocation90_spill] sm:$0xff] %v8128_v14  ;;  %v8131_v29 = vld [vmem:[#allocation5 + $0x230] sm:$0xff]  }
 0xa3e   :  { %6420 = vmatprep.subr.bf16.mxu0 %v8101_v13  ;;  %6442 = vmatprep.subr.bf16.mxu1 %v8104_v62  ;;  %v8116_v13 = vld [vmem:[#allocation5 + $0x2f8] sm:$0xff]   ;;  %9035 = vst [vmem:[#allocation91_spill] sm:$0xff] %v8131_v29  ;;  %v8134_v45 = vld [vmem:[#allocation5 + $0x2b0] sm:$0xff]  }
 0xa3f   :  { %v8119_v62 = vld [vmem:[#allocation5 + $0x238] sm:$0xff]   ;;  %9036 = vst [vmem:[#allocation92_spill] sm:$0xff] %v8134_v45 }
 0xa41   :  { %6421 = vmatpush3.bf16.msra.mxu0 %v8107_v49  ;;  %6443 = vmatpush3.bf16.msra.mxu1 %v8110_v9  ;;  %v8122_v9 = vld [vmem:[#allocation5 + $0x2b8] sm:$0xff]  }
 0xa42   :  { %6450 = vmatprep.subr.bf16.mxu0 %v8113_v18  ;;  %6472 = vmatprep.subr.bf16.mxu1 %v8116_v13 }
 0xa44   :  { %3201 = vmatmul.mubr.bf16.vlgmr.msra.gmra.mxu0 %v3076_v12  ;;  %3241 = vmatmul.mubr.bf16.vlgmr.msra.gmra.mxu1 %v3078_v23  ;;  %v8137_v12 = vld [vmem:[#allocation5 + $0x268] sm:$0xff]  }
 0xa45   :  { %6451 = vmatpush3.bf16.msra.mxu0 %v8119_v62  ;;  %3280 = vmatprep.mubr.bf16.mxu0 %v3081_v55  ;;  %9037 = vst [vmem:[#allocation93_spill] sm:$0xff] %v8137_v12  ;;  %v8140_v23 = vld [vmem:[#allocation5 + $0x2e8] sm:$0xff]  }
 0xa46   :  { %6473 = vmatpush3.bf16.msra.mxu1 %v8122_v9  ;;  %3320 = vmatprep.mubr.bf16.mxu1 %v3083_v56  ;;  %9038 = vst [vmem:[#allocation94_spill] sm:$0xff] %v8140_v23  ;;  %v8143_v55 = vld [vmem:[#allocation5 + $0x228] sm:$0xff]  }
 0xa47   :  { %6452 = vmatprep.subr.bf16.mxu0 %v8125_v25  ;;  %6474 = vmatprep.subr.bf16.mxu1 %v8128_v14  ;;  %9039 = vst [vmem:[#allocation95_spill] sm:$0xff] %v8143_v55  ;;  %v8146_v56 = vld [vmem:[#allocation5 + $0x2a8] sm:$0xff]  }
 0xa48   :  { %9040 = vst [vmem:[#allocation96_spill] sm:$0xff] %v8146_v56 }
 0xa49   :  { %6453 = vmatpush3.bf16.msra.mxu0 %v8131_v29  ;;  %v8149_v29 = vld [vmem:[#allocation5 + $0x260] sm:$0xff]  }
 0xa4a   :  { %6475 = vmatpush3.bf16.msra.mxu1 %v8134_v45  ;;  %6454 = vmatprep.subr.bf16.mxu0 %v8137_v12  ;;  %9041 = vst [vmem:[#allocation97_spill] sm:$0xff] %v8149_v29  ;;  %v8152_v45 = vld [vmem:[#allocation5 + $0x2e0] sm:$0xff]  }
 0xa4b   :  { %6476 = vmatprep.subr.bf16.mxu1 %v8140_v23  ;;  %9042 = vst [vmem:[#allocation98_spill] sm:$0xff] %v8152_v45  ;;  %v8155_v12 = vld [vmem:[#allocation5 + $0x220] sm:$0xff]  }
 0xa4c   :  { %9043 = vst [vmem:[#allocation99_spill] sm:$0xff] %v8155_v12  ;;  %v8158_v23 = vld [vmem:[#allocation5 + $0x2a0] sm:$0xff]  }
 0xa4d   :  { %6455 = vmatpush3.bf16.msra.mxu0 %v8143_v55  ;;  %9044 = vst [vmem:[#allocation100_spill] sm:$0xff] %v8158_v23  ;;  %v8161_v55 = vld [vmem:[#allocation5 + $0x258] sm:$0xff]  }
 0xa4e   :  { %6477 = vmatpush3.bf16.msra.mxu1 %v8146_v56  ;;  %6456 = vmatprep.subr.bf16.mxu0 %v8149_v29  ;;  %9045 = vst [vmem:[#allocation101_spill] sm:$0xff] %v8161_v55  ;;  %v8164_v56 = vld [vmem:[#allocation5 + $0x2d8] sm:$0xff]  }
 0xa4f   :  { %6478 = vmatprep.subr.bf16.mxu1 %v8152_v45  ;;  %9046 = vst [vmem:[#allocation102_spill] sm:$0xff] %v8164_v56  ;;  %v8167_v29 = vld [vmem:[#allocation5 + $0x218] sm:$0xff]   ;;  %v2520_v45 = vrot.slane %v8031_v17, %v7565_v43 }
 0xa50   :  { %9047 = vst [vmem:[#allocation103_spill] sm:$0xff] %v8167_v29 }
 0xa51   :  { %6457 = vmatpush3.bf16.msra.mxu0 %v8155_v12  ;;  %v8181_v12 = vld [vmem:[#allocation5 + $0x210] sm:$0xff]  }
 0xa52   :  { %6479 = vmatpush3.bf16.msra.mxu1 %v8158_v23  ;;  %6458 = vmatprep.subr.bf16.mxu0 %v8161_v55  ;;  %v2528_v23 = vrot.slane %v8031_v17, %v7568_v44  ;;  %v2540_v55 = vrot.slane %v8031_v17, %v7590_v60 }
 0xa53   :  { %6480 = vmatprep.subr.bf16.mxu1 %v8164_v56  ;;  %v2548_v56 = vrot.slane %v8031_v17, %v7593_v61 }
 0xa55   :  { %6459 = vmatpush3.bf16.msra.mxu0 %v8167_v29  ;;  %v2927_v29 = vadd.f32 %v8012_v35, %v2520_v45 }
 0xa56   :  { %6481 = vmatpush3.bf16.msra.mxu1 %v7638_v19  ;;  %6460 = vmatprep.subr.bf16.mxu0 %v7640_v20  ;;  %v2968_v19 = vadd.f32 %v8014_v37, %v2528_v23  ;;  %v3011_v20 = vadd.f32 %v8057_v40, %v2540_v55  ;;  %v9064_v40 = vld [vmem:[#allocation30_spill] sm:$0xff]  ;;  %v9067_v23 = vld [vmem:[#allocation33_spill] sm:$0xff]  ;;  %v9069_v55 = vld [vmem:[#allocation35_spill] sm:$0xff] }
 0xa57   :  { %6482 = vmatprep.subr.bf16.mxu1 %v7642_v21  ;;  %v3052_v21 = vadd.f32 %v8059_v32, %v2548_v56  ;;  %v3064_v14 = vmax.f32 %v2927_v29, 0.0  ;;  %v3070_v32 = vmax.f32 %v8055_v42, 0.0  ;;  %v9066_v29 = vld [vmem:[#allocation32_spill] sm:$0xff]  ;;  %v9068_v42 = vld [vmem:[#allocation34_spill] sm:$0xff] }
 0xa58   :  { %v3066_v35 = vmax.f32 %v2968_v19, 0.0  ;;  %v9070_v56 = vld [vmem:[#allocation12_spill] sm:$0xff] }
 0xa59   :  { %6461 = vmatpush3.bf16.msra.mxu0 %v8181_v12  ;;  %v3080_v37 = vpack.c.bf16 %v3064_v14, %v3064_v14  ;;  %v9065_v14 = vld [vmem:[#allocation31_spill] sm:$0xff]  ;;  %v3086_v45 = vpack.c.bf16 %v3070_v32, %v3070_v32  ;;  %v3499_v19 = vrot.slane %v9070_v56, 1 }
 0xa5a   :  { %6483 = vmatpush3.bf16.msra.mxu1 %v7648_v24  ;;  %6462 = vmatprep.subr.bf16.mxu0 %v7650_v26  ;;  %v3069_v24 = vmax.f32 %v3011_v20, 0.0  ;;  %v3071_v26 = vmax.f32 %v3052_v21, 0.0 }
 0xa5b   :  { %6484 = vmatprep.subr.bf16.mxu1 %v7655_v28  ;;  %v3082_v28 = vpack.c.bf16 %v3066_v35, %v3066_v35 }
 0xa5d   :  { %6463 = vmatpush3.bf16.msra.mxu0 %v7661_v31  ;;  %v3085_v31 = vpack.c.bf16 %v3069_v24, %v3069_v24 }
 0xa5e   :  { %6485 = vmatpush3.bf16.msra.mxu1 %v7666_v33  ;;  %6464 = vmatprep.subr.bf16.mxu0 %v7668_v34  ;;  %v3087_v33 = vpack.c.bf16 %v3071_v26, %v3071_v26  ;;  %v9048_v34 = vld [vmem:[#allocation14_spill] sm:$0xff] }
 0xa5f   :  { %6486 = vmatprep.subr.bf16.mxu1 %v7672_v38  ;;  %v9049_v38 = vld [vmem:[#allocation15_spill] sm:$0xff] }
 0xa61   :  { %6465 = vmatpush3.bf16.msra.mxu0 %v7677_v41  ;;  %v9050_v41 = vld [vmem:[#allocation16_spill] sm:$0xff] }
 0xa62   :  { %6487 = vmatpush3.bf16.msra.mxu1 %v7681_v50  ;;  %6494 = vmatprep.subr.bf16.mxu0 %v7683_v48  ;;  %v9051_v50 = vld [vmem:[#allocation17_spill] sm:$0xff]  ;;  %v9052_v48 = vld [vmem:[#allocation18_spill] sm:$0xff] }
 0xa63   :  { %6516 = vmatprep.subr.bf16.mxu1 %v7686_v15  ;;  %v2536_v15 = vrot.slane %v8031_v17, %v7618_v4  ;;  %v9063_v17 = vld [vmem:[#allocation29_spill] sm:$0xff] }
 0xa64   :  { %3281 = vmatmul.mubr.bf16.vlgmr.msra.gmra.mxu0 %v3080_v37 }
 0xa65   :  { %3321 = vmatmul.mubr.bf16.vlgmr.msra.gmra.mxu1 %v3082_v28  ;;  %6495 = vmatpush3.bf16.msra.mxu0 %v7689_v16  ;;  %v9053_v16 = vld [vmem:[#allocation19_spill] sm:$0xff] }
 0xa66   :  { %3360 = vmatprep.mubr.bf16.mxu0 %v3085_v31  ;;  %6517 = vmatpush3.bf16.msra.mxu1 %v7693_v57  ;;  %v9054_v57 = vld [vmem:[#allocation20_spill] sm:$0xff] }
 0xa67   :  { %3400 = vmatprep.mubr.bf16.mxu1 %v3087_v33  ;;  %6496 = vmatprep.subr.bf16.mxu0 %v7696_v52  ;;  %v9055_v52 = vld [vmem:[#allocation21_spill] sm:$0xff] }
 0xa68   :  { %6518 = vmatprep.subr.bf16.mxu1 %v7698_v59  ;;  %v9056_v59 = vld [vmem:[#allocation22_spill] sm:$0xff] }
 0xa69   :  { %6497 = vmatpush3.bf16.msra.mxu0 %v7701_v63  ;;  %v3009_v63 = vadd.f32 %v8047_v27, %v2536_v15 }
 0xa6a   :  { %6519 = vmatpush3.bf16.msra.mxu1 %v7704_v0  ;;  %6498 = vmatprep.subr.bf16.mxu0 %v7706_v1  ;;  %v9057_v0 = vld [vmem:[#allocation23_spill] sm:$0xff]  ;;  %v9058_v1 = vld [vmem:[#allocation24_spill] sm:$0xff] }
 0xa6b   :  { %6520 = vmatprep.subr.bf16.mxu1 %v7709_v2  ;;  %v9059_v2 = vld [vmem:[#allocation25_spill] sm:$0xff] }
 0xa6d   :  { %6499 = vmatpush3.bf16.msra.mxu0 %v7713_v3  ;;  %v9060_v3 = vld [vmem:[#allocation26_spill] sm:$0xff] }
 0xa6e   :  { %6521 = vmatpush3.bf16.msra.mxu1 %v7717_v6  ;;  %6500 = vmatprep.subr.bf16.mxu0 %v7719_v7  ;;  %v3068_v6 = vmax.f32 %v3009_v63, 0.0  ;;  %v9061_v7 = vld [vmem:[#allocation27_spill] sm:$0xff] }
 0xa6f   :  { %6522 = vmatprep.subr.bf16.mxu1 %v7722_v8  ;;  %v9062_v8 = vld [vmem:[#allocation28_spill] sm:$0xff] }
 0xa70   :  { %v3084_v27 = vpack.c.bf16 %v3068_v6, %v3068_v6 }
 0xa71   :  { %6501 = vmatpush3.bf16.msra.mxu0 %v9048_v34 }
 0xa72   :  { %6523 = vmatpush3.bf16.msra.mxu1 %v9049_v38  ;;  %6502 = vmatprep.subr.bf16.mxu0 %v9050_v41 }
 0xa73   :  { %6524 = vmatprep.subr.bf16.mxu1 %v9051_v50 }
 0xa75   :  { %6503 = vmatpush3.bf16.msra.mxu0 %v9052_v48 }
 0xa76   :  { %6525 = vmatpush3.bf16.msra.mxu1 %v9053_v16  ;;  %6504 = vmatprep.subr.bf16.mxu0 %v9054_v57 }
 0xa77   :  { %6526 = vmatprep.subr.bf16.mxu1 %v9055_v52 }
 0xa79   :  { %6505 = vmatpush3.bf16.msra.mxu0 %v9056_v59 }
 0xa7a   :  { %6527 = vmatpush3.bf16.msra.mxu1 %v9057_v0  ;;  %6506 = vmatprep.subr.bf16.mxu0 %v9058_v1 }
 0xa7b   :  { %6528 = vmatprep.subr.bf16.mxu1 %v9059_v2 }
 0xa7d   :  { %6507 = vmatpush3.bf16.msra.mxu0 %v9060_v3 }
 0xa7e   :  { %6529 = vmatpush3.bf16.msra.mxu1 %v9061_v7  ;;  %6508 = vmatprep.subr.bf16.mxu0 %v9062_v8 }
 0xa7f   :  { %6530 = vmatprep.subr.bf16.mxu1 %v9063_v17 }
 0xa81   :  { %6509 = vmatpush3.bf16.msra.mxu0 %v9064_v40 }
 0xa82   :  { %6531 = vmatpush3.bf16.msra.mxu1 %v9065_v14  ;;  %3464 = vmatprep.subr.bf16.mxu0 %v9066_v29 }
 0xa83   :  { %3515 = vmatprep.subr.bf16.mxu1 %v9066_v29 }
 0xa84   :  { %3361 = vmatmul.mubr.bf16.vlgmr.msra.gmra.mxu0 %v3084_v27 }
 0xa85   :  { %3401 = vmatmul.mubr.bf16.vlgmr.msra.gmra.mxu1 %v3086_v45  ;;  %3465 = vmatpush1.bf16.msra.mxu0 %v9067_v23 }
 0xa86   :  { %3516 = vmatpush1.bf16.msra.mxu1 %v9067_v23  ;;  %3535 = vmatprep.mubr.bf16.mxu1 %v8979_v58 }
 0xa87   :  { %3517 = vmatprep.subr.bf16.mxu1 %v9068_v42  ;;  %3466 = vmatprep.subr.bf16.mxu0 %v9068_v42 }
 0xa88   :  { %3484 = vmatprep.mubr.bf16.mxu0 %v8979_v58 }
 0xa89   :  { %3467 = vmatpush1.bf16.msra.mxu0 %v9069_v55 }
 0xa8a   :  { %3518 = vmatpush1.bf16.msra.mxu1 %v9069_v55 }
 0xa8d   :  { %6070 = vmatmul.mubr.msk.bf16.vlgmr.msra.gmra.mxu1 %vm266_vm4, %v3499_v19 }
 0xa8e   :  { %3972 = vmatprep.mubr.bf16.mxu1 %v8979_v58 }
 0xae4   :  { %v6378_v20 = vpop.f32.mrf.mxu0  ;;  %v6400_v21 = vpop.f32.mrf.mxu1 }
 0xae6   :  { %v6379_v35 = vpop.f32.mrf.mxu0  ;;  %v6401_v24 = vpop.f32.mrf.mxu1 }
 0xae7   :  { %v6380_v26 = vadd.f32 %v6379_v35, %v6378_v20  ;;  %v6402_v37 = vadd.f32 %v6401_v24, %v6400_v21 }
 0xae8   :  { %v6381_v28 = vpop.f32.mrf.mxu0  ;;  %v6403_v31 = vpop.f32.mrf.mxu1 }
 0xae9   :  { %v3163_v33 = vadd.f32 %v6402_v37, %v6380_v26  ;;  %v3415_v28 = vpop.permute.xlu0 %3414 }
 0xaea   :  { %v6382_v34 = vpop.f32.mrf.mxu0  ;;  %v6404_v38 = vpop.f32.mrf.mxu1 }
 0xb04   :  { %v6422_v41 = vpop.f32.mrf.mxu0  ;;  %v6444_v50 = vpop.f32.mrf.mxu1 }
 0xb06   :  { %v6423_v48 = vpop.f32.mrf.mxu0  ;;  %v6445_v15 = vpop.f32.mrf.mxu1 }
 0xb07   :  { %v6424_v32 = vadd.f32 %v6423_v48, %v6422_v41  ;;  %v6446_v40 = vadd.f32 %v6445_v15, %v6444_v50 }
 0xb08   :  { %v6425_v16 = vpop.f32.mrf.mxu0  ;;  %v6447_v57 = vpop.f32.mrf.mxu1 }
 0xb09   :  { %v3203_v17 = vadd.f32 %v6424_v32, %v3163_v33 }
 0xb0a   :  { %v6426_v52 = vpop.f32.mrf.mxu0  ;;  %v6448_v59 = vpop.f32.mrf.mxu1 }
 0xb0b   :  { %v3243_v14 = vadd.f32 %v6446_v40, %v3203_v17  ;;  %v6066_v40 = vld [vmem:[%s8829_s8 + $0xe] ss:$0 sm:$0xff] }
 0xb24   :  { %v6466_v63 = vpop.f32.mrf.mxu0 }
 0xb25   :  { %v6488_v0 = vpop.f32.mrf.mxu1 }
 0xb26   :  { %v6467_v1 = vpop.f32.mrf.mxu0 }
 0xb27   :  { %v6489_v2 = vpop.f32.mrf.mxu1  ;;  %v6468_v27 = vadd.f32 %v6467_v1, %v6466_v63 }
 0xb28   :  { %v6469_v3 = vpop.f32.mrf.mxu0  ;;  %v6490_v23 = vadd.f32 %v6489_v2, %v6488_v0  ;;  %v6071_v2 = vld [vmem:[%s8829_s8 + $0x10] ss:$0 sm:$0xff] }
 0xb29   :  { %v6491_v6 = vpop.f32.mrf.mxu1  ;;  %v3283_v29 = vadd.f32 %v6468_v27, %v3243_v14  ;;  %v6067_v14 = vld [vmem:[%s8829_s8 + $0xf] ss:$0 sm:$0xff] }
 0xb2a   :  { %v6470_v7 = vpop.f32.mrf.mxu0 }
 0xb2b   :  { %v6492_v8 = vpop.f32.mrf.mxu1  ;;  %v3323_v56 = vadd.f32 %v6490_v23, %v3283_v29 }
 0xb44   :  { %v6510_v45 = vpop.f32.mrf.mxu0 }
 0xb45   :  { %v6532_v42 = vpop.f32.mrf.mxu1 }
 0xb46   :  { %v6511_v55 = vpop.f32.mrf.mxu0 }
 0xb47   :  { %v6512_v19 = vadd.f32 %v6511_v55, %v6510_v45  ;;  %v6533_v20 = vpop.f32.mrf.mxu1  ;;  %v9071_v55 = vld [vmem:[#allocation11_spill] sm:$0xff] }
 0xb48   :  { %v6513_v21 = vpop.f32.mrf.mxu0  ;;  %v6534_v24 = vadd.f32 %v6533_v20, %v6532_v42 }
 0xb49   :  { %v3363_v35 = vadd.f32 %v6512_v19, %v3323_v56  ;;  %v6535_v26 = vpop.f32.mrf.mxu1 }
 0xb4a   :  { %v6514_v37 = vpop.f32.mrf.mxu0 }
 0xb4b   :  { %v6536_v31 = vpop.f32.mrf.mxu1  ;;  %v3403_v34 = vadd.f32 %v6534_v24, %v3363_v35 }
 0xb4d   :  { %v3417_v33 = vadd.f32 %v3415_v28, %v3403_v34  ;;  %v3537_v38 = vpop.f32.mrf.mxu1 }
 0xb4f   :  { %v3539_v41 = vpop.f32.mrf.mxu1  ;;  %3419 = vrot.lane.b32.xlu1 %v3417_v33, %s7393_s10 }
 0xb51   :  { %v3540_v50 = vpop.f32.mrf.mxu1 }
 0xb52   :  { %v6069_v50 = vld [vmem:[%s8829_s8 + $0x3] ss:$0 sm:$0xff] }
 0xb53   :  { %v3541_v48 = vpop.f32.mrf.mxu1 }
 0xbc1   :  { %v3420_v15 = vpop.permute.xlu1 %3419 }
 0xbc2   :  { %v3422_v16 = vadd.f32 %v3420_v15, %v7839_v11  ;;  %v6072_v15 = vld [vmem:[%s8829_s8 + $0x12] ss:$0 sm:$0xff] }
 0xbc4   :  { %v3425_v57 = vsel %vm319_vm5, %v3422_v16, 0.0 }
 0xbc5   :  { %3426 = vadd.xlane.f32.xlu1 %v3425_v57 }
 0xc4e   :  { %v3427_v52 = vpop.xlane.xlu1 %3426 }
 0xc4f   :  { %v3428_v59 = vmul.f32 0.03125, %v3427_v52  ;;  %v6073_v52 = vld [vmem:[%s8829_s8 + $0x13] ss:$0 sm:$0xff] }
 0xc51   :  { %v3429_v63 = vsub.f32 %v3422_v16, %v3428_v59 }
 0xc53   :  { %v3430_v0 = vmul.f32 %v3429_v63, %v3429_v63 }
 0xc55   :  { %v3431_v1 = vsel %vm319_vm5, %v3430_v0, 0.0 }
 0xc56   :  { %3432 = vadd.xlane.f32.xlu0 %v3431_v1 }
 0xc6c   :  { %3549 = vrot.lane.b32.xlu0 %v6071_v2, %s7386_s13 }
 0xcdf   :  { %v3433_v3 = vpop.xlane.xlu0 %3432 }
 0xce0   :  { %v3434_v6 = vmul.f32 0.03125, %v3433_v3 }
 0xce2   :  { %v3435_v7 = vadd.f32 1e-05, %v3434_v6 }
 0xce3   :  { %v3550_v11 = vpop.permute.xlu0 %3549 }
 0xce4   :  { %7084 = vrsqrt.f32 %v3435_v7  ;;  %v3552_v8 = vadd.f32 %v3550_v11, %v3537_v38 }
 0xce6   :  { %v3554_v32 = vrot.slane %v3552_v8, 6 }
 0xce8   :  { %3555 = vrot.lane.b32.xlu1 %v3554_v32, %s7386_s13  ;;  %v3631_v32 = vld [vmem:[#allocation2 + $0x280] sm:$0xff] }
 0xcf1   :  { %v7085_v17 = vpop.eup %7084 }
 0xcf2   :  { %v3437_v27 = vmul.f32 %v7085_v17, %v3429_v63  ;;  %v3639_v17 = vld [vmem:[#allocation2 + $0x2c0] sm:$0xff] }
 0xcf4   :  { %v3442_v29 = vmul.f32 %v6066_v40, %v3437_v27  ;;  %v3632_v40 = vld [vmem:[#allocation2 + $0x288] sm:$0xff]  ;;  %v6095_v27 = vcombine.high %v3631_v32, %v3639_v17 }
 0xcf6   :  { %v3447_v45 = vadd.f32 %v6067_v14, %v3442_v29  ;;  %v3640_v14 = vld [vmem:[#allocation2 + $0x2c8] sm:$0xff]  ;;  %v6094_v29 = vcombine.low %v3631_v32, %v3639_v17  ;;  %3911 = vmatprep.subr.bf16.mxu0 %v6095_v27 }
 0xcf8   :  { %v3448_v23 = vpack.c.bf16 %v3447_v45, %v3447_v45  ;;  %v6096_v45 = vcombine.low %v3632_v40, %v3640_v14 }
 0xcfa   :  { %6068 = vmatmul.mubr.msk.bf16.vlgmr.msra.gmra.mxu0 %vm266_vm4, %v3448_v23  ;;  %v6097_v23 = vcombine.high %v3632_v40, %v3640_v14  ;;  %v3635_v14 = vld [vmem:[#allocation2 + $0x2a0] sm:$0xff] }
 0xcfb   :  { %3931 = vmatprep.mubr.bf16.mxu0 %v8979_v58  ;;  %3912 = vmatpush1.bf16.msra.mxu0 %v6094_v29  ;;  %v3636_v29 = vld [vmem:[#allocation2 + $0x2a8] sm:$0xff] }
 0xcfc   :  { %3952 = vmatprep.subr.bf16.mxu1 %v6097_v23 }
 0xcfd   :  { %3953 = vmatpush1.bf16.msra.mxu1 %v6096_v45  ;;  %v3644_v45 = vld [vmem:[#allocation2 + $0x2e8] sm:$0xff] }
 0xd5a   :  { %v3556_v42 = vpop.permute.xlu1 %3555 }
 0xd5b   :  { %v3558_v56 = vadd.f32 %v3556_v42, %v9071_v55  ;;  %v3615_v42 = vld [vmem:[#allocation2 + $0x200] sm:$0xff] }
 0xd5c   :  { %v3623_v55 = vld [vmem:[#allocation2 + $0x240] sm:$0xff] }
 0xd5d   :  { %v3562_v19 = vsel %vm3561_vm6, %v3558_v56, 0.0 }
 0xd5e   :  { %3563 = vadd.xlane.f32.xlu1 %v3562_v19  ;;  %v6079_v19 = vcombine.high %v3615_v42, %v3623_v55 }
 0xd60   :  { %3913 = vmatprep.subr.bf16.mxu0 %v6079_v19  ;;  %v3619_v19 = vld [vmem:[#allocation2 + $0x220] sm:$0xff] }
 0xdba   :  { %v3486_v20 = vpop.f32.mrf.mxu0 }
 0xdbb   :  { %v3624_v20 = vld [vmem:[#allocation2 + $0x248] sm:$0xff] }
 0xdbc   :  { %v3487_v21 = vpop.f32.mrf.mxu0 }
 0xdbd   :  { %v8272_v16 = vadd.f32 %v6069_v50, %v3487_v21  ;;  %v6078_v21 = vcombine.low %v3615_v42, %v3623_v55 }
 0xdbe   :  { %v3489_v35 = vpop.f32.mrf.mxu0 }
 0xdbf   :  { %v8933_v63 = vrot.slane %v8272_v16, 6  ;;  %3914 = vmatpush1.bf16.msra.mxu0 %v6078_v21  ;;  %v3620_v21 = vld [vmem:[#allocation2 + $0x228] sm:$0xff] }
 0xdc0   :  { %v3490_v24 = vpop.f32.mrf.mxu0 }
 0xde7   :  { %v3564_v26 = vpop.xlane.xlu1 %3563 }
 0xde8   :  { %v3565_v37 = vmul.f32 0.03125, %v3564_v26  ;;  %v3633_v26 = vld [vmem:[#allocation2 + $0x290] sm:$0xff] }
 0xdea   :  { %v3566_v28 = vsub.f32 %v3558_v56, %v3565_v37  ;;  %v3616_v56 = vld [vmem:[#allocation2 + $0x208] sm:$0xff]  ;;  %v3641_v37 = vld [vmem:[#allocation2 + $0x2d0] sm:$0xff] }
 0xdeb   :  { %v6080_v35 = vcombine.low %v3616_v56, %v3624_v20  ;;  %v6081_v24 = vcombine.high %v3616_v56, %v3624_v20  ;;  %v6105_v56 = vcombine.high %v3636_v29, %v3644_v45  ;;  %v3627_v20 = vld [vmem:[#allocation2 + $0x260] sm:$0xff] }
 0xdec   :  { %v3567_v31 = vmul.f32 %v3566_v28, %v3566_v28 }
 0xded   :  { %3954 = vmatprep.subr.bf16.mxu1 %v6081_v24 }
 0xdee   :  { %v3568_v34 = vsel %vm3561_vm6, %v3567_v31, 0.0  ;;  %3955 = vmatpush1.bf16.msra.mxu1 %v6080_v35  ;;  %v6098_v31 = vcombine.low %v3633_v26, %v3641_v37  ;;  %v3628_v35 = vld [vmem:[#allocation2 + $0x268] sm:$0xff] }
 0xdef   :  { %3569 = vadd.xlane.f32.xlu0 %v3568_v34  ;;  %v6099_v34 = vcombine.high %v3633_v26, %v3641_v37  ;;  %v6104_v26 = vcombine.low %v3636_v29, %v3644_v45  ;;  %v6087_v37 = vcombine.high %v3619_v19, %v3627_v20  ;;  %v9078_v29 = vld [vmem:[#allocation42_spill] sm:$0xff]  ;;  %v9079_v45 = vld [vmem:[#allocation43_spill] sm:$0xff] }
 0xdf1   :  { %3993 = vmatprep.subr.bf16.mxu0 %v6099_v34  ;;  %v3645_v34 = vld [vmem:[#allocation2 + $0x2f0] sm:$0xff] }
 0xe78   :  { %v3570_v33 = vpop.xlane.xlu0 %3569 }
 0xe79   :  { %v3571_v38 = vmul.f32 0.03125, %v3570_v33  ;;  %v3642_v33 = vld [vmem:[#allocation2 + $0x2d8] sm:$0xff] }
 0xe7b   :  { %v3572_v41 = vadd.f32 1e-05, %v3571_v38 }
 0xe7d   :  { %7086 = vrsqrt.f32 %v3572_v41 }
 0xe8a   :  { %v7087_v48 = vpop.eup %7086 }
 0xe8b   :  { %v3574_v57 = vmul.f32 %v7087_v48, %v3566_v28  ;;  %v3634_v28 = vld [vmem:[#allocation2 + $0x298] sm:$0xff] }
 0xe8c   :  { %v6100_v38 = vcombine.low %v3634_v28, %v3642_v33  ;;  %v6101_v41 = vcombine.high %v3634_v28, %v3642_v33  ;;  %v6089_v28 = vcombine.high %v3620_v21, %v3628_v35  ;;  %v3638_v33 = vld [vmem:[#allocation2 + $0x2b8] sm:$0xff] }
 0xe8d   :  { %v3579_v59 = vmul.f32 %v6072_v15, %v3574_v57 }
 0xe8e   :  { %4034 = vmatprep.subr.bf16.mxu1 %v6101_v41  ;;  %v6086_v41 = vcombine.low %v3619_v19, %v3627_v20  ;;  %v9087_v19 = vld [vmem:[#allocation51_spill] sm:$0xff]  ;;  %v9088_v20 = vld [vmem:[#allocation52_spill] sm:$0xff] }
 0xe8f   :  { %v3584_v0 = vadd.f32 %v6073_v52, %v3579_v59  ;;  %v6074_v52 = vld [vmem:[%s8829_s8 + $0x14] ss:$0 sm:$0xff] }
 0xe91   :  { %v3588_v1 = vadd.f32 %v8933_v63, %v3584_v0  ;;  %v6075_v0 = vld [vmem:[%s8829_s8 + $0x15] ss:$0 sm:$0xff] }
 0xe93   :  { %v3591_v2 = vsel %vm3561_vm6, %v3588_v1, 0.0 }
 0xe94   :  { %3592 = vadd.xlane.f32.xlu0 %v3591_v2 }
 0xf1d   :  { %v3593_v3 = vpop.xlane.xlu0 %3592 }
 0xf1e   :  { %v3594_v6 = vmul.f32 0.03125, %v3593_v3  ;;  %v3617_v3 = vld [vmem:[#allocation2 + $0x210] sm:$0xff] }
 0xf20   :  { %v3595_v7 = vsub.f32 %v3588_v1, %v3594_v6  ;;  %v3625_v6 = vld [vmem:[#allocation2 + $0x250] sm:$0xff] }
 0xf21   :  { %v6083_v40 = vcombine.high %v3617_v3, %v3625_v6  ;;  %v6082_v23 = vcombine.low %v3617_v3, %v3625_v6 }
 0xf22   :  { %v3596_v11 = vmul.f32 %v3595_v7, %v3595_v7 }
 0xf24   :  { %v3597_v8 = vsel %vm3561_vm6, %v3596_v11, 0.0  ;;  %v3618_v11 = vld [vmem:[#allocation2 + $0x218] sm:$0xff] }
 0xf25   :  { %3598 = vadd.xlane.f32.xlu1 %v3597_v8  ;;  %v3626_v8 = vld [vmem:[#allocation2 + $0x258] sm:$0xff] }
 0xf26   :  { %v6085_v27 = vcombine.high %v3618_v11, %v3626_v8  ;;  %v6084_v42 = vcombine.low %v3618_v11, %v3626_v8 }
 0xfae   :  { %v3599_v50 = vpop.xlane.xlu1 %3598 }
 0xfaf   :  { %v3600_v48 = vmul.f32 0.03125, %v3599_v50  ;;  %v6088_v50 = vcombine.low %v3620_v21, %v3628_v35  ;;  %v9089_v21 = vld [vmem:[#allocation53_spill] sm:$0xff]  ;;  %v9090_v35 = vld [vmem:[#allocation54_spill] sm:$0xff] }
 0xfb1   :  { %v3601_v15 = vadd.f32 1e-05, %v3600_v48 }
 0xfb3   :  { %7088 = vrsqrt.f32 %v3601_v15 }
 0xfc0   :  { %v7089_v57 = vpop.eup %7088 }
 0xfc1   :  { %v3603_v59 = vmul.f32 %v7089_v57, %v3595_v7  ;;  %v3643_v7 = vld [vmem:[#allocation2 + $0x2e0] sm:$0xff]  ;;  %v3621_v57 = vld [vmem:[#allocation2 + $0x230] sm:$0xff] }
 0xfc2   :  { %v6103_v55 = vcombine.high %v3635_v14, %v3643_v7  ;;  %v6102_v24 = vcombine.low %v3635_v14, %v3643_v7  ;;  %v9074_v14 = vld [vmem:[#allocation38_spill] sm:$0xff]  ;;  %v9075_v7 = vld [vmem:[#allocation39_spill] sm:$0xff] }
 0xfc3   :  { %v3608_v1 = vmul.f32 %v6074_v52, %v3603_v59  ;;  %v3629_v52 = vld [vmem:[#allocation2 + $0x270] sm:$0xff]  ;;  %v3622_v59 = vld [vmem:[#allocation2 + $0x238] sm:$0xff] }
 0xfc4   :  { %v6091_v6 = vcombine.high %v3621_v57, %v3629_v52  ;;  %v6090_v8 = vcombine.low %v3621_v57, %v3629_v52  ;;  %v8357_v57 = vld [vmem:[%s8827_s6 + $0x2] ss:$4 sm:$0xff] }
 0xfc5   :  { %v8288_v2 = vadd.f32 %v6075_v0, %v3608_v1  ;;  %v3630_v0 = vld [vmem:[#allocation2 + $0x278] sm:$0xff]  ;;  %v3657_v52 = vrot.slane %v8357_v57, %v7565_v43 }
 0xfc6   :  { %v6093_v11 = vcombine.high %v3622_v59, %v3630_v0 }
 0xfc7   :  { %v3647_v32 = vpack.c.bf16 %v8288_v2, %v8288_v2 }
 0xfc9   :  { %v8292_v17 = vrot.slane %v3647_v32, 1  ;;  %v6092_v32 = vcombine.low %v3622_v59, %v3630_v0  ;;  %v3665_v59 = vrot.slane %v8357_v57, %v7568_v44  ;;  %v3661_v0 = vrot.slane %v8357_v57, %v7576_v46 }
 0xfcb   :  { %6110 = vmatmul.mubr.msk.bf16.vlgmr.msra.gmra.mxu0 %vm266_vm4, %v8292_v17  ;;  %6111 = vmatmul.mubr.msk.bf16.vlgmr.msra.gmra.mxu1 %vm266_vm4, %v8292_v17 }
 0xfcc   :  { %3994 = vmatpush1.bf16.msra.mxu0 %v6098_v31  ;;  %4035 = vmatpush1.bf16.msra.mxu1 %v6100_v38  ;;  %v3637_v31 = vld [vmem:[#allocation2 + $0x2b0] sm:$0xff]  ;;  %v3646_v38 = vld [vmem:[#allocation2 + $0x2f8] sm:$0xff] }
 0xfcd   :  { %3995 = vmatprep.subr.bf16.mxu0 %v6083_v40  ;;  %4036 = vmatprep.subr.bf16.mxu1 %v6085_v27  ;;  %v6107_v48 = vcombine.high %v3637_v31, %v3645_v34  ;;  %v6109_v15 = vcombine.high %v3638_v33, %v3646_v38  ;;  %v6106_v1 = vcombine.low %v3637_v31, %v3645_v34  ;;  %v9072_v40 = vld [vmem:[#allocation36_spill] sm:$0xff]  ;;  %v9073_v27 = vld [vmem:[#allocation37_spill] sm:$0xff]  ;;  %v9095_v31 = vld [vmem:[#allocation59_spill] sm:$0xff] }
 0xfce   :  { %4013 = vmatprep.mubr.bf16.mxu0 %v8979_v58  ;;  %4054 = vmatprep.mubr.bf16.mxu1 %v8979_v58  ;;  %v6108_v3 = vcombine.low %v3638_v33, %v3646_v38  ;;  %v9096_v34 = vld [vmem:[#allocation60_spill] sm:$0xff]  ;;  %v9097_v33 = vld [vmem:[#allocation61_spill] sm:$0xff]  ;;  %v9098_v38 = vld [vmem:[#allocation62_spill] sm:$0xff] }
 0xfd0   :  { %3996 = vmatpush1.bf16.msra.mxu0 %v6082_v23  ;;  %4037 = vmatpush1.bf16.msra.mxu1 %v6084_v42  ;;  %v9083_v23 = vld [vmem:[#allocation47_spill] sm:$0xff]  ;;  %v9084_v42 = vld [vmem:[#allocation48_spill] sm:$0xff] }
 0xfd1   :  { %4075 = vmatprep.subr.bf16.mxu0 %v6103_v55  ;;  %4116 = vmatprep.subr.bf16.mxu1 %v6105_v56  ;;  %v9085_v55 = vld [vmem:[#allocation49_spill] sm:$0xff]  ;;  %v9086_v56 = vld [vmem:[#allocation50_spill] sm:$0xff] }
 0xfd3   :  { %6112 = vmatmul.mubr.msk.bf16.vlgmr.msra.gmra.mxu0 %vm266_vm4, %v8292_v17  ;;  %6113 = vmatmul.mubr.msk.bf16.vlgmr.msra.gmra.mxu1 %vm266_vm4, %v8292_v17 }
 0xfd4   :  { %4076 = vmatpush1.bf16.msra.mxu0 %v6102_v24  ;;  %4117 = vmatpush1.bf16.msra.mxu1 %v6104_v26  ;;  %v9091_v24 = vld [vmem:[#allocation55_spill] sm:$0xff]  ;;  %v9092_v26 = vld [vmem:[#allocation56_spill] sm:$0xff] }
 0xfd5   :  { %4077 = vmatprep.subr.bf16.mxu0 %v6087_v37  ;;  %4118 = vmatprep.subr.bf16.mxu1 %v6089_v28  ;;  %v9093_v37 = vld [vmem:[#allocation57_spill] sm:$0xff]  ;;  %v9094_v28 = vld [vmem:[#allocation58_spill] sm:$0xff] }
 0xfd6   :  { %4095 = vmatprep.mubr.bf16.mxu0 %v8979_v58  ;;  %4136 = vmatprep.mubr.bf16.mxu1 %v8979_v58 }
 0xfd8   :  { %4078 = vmatpush1.bf16.msra.mxu0 %v6086_v41  ;;  %4119 = vmatpush1.bf16.msra.mxu1 %v6088_v50  ;;  %v9099_v41 = vld [vmem:[#allocation63_spill] sm:$0xff]  ;;  %v9100_v50 = vld [vmem:[#allocation64_spill] sm:$0xff] }
 0xfd9   :  { %4157 = vmatprep.subr.bf16.mxu0 %v6107_v48  ;;  %4198 = vmatprep.subr.bf16.mxu1 %v6109_v15  ;;  %v9101_v48 = vld [vmem:[#allocation65_spill] sm:$0xff]  ;;  %v6118_v15 = vld [vmem:[%s8829_s8 + $0x11] ss:$0 sm:$0xff] }
 0xfda   :  { %4585 = vrot.lane.b32.xlu0 %v6118_v15, %s7386_s13 }
 0xfdb   :  { %6114 = vmatmul.mubr.msk.bf16.vlgmr.msra.gmra.mxu0 %vm266_vm4, %v8292_v17  ;;  %6115 = vmatmul.mubr.msk.bf16.vlgmr.msra.gmra.mxu1 %vm266_vm4, %v8292_v17 }
 0xfdc   :  { %4158 = vmatpush1.bf16.msra.mxu0 %v6106_v1  ;;  %4199 = vmatpush1.bf16.msra.mxu1 %v6108_v3  ;;  %v3669_v1 = vrot.slane %v8357_v57, %v7579_v47 }
 0xfdd   :  { %4159 = vmatprep.subr.bf16.mxu0 %v6091_v6  ;;  %4200 = vmatprep.subr.bf16.mxu1 %v6093_v11 }
 0xfde   :  { %4177 = vmatprep.mubr.bf16.mxu0 %v8979_v58  ;;  %4218 = vmatprep.mubr.bf16.mxu1 %v8979_v58 }
 0xfe0   :  { %4160 = vmatpush1.bf16.msra.mxu0 %v6090_v8  ;;  %4201 = vmatpush1.bf16.msra.mxu1 %v6092_v32 }
 0xfe1   :  { %6538 = vmatprep.subr.bf16.mxu0 %v7863_v36  ;;  %6560 = vmatprep.subr.bf16.mxu1 %v7866_v22  ;;  %v9076_v36 = vld [vmem:[#allocation40_spill] sm:$0xff]  ;;  %v9077_v22 = vld [vmem:[#allocation41_spill] sm:$0xff] }
 0xfe3   :  { %6116 = vmatmul.mubr.msk.bf16.vlgmr.msra.gmra.mxu0 %vm266_vm4, %v8292_v17  ;;  %6117 = vmatmul.mubr.msk.bf16.vlgmr.msra.gmra.mxu1 %vm266_vm4, %v8292_v17  ;;  %v9080_v17 = vld [vmem:[#allocation44_spill] sm:$0xff] }
 0xfe4   :  { %6539 = vmatpush3.bf16.msra.mxu0 %v7873_v51  ;;  %6561 = vmatpush3.bf16.msra.mxu1 %v7876_v30  ;;  %v9081_v51 = vld [vmem:[#allocation45_spill] sm:$0xff]  ;;  %v9082_v30 = vld [vmem:[#allocation46_spill] sm:$0xff] }
 0xfe5   :  { %6540 = vmatprep.subr.bf16.mxu0 %v9072_v40  ;;  %6562 = vmatprep.subr.bf16.mxu1 %v9073_v27 }
 0xfe8   :  { %6541 = vmatpush3.bf16.msra.mxu0 %v9074_v14  ;;  %6563 = vmatpush3.bf16.msra.mxu1 %v9075_v7 }
 0xfe9   :  { %6542 = vmatprep.subr.bf16.mxu0 %v9076_v36  ;;  %6564 = vmatprep.subr.bf16.mxu1 %v9077_v22 }
 0xfec   :  { %6543 = vmatpush3.bf16.msra.mxu0 %v9078_v29  ;;  %6565 = vmatpush3.bf16.msra.mxu1 %v9079_v45 }
 0xfed   :  { %6544 = vmatprep.subr.bf16.mxu0 %v9080_v17  ;;  %6566 = vmatprep.subr.bf16.mxu1 %v9081_v51 }
 0xff0   :  { %6545 = vmatpush3.bf16.msra.mxu0 %v9082_v30  ;;  %6567 = vmatpush3.bf16.msra.mxu1 %v9083_v23 }
 0xff1   :  { %6546 = vmatprep.subr.bf16.mxu0 %v9084_v42  ;;  %6568 = vmatprep.subr.bf16.mxu1 %v9085_v55  ;;  %v3677_v55 = vrot.slane %v8357_v57, %v7590_v60 }
 0xff4   :  { %6547 = vmatpush3.bf16.msra.mxu0 %v9086_v56  ;;  %6569 = vmatpush3.bf16.msra.mxu1 %v9087_v19  ;;  %v3685_v56 = vrot.slane %v8357_v57, %v7593_v61 }
 0xff5   :  { %6548 = vmatprep.subr.bf16.mxu0 %v9088_v20  ;;  %6570 = vmatprep.subr.bf16.mxu1 %v9089_v21 }
 0xff8   :  { %6549 = vmatpush3.bf16.msra.mxu0 %v9090_v35  ;;  %6571 = vmatpush3.bf16.msra.mxu1 %v9091_v24 }
 0xff9   :  { %6550 = vmatprep.subr.bf16.mxu0 %v9092_v26  ;;  %6572 = vmatprep.subr.bf16.mxu1 %v9093_v37 }
 0xffc   :  { %6551 = vmatpush3.bf16.msra.mxu0 %v9094_v28  ;;  %6573 = vmatpush3.bf16.msra.mxu1 %v9095_v31  ;;  %v9102_v31 = vld [vmem:[#allocation66_spill] sm:$0xff] }
 0xffd   :  { %6552 = vmatprep.subr.bf16.mxu0 %v9096_v34  ;;  %6574 = vmatprep.subr.bf16.mxu1 %v9097_v33 }
0x1000   :  { %6553 = vmatpush3.bf16.msra.mxu0 %v9098_v38  ;;  %6575 = vmatpush3.bf16.msra.mxu1 %v9099_v41  ;;  %v9103_v38 = vld [vmem:[#allocation67_spill] sm:$0xff]  ;;  %v9104_v41 = vld [vmem:[#allocation68_spill] sm:$0xff] }
0x1001   :  { %6582 = vmatprep.subr.bf16.mxu0 %v9100_v50  ;;  %6604 = vmatprep.subr.bf16.mxu1 %v9101_v48 }
0x108b   :  { %v3933_v3 = vpop.f32.mrf.mxu0  ;;  %v3974_v6 = vpop.f32.mrf.mxu1 }
0x108c   :  { %v3934_v11 = vadd.f32 %v3933_v3, %v3657_v52  ;;  %v3975_v8 = vadd.f32 %v3974_v6, %v3665_v59  ;;  %v9106_v3 = vld [vmem:[#allocation70_spill] sm:$0xff] }
0x108d   :  { %v3935_v32 = vpop.f32.mrf.mxu0  ;;  %v3976_v40 = vpop.f32.mrf.mxu1 }
0x108e   :  { %v3936_v27 = vadd.f32 %v3935_v32, %v3661_v0  ;;  %v3977_v14 = vadd.f32 %v3976_v40, %v3669_v1  ;;  %v4227_v7 = vmax.f32 %v3934_v11, 0.0  ;;  %v4229_v36 = vmax.f32 %v3975_v8, 0.0  ;;  %v9105_v1 = vld [vmem:[#allocation69_spill] sm:$0xff]  ;;  %v9107_v11 = vld [vmem:[#allocation71_spill] sm:$0xff]  ;;  %v9108_v8 = vld [vmem:[#allocation72_spill] sm:$0xff] }
0x108f   :  { %v3937_v22 = vpop.f32.mrf.mxu0  ;;  %v3978_v29 = vpop.f32.mrf.mxu1 }
0x1090   :  { %v4228_v45 = vmax.f32 %v3936_v27, 0.0  ;;  %v4230_v17 = vmax.f32 %v3977_v14, 0.0  ;;  %v4243_v19 = vpack.c.bf16 %v4227_v7, %v4227_v7  ;;  %v4245_v20 = vpack.c.bf16 %v4229_v36, %v4229_v36  ;;  %v9109_v27 = vld [vmem:[#allocation73_spill] sm:$0xff]  ;;  %v9110_v14 = vld [vmem:[#allocation74_spill] sm:$0xff]  ;;  %v9111_v29 = vld [vmem:[#allocation75_spill] sm:$0xff] }
0x1091   :  { %v3938_v51 = vpop.f32.mrf.mxu0  ;;  %v3979_v30 = vpop.f32.mrf.mxu1  ;;  %v8392_v7 = vld [vmem:[%s8827_s6 + $0x22] ss:$4 sm:$0xff] }
0x1092   :  { %v4244_v23 = vpack.c.bf16 %v4228_v45, %v4228_v45  ;;  %v4246_v42 = vpack.c.bf16 %v4230_v17, %v4230_v17  ;;  %v9112_v45 = vld [vmem:[#allocation76_spill] sm:$0xff]  ;;  %v9113_v17 = vld [vmem:[#allocation13_spill] sm:$0xff] }
0x1093   :  { %v8371_v21 = vpop.f32.mrf.mxu0  ;;  %v8373_v35 = vpop.f32.mrf.mxu1  ;;  %v3713_v51 = vrot.slane %v8392_v7, %v9113_v17 }
0x1094   :  { %4291 = vmatprep.mubr.bf16.mxu0 %v4244_v23  ;;  %4331 = vmatprep.mubr.bf16.mxu1 %v4246_v42  ;;  %v9114_v42 = vld [vmem:[#allocation77_spill] sm:$0xff] }
0x1095   :  { %v4017_v24 = vpop.f32.mrf.mxu0  ;;  %v4058_v26 = vpop.f32.mrf.mxu1  ;;  %4292 = vmatmul.mubr.bf16.vlgmr.msra.gmra.mxu0 %v4243_v19  ;;  %4332 = vmatmul.mubr.bf16.vlgmr.msra.gmra.mxu1 %v4245_v20  ;;  %v9116_v20 = vld [vmem:[#allocation79_spill] sm:$0xff] }
0x1096   :  { %v4018_v37 = vadd.f32 %v4017_v24, %v3677_v55  ;;  %v4059_v28 = vadd.f32 %v4058_v26, %v3685_v56  ;;  %6583 = vmatpush3.bf16.msra.mxu0 %v7994_v54  ;;  %6605 = vmatpush3.bf16.msra.mxu1 %v9102_v31  ;;  %v9115_v55 = vld [vmem:[#allocation78_spill] sm:$0xff]  ;;  %v9117_v24 = vld [vmem:[#allocation80_spill] sm:$0xff]  ;;  %v9118_v31 = vld [vmem:[#allocation81_spill] sm:$0xff] }
0x1097   :  { %v4019_v34 = vpop.f32.mrf.mxu0  ;;  %v4060_v33 = vpop.f32.mrf.mxu1  ;;  %6584 = vmatprep.subr.bf16.mxu0 %v9103_v38  ;;  %6606 = vmatprep.subr.bf16.mxu1 %v9104_v41  ;;  %v3681_v38 = vrot.slane %v8357_v57, %v9113_v17 }
0x1098   :  { %v4232_v50 = vmax.f32 %v4018_v37, 0.0  ;;  %v4234_v48 = vmax.f32 %v4059_v28, 0.0  ;;  %v9119_v34 = vld [vmem:[#allocation82_spill] sm:$0xff]  ;;  %v3673_v33 = vrot.slane %v8357_v57, %v7618_v4 }
0x1099   :  { %v4020_v15 = vpop.f32.mrf.mxu0  ;;  %v4061_v52 = vpop.f32.mrf.mxu1 }
0x109a   :  { %v4248_v59 = vpack.c.bf16 %v4232_v50, %v4232_v50  ;;  %v4250_v0 = vpack.c.bf16 %v4234_v48, %v4234_v48  ;;  %6585 = vmatpush3.bf16.msra.mxu0 %v9105_v1  ;;  %6607 = vmatpush3.bf16.msra.mxu1 %v9106_v3  ;;  %v9120_v48 = vld [vmem:[#allocation83_spill] sm:$0xff]  ;;  %v9121_v15 = vld [vmem:[#allocation84_spill] sm:$0xff]  ;;  %v3693_v52 = vrot.slane %v8392_v7, %v7576_v46  ;;  %v9122_v3 = vld [vmem:[#allocation85_spill] sm:$0xff] }
0x109b   :  { %v8381_v6 = vpop.f32.mrf.mxu0  ;;  %v8383_v54 = vpop.f32.mrf.mxu1  ;;  %6586 = vmatprep.subr.bf16.mxu0 %v9107_v11  ;;  %6608 = vmatprep.subr.bf16.mxu1 %v9108_v8  ;;  %v4016_v57 = vadd.f32 %v8371_v21, %v3673_v33  ;;  %v4057_v11 = vadd.f32 %v8373_v35, %v3681_v38  ;;  %v9126_v35 = vld [vmem:[#allocation89_spill] sm:$0xff]  ;;  %v3697_v33 = vrot.slane %v8392_v7, %v7568_v44 }
0x109c   :  { %4371 = vmatprep.mubr.bf16.mxu0 %v4248_v59  ;;  %4411 = vmatprep.mubr.bf16.mxu1 %v4250_v0  ;;  %v3701_v59 = vrot.slane %v8392_v7, %v7579_v47  ;;  %v8463_v38 = vld [vmem:[#allocation5 + $0x2d0] sm:$0xff]  }
0x109d   :  { %v4099_v32 = vpop.f32.mrf.mxu0  ;;  %v4140_v40 = vpop.f32.mrf.mxu1 }
0x109e   :  { %6587 = vmatpush3.bf16.msra.mxu0 %v9109_v27  ;;  %6609 = vmatpush3.bf16.msra.mxu1 %v9110_v14  ;;  %v4100_v8 = vadd.f32 %v4099_v32, %v3693_v52  ;;  %v4141_v27 = vadd.f32 %v4140_v40, %v3701_v59  ;;  %v9123_v14 = vld [vmem:[#allocation86_spill] sm:$0xff]  ;;  %v9128_v40 = vld [vmem:[#allocation91_spill] sm:$0xff]  ;;  %v4139_v59 = vadd.f32 %v8383_v54, %v3697_v33  ;;  %v8567_v33 = vld [vmem:[#allocation5 + $0x3d0] sm:$0xff]  }
0x109f   :  { %v4101_v36 = vpop.f32.mrf.mxu0  ;;  %v4142_v22 = vpop.f32.mrf.mxu1  ;;  %6588 = vmatprep.subr.bf16.mxu0 %v9111_v29  ;;  %6610 = vmatprep.subr.bf16.mxu1 %v9112_v45  ;;  %v9124_v29 = vld [vmem:[#allocation87_spill] sm:$0xff]  ;;  %v9125_v45 = vld [vmem:[#allocation88_spill] sm:$0xff]  ;;  %9150 = vst [vmem:[#allocation23_spill] sm:$0xff] %v8567_v33 }
0x10a0   :  { %v4231_v36 = vmax.f32 %v4016_v57, 0.0  ;;  %v4233_v22 = vmax.f32 %v4057_v11, 0.0  ;;  %v4238_v21 = vmax.f32 %v4141_v27, 0.0  ;;  %v8475_v52 = vld [vmem:[#allocation5 + $0x248] sm:$0xff]   ;;  %v8490_v11 = vld [vmem:[#allocation5 + $0x240] sm:$0xff]   ;;  %v4237_v54 = vmax.f32 %v4139_v59, 0.0 }
0x10a1   :  { %v4102_v30 = vpop.f32.mrf.mxu0  ;;  %v4143_v23 = vpop.f32.mrf.mxu1  ;;  %v8487_v57 = vld [vmem:[#allocation5 + $0x288] sm:$0xff]   ;;  %v8496_v27 = vld [vmem:[#allocation5 + $0x200] sm:$0xff]  }
0x10a2   :  { %6589 = vmatpush3.bf16.msra.mxu0 %v9114_v42  ;;  %6611 = vmatpush3.bf16.msra.mxu1 %v9115_v55  ;;  %v4254_v32 = vpack.c.bf16 %v4238_v21, %v4238_v21  ;;  %v9132_v30 = vld [vmem:[#allocation95_spill] sm:$0xff]  ;;  %v9133_v23 = vld [vmem:[#allocation96_spill] sm:$0xff]  ;;  %v9138_v55 = vld [vmem:[#allocation101_spill] sm:$0xff] }
0x10a3   :  { %v8400_v56 = vpop.f32.mrf.mxu0  ;;  %v4220_v19 = vpop.f32.mrf.mxu1  ;;  %6590 = vmatprep.subr.bf16.mxu0 %v9116_v20  ;;  %6612 = vmatprep.subr.bf16.mxu1 %v9117_v24  ;;  %v9136_v42 = vld [vmem:[#allocation99_spill] sm:$0xff]  ;;  %v3689_v24 = vrot.slane %v8392_v7, %v7565_v43 }
0x10a4   :  { %v8404_v26 = vadd.f32 %v4220_v19, %v3713_v51  ;;  %v9129_v51 = vld [vmem:[#allocation92_spill] sm:$0xff]  ;;  %v9139_v19 = vld [vmem:[#allocation102_spill] sm:$0xff]  ;;  %v9140_v20 = vld [vmem:[#allocation103_spill] sm:$0xff] }
0x10a5   :  { %v8406_v37 = vpop.f32.mrf.mxu0  ;;  %v8408_v28 = vpop.f32.mrf.mxu1  ;;  %v8580_v59 = vld [vmem:[#allocation5 + $0x3c8] sm:$0xff]  }
0x10a6   :  { %6591 = vmatpush3.bf16.msra.mxu0 %v9118_v31  ;;  %6613 = vmatpush3.bf16.msra.mxu1 %v9119_v34  ;;  %v8455_v31 = vld [vmem:[#allocation5 + $0x298] sm:$0xff]   ;;  %v8458_v34 = vld [vmem:[#allocation5 + $0x250] sm:$0xff]   ;;  %9154 = vst [vmem:[#allocation27_spill] sm:$0xff] %v8580_v59 }
0x10a7   :  { %v4183_v41 = vpop.f32.mrf.mxu0  ;;  %v4224_v50 = vpop.f32.mrf.mxu1  ;;  %6592 = vmatprep.subr.bf16.mxu0 %v9120_v48  ;;  %6614 = vmatprep.subr.bf16.mxu1 %v9121_v15  ;;  %v4098_v48 = vadd.f32 %v8381_v6, %v3689_v24  ;;  %v8472_v15 = vld [vmem:[#allocation5 + $0x290] sm:$0xff]  }
0x10a8   :  { %v3709_v41 = vrot.slane %v8392_v7, %v7590_v60  ;;  %v3717_v50 = vrot.slane %v8392_v7, %v7593_v61  ;;  %v8564_v24 = vld [vmem:[#allocation5 + $0x350] sm:$0xff]  }
0x10a9   :  { %v4184_v0 = vpop.f32.mrf.mxu0  ;;  %v4225_v1 = vpop.f32.mrf.mxu1  ;;  %v4235_v6 = vmax.f32 %v4098_v48, 0.0  ;;  %9149 = vst [vmem:[#allocation22_spill] sm:$0xff] %v8564_v24  ;;  %v8574_v48 = vld [vmem:[#allocation5 + $0x390] sm:$0xff]  }
0x10aa   :  { %6593 = vmatpush3.bf16.msra.mxu0 %v9122_v3  ;;  %6615 = vmatpush3.bf16.msra.mxu1 %v8084_v5  ;;  %v4236_v5 = vmax.f32 %v4100_v8, 0.0  ;;  %v8479_v0 = vld [vmem:[#allocation5 + $0x2c8] sm:$0xff]   ;;  %v4182_v1 = vadd.f32 %v8406_v37, %v3709_v41  ;;  %v8493_v8 = vld [vmem:[#allocation5 + $0x2c0] sm:$0xff]   ;;  %v8570_v41 = vld [vmem:[#allocation5 + $0x310] sm:$0xff]   ;;  %9152 = vst [vmem:[#allocation25_spill] sm:$0xff] %v8574_v48 }
0x10ab   :  { %6594 = vmatprep.subr.bf16.mxu0 %v8089_v39  ;;  %6616 = vmatprep.subr.bf16.mxu1 %v8092_v10  ;;  %v4247_v39 = vpack.c.bf16 %v4231_v36, %v4231_v36  ;;  %v4249_v10 = vpack.c.bf16 %v4233_v22, %v4233_v22  ;;  %v8484_v3 = vld [vmem:[#allocation5 + $0x208] sm:$0xff]   ;;  %v8499_v36 = vld [vmem:[#allocation5 + $0x280] sm:$0xff]   ;;  %v8502_v22 = vld [vmem:[#allocation5 + $0x378] sm:$0xff]   ;;  %9151 = vst [vmem:[#allocation24_spill] sm:$0xff] %v8570_v41 }
0x10ac   :  { %v4240_v37 = vmax.f32 %v4182_v1, 0.0  ;;  %v8583_v1 = vld [vmem:[#allocation5 + $0x308] sm:$0xff]  }
0x10ad   :  { %9155 = vst [vmem:[#allocation28_spill] sm:$0xff] %v8583_v1 }
0x10ae   :  { %6595 = vmatpush3.bf16.msra.mxu0 %v8095_v53  ;;  %6617 = vmatpush3.bf16.msra.mxu1 %v9123_v14  ;;  %v4252_v53 = vpack.c.bf16 %v4236_v5, %v4236_v5  ;;  %v4251_v14 = vpack.c.bf16 %v4235_v6, %v4235_v6  ;;  %v4256_v5 = vpack.c.bf16 %v4240_v37, %v4240_v37  ;;  %v8586_v6 = vld [vmem:[#allocation5 + $0x388] sm:$0xff]   ;;  %v8593_v37 = vld [vmem:[#allocation5 + $0x3c0] sm:$0xff]  }
0x10af   :  { %6596 = vmatprep.subr.bf16.mxu0 %v9124_v29  ;;  %6618 = vmatprep.subr.bf16.mxu1 %v9125_v45  ;;  %v4253_v29 = vpack.c.bf16 %v4237_v54, %v4237_v54  ;;  %v8505_v45 = vld [vmem:[#allocation5 + $0x3f8] sm:$0xff]   ;;  %9156 = vst [vmem:[#allocation29_spill] sm:$0xff] %v8586_v6  ;;  %v4241_v54 = vmax.f32 %v8404_v26, 0.0  ;;  %9158 = vst [vmem:[#allocation31_spill] sm:$0xff] %v8593_v37 }
0x10b0   :  { %v7231_v26 = vld [vmem:[%s8824_s3 + $0x10] ss:$8 sps:$4 sm:$0xff]  }
0x10b2   :  { %6597 = vmatpush3.bf16.msra.mxu0 %v8107_v49  ;;  %6619 = vmatpush3.bf16.msra.mxu1 %v9126_v35  ;;  %v9127_v49 = vld [vmem:[#allocation90_spill] sm:$0xff] }
0x10b3   :  { %6626 = vmatprep.subr.bf16.mxu0 %v8113_v18  ;;  %6648 = vmatprep.subr.bf16.mxu1 %v8116_v13  ;;  %v9130_v18 = vld [vmem:[#allocation93_spill] sm:$0xff]  ;;  %v9131_v13 = vld [vmem:[#allocation94_spill] sm:$0xff] }
0x10b4   :  { %v8508_v35 = vld [vmem:[#allocation5 + $0x338] sm:$0xff]  }
0x10b5   :  { %4372 = vmatmul.mubr.bf16.vlgmr.msra.gmra.mxu0 %v4247_v39  ;;  %4412 = vmatmul.mubr.bf16.vlgmr.msra.gmra.mxu1 %v4249_v10  ;;  %v8511_v39 = vld [vmem:[#allocation5 + $0x3b8] sm:$0xff]   ;;  %v8514_v10 = vld [vmem:[#allocation5 + $0x370] sm:$0xff]  }
0x10b6   :  { %6627 = vmatpush3.bf16.msra.mxu0 %v8119_v62  ;;  %4451 = vmatprep.mubr.bf16.mxu0 %v4252_v53  ;;  %v9134_v62 = vld [vmem:[#allocation97_spill] sm:$0xff] }
0x10b7   :  { %6649 = vmatpush3.bf16.msra.mxu1 %v8122_v9  ;;  %4491 = vmatprep.mubr.bf16.mxu1 %v4254_v32  ;;  %v9135_v9 = vld [vmem:[#allocation98_spill] sm:$0xff]  ;;  %v8517_v53 = vld [vmem:[#allocation5 + $0x3f0] sm:$0xff]  }
0x10b8   :  { %6628 = vmatprep.subr.bf16.mxu0 %v8125_v25  ;;  %6650 = vmatprep.subr.bf16.mxu1 %v9127_v49  ;;  %v9137_v25 = vld [vmem:[#allocation100_spill] sm:$0xff] }
0x10b9   :  { %v8520_v32 = vld [vmem:[#allocation5 + $0x330] sm:$0xff]  }
0x10ba   :  { %6629 = vmatpush3.bf16.msra.mxu0 %v9128_v40  ;;  %v8523_v49 = vld [vmem:[#allocation5 + $0x3b0] sm:$0xff]   ;;  %v8526_v40 = vld [vmem:[#allocation5 + $0x368] sm:$0xff]  }
0x10bb   :  { %6651 = vmatpush3.bf16.msra.mxu1 %v9129_v51  ;;  %6630 = vmatprep.subr.bf16.mxu0 %v9130_v18  ;;  %v8529_v51 = vld [vmem:[#allocation5 + $0x3e8] sm:$0xff]  }
0x10bc   :  { %6652 = vmatprep.subr.bf16.mxu1 %v9131_v13  ;;  %v8532_v18 = vld [vmem:[#allocation5 + $0x328] sm:$0xff]  }
0x10bd   :  { %v8535_v13 = vld [vmem:[#allocation5 + $0x3a8] sm:$0xff]  }
0x10be   :  { %6631 = vmatpush3.bf16.msra.mxu0 %v9132_v30  ;;  %v8538_v30 = vld [vmem:[#allocation5 + $0x360] sm:$0xff]  }
0x10bf   :  { %6653 = vmatpush3.bf16.msra.mxu1 %v9133_v23  ;;  %6632 = vmatprep.subr.bf16.mxu0 %v9134_v62  ;;  %9141 = vst [vmem:[#allocation14_spill] sm:$0xff] %v8538_v30  ;;  %v8541_v23 = vld [vmem:[#allocation5 + $0x3e0] sm:$0xff]  }
0x10c0   :  { %6654 = vmatprep.subr.bf16.mxu1 %v9135_v9  ;;  %9142 = vst [vmem:[#allocation15_spill] sm:$0xff] %v8541_v23  ;;  %v8544_v62 = vld [vmem:[#allocation5 + $0x320] sm:$0xff]  }
0x10c1   :  { %9143 = vst [vmem:[#allocation16_spill] sm:$0xff] %v8544_v62  ;;  %v8547_v9 = vld [vmem:[#allocation5 + $0x3a0] sm:$0xff]  }
0x10c2   :  { %6633 = vmatpush3.bf16.msra.mxu0 %v9136_v42  ;;  %9144 = vst [vmem:[#allocation17_spill] sm:$0xff] %v8547_v9  ;;  %v8550_v42 = vld [vmem:[#allocation5 + $0x358] sm:$0xff]  }
0x10c3   :  { %6655 = vmatpush3.bf16.msra.mxu1 %v9137_v25  ;;  %6634 = vmatprep.subr.bf16.mxu0 %v9138_v55  ;;  %9145 = vst [vmem:[#allocation18_spill] sm:$0xff] %v8550_v42  ;;  %v8553_v25 = vld [vmem:[#allocation5 + $0x3d8] sm:$0xff]  }
0x10c4   :  { %6656 = vmatprep.subr.bf16.mxu1 %v9139_v19  ;;  %9146 = vst [vmem:[#allocation19_spill] sm:$0xff] %v8553_v25  ;;  %v8556_v55 = vld [vmem:[#allocation5 + $0x318] sm:$0xff]   ;;  %v3705_v19 = vrot.slane %v8392_v7, %v7618_v4  ;;  %v8577_v7 = vld [vmem:[#allocation5 + $0x348] sm:$0xff]  }
0x10c5   :  { %9147 = vst [vmem:[#allocation20_spill] sm:$0xff] %v8556_v55  ;;  %9153 = vst [vmem:[#allocation26_spill] sm:$0xff] %v8577_v7 }
0x10c6   :  { %6635 = vmatpush3.bf16.msra.mxu0 %v9140_v20  ;;  %v8561_v20 = vld [vmem:[#allocation5 + $0x398] sm:$0xff]  }
0x10c7   :  { %6657 = vmatpush3.bf16.msra.mxu1 %v8455_v31  ;;  %6636 = vmatprep.subr.bf16.mxu0 %v8458_v34  ;;  %9148 = vst [vmem:[#allocation21_spill] sm:$0xff] %v8561_v20 }
0x10c8   :  { %6658 = vmatprep.subr.bf16.mxu1 %v8463_v38 }
0x10ca   :  { %6637 = vmatpush3.bf16.msra.mxu0 %v8181_v12  ;;  %v4223_v12 = vadd.f32 %v8408_v28, %v3717_v50  ;;  %v4180_v50 = vadd.f32 %v8400_v56, %v3705_v19  ;;  %v8589_v56 = vld [vmem:[#allocation5 + $0x340] sm:$0xff]  }
0x10cb   :  { %6659 = vmatpush3.bf16.msra.mxu1 %v8472_v15  ;;  %6638 = vmatprep.subr.bf16.mxu0 %v8475_v52  ;;  %9157 = vst [vmem:[#allocation30_spill] sm:$0xff] %v8589_v56  ;;  %v7232_v19 = vld [vmem:[%s8824_s3 + $0x4] ss:$8 sps:$4 sm:$0xff]  }
0x10cc   :  { %6660 = vmatprep.subr.bf16.mxu1 %v8479_v0  ;;  %v4242_v28 = vmax.f32 %v4223_v12, 0.0  ;;  %v4239_v12 = vmax.f32 %v4180_v50, 0.0  ;;  %v7233_v50 = vld [vmem:[%s8824_s3] ss:$8 sps:$4 sm:$0xff]  }
0x10ce   :  { %6639 = vmatpush3.bf16.msra.mxu0 %v8484_v3  ;;  %v4258_v21 = vpack.c.bf16 %v4242_v28, %v4242_v28  ;;  %v8596_v28 = vld [vmem:[#allocation5 + $0x300] sm:$0xff]  }
0x10cf   :  { %6661 = vmatpush3.bf16.msra.mxu1 %v8487_v57  ;;  %6640 = vmatprep.subr.bf16.mxu0 %v8490_v11  ;;  %9159 = vst [vmem:[#allocation32_spill] sm:$0xff] %v8596_v28 }
0x10d0   :  { %6662 = vmatprep.subr.bf16.mxu1 %v8493_v8 }
0x10d2   :  { %6641 = vmatpush3.bf16.msra.mxu0 %v8496_v27 }
0x10d3   :  { %6663 = vmatpush3.bf16.msra.mxu1 %v8499_v36  ;;  %6670 = vmatprep.subr.bf16.mxu0 %v8502_v22 }
0x10d4   :  { %6692 = vmatprep.subr.bf16.mxu1 %v8505_v45 }
0x10d5   :  { %4452 = vmatmul.mubr.bf16.vlgmr.msra.gmra.mxu0 %v4251_v14  ;;  %v4255_v14 = vpack.c.bf16 %v4239_v12, %v4239_v12 }
0x10d6   :  { %4492 = vmatmul.mubr.bf16.vlgmr.msra.gmra.mxu1 %v4253_v29  ;;  %6671 = vmatpush3.bf16.msra.mxu0 %v8508_v35  ;;  %v8599_v29 = vld [vmem:[#allocation5 + $0x380] sm:$0xff]  }
0x10d7   :  { %4531 = vmatprep.mubr.bf16.mxu0 %v4256_v5  ;;  %6693 = vmatpush3.bf16.msra.mxu1 %v8511_v39  ;;  %9160 = vst [vmem:[#allocation33_spill] sm:$0xff] %v8599_v29  ;;  %v7230_v5 = vld [vmem:[%s8824_s3 + $0x14] ss:$8 sps:$4 sm:$0xff]  }
0x10d8   :  { %4571 = vmatprep.mubr.bf16.mxu1 %v4258_v21  ;;  %6672 = vmatprep.subr.bf16.mxu0 %v8514_v10  ;;  %v4257_v21 = vpack.c.bf16 %v4241_v54, %v4241_v54 }
0x10d9   :  { %6694 = vmatprep.subr.bf16.mxu1 %v8517_v53 }
0x10da   :  { %6673 = vmatpush3.bf16.msra.mxu0 %v8520_v32 }
0x10db   :  { %6695 = vmatpush3.bf16.msra.mxu1 %v8523_v49  ;;  %6674 = vmatprep.subr.bf16.mxu0 %v8526_v40 }
0x10dc   :  { %6696 = vmatprep.subr.bf16.mxu1 %v8529_v51 }
0x10de   :  { %6675 = vmatpush3.bf16.msra.mxu0 %v8532_v18 }
0x10df   :  { %6697 = vmatpush3.bf16.msra.mxu1 %v8535_v13  ;;  %6676 = vmatprep.subr.bf16.mxu0 %v8538_v30 }
0x10e0   :  { %6698 = vmatprep.subr.bf16.mxu1 %v8541_v23 }
0x10e2   :  { %6677 = vmatpush3.bf16.msra.mxu0 %v8544_v62 }
0x10e3   :  { %6699 = vmatpush3.bf16.msra.mxu1 %v8547_v9  ;;  %6678 = vmatprep.subr.bf16.mxu0 %v8550_v42 }
0x10e4   :  { %6700 = vmatprep.subr.bf16.mxu1 %v8553_v25 }
0x10e6   :  { %6679 = vmatpush3.bf16.msra.mxu0 %v8556_v55 }
0x10e7   :  { %6701 = vmatpush3.bf16.msra.mxu1 %v8561_v20  ;;  %6680 = vmatprep.subr.bf16.mxu0 %v8564_v24 }
0x10e8   :  { %6702 = vmatprep.subr.bf16.mxu1 %v8567_v33 }
0x10ea   :  { %6681 = vmatpush3.bf16.msra.mxu0 %v8570_v41 }
0x10eb   :  { %6703 = vmatpush3.bf16.msra.mxu1 %v8574_v48  ;;  %6682 = vmatprep.subr.bf16.mxu0 %v8577_v7 }
0x10ec   :  { %6704 = vmatprep.subr.bf16.mxu1 %v8580_v59 }
0x10ee   :  { %6683 = vmatpush3.bf16.msra.mxu0 %v8583_v1 }
0x10ef   :  { %6705 = vmatpush3.bf16.msra.mxu1 %v8586_v6  ;;  %6684 = vmatprep.subr.bf16.mxu0 %v8589_v56 }
0x10f0   :  { %6706 = vmatprep.subr.bf16.mxu1 %v8593_v37 }
0x10f2   :  { %6685 = vmatpush3.bf16.msra.mxu0 %v8596_v28 }
0x10f3   :  { %6707 = vmatpush3.bf16.msra.mxu1 %v8599_v29  ;;  %4638 = vmatprep.subr.bf16.mxu0 %v7230_v5 }
0x10f5   :  { %4532 = vmatmul.mubr.bf16.vlgmr.msra.gmra.mxu0 %v4255_v14 }
0x10f6   :  { %4572 = vmatmul.mubr.bf16.vlgmr.msra.gmra.mxu1 %v4257_v21  ;;  %4639 = vmatpush1.bf16.msra.mxu0 %v7231_v26 }
0x10f7   :  { %4640 = vmatprep.subr.bf16.mxu0 %v7232_v19  ;;  %4658 = vmatprep.mubr.bf16.mxu0 %v8979_v58 }
0x10f8   :  { %5053 = vmatprep.mubr.bf16.mxu1 %v8979_v58 }
0x10fa   :  { %4641 = vmatpush1.bf16.msra.mxu0 %v7233_v50 }
0x1155   :  { %v6554_v12 = vpop.f32.mrf.mxu0  ;;  %v6576_v54 = vpop.f32.mrf.mxu1 }
0x1157   :  { %v6555_v14 = vpop.f32.mrf.mxu0  ;;  %v6577_v5 = vpop.f32.mrf.mxu1 }
0x1158   :  { %v6556_v21 = vadd.f32 %v6555_v14, %v6554_v12  ;;  %v6578_v26 = vadd.f32 %v6577_v5, %v6576_v54 }
0x1159   :  { %v6557_v63 = vpop.f32.mrf.mxu0  ;;  %v6579_v29 = vpop.f32.mrf.mxu1 }
0x115a   :  { %v4334_v28 = vadd.f32 %v6578_v26, %v6556_v21 }
0x115b   :  { %v6558_v37 = vpop.f32.mrf.mxu0  ;;  %v6580_v19 = vpop.f32.mrf.mxu1 }
0x1175   :  { %v6598_v56 = vpop.f32.mrf.mxu0  ;;  %v6620_v6 = vpop.f32.mrf.mxu1 }
0x1177   :  { %v6599_v1 = vpop.f32.mrf.mxu0  ;;  %v6621_v59 = vpop.f32.mrf.mxu1 }
0x1178   :  { %v6600_v29 = vadd.f32 %v6599_v1, %v6598_v56  ;;  %v6622_v37 = vadd.f32 %v6621_v59, %v6620_v6 }
0x1179   :  { %v6601_v7 = vpop.f32.mrf.mxu0  ;;  %v6623_v48 = vpop.f32.mrf.mxu1 }
0x117a   :  { %v4374_v14 = vadd.f32 %v6600_v29, %v4334_v28 }
0x117b   :  { %v6602_v41 = vpop.f32.mrf.mxu0  ;;  %v6624_v33 = vpop.f32.mrf.mxu1 }
0x117c   :  { %v4414_v21 = vadd.f32 %v6622_v37, %v4374_v14  ;;  %v6119_v14 = vld [vmem:[%s8829_s8 + $0x16] ss:$0 sm:$0xff] }
0x1195   :  { %v6642_v50 = vpop.f32.mrf.mxu0 }
0x1196   :  { %v6664_v24 = vpop.f32.mrf.mxu1 }
0x1197   :  { %v6643_v20 = vpop.f32.mrf.mxu0 }
0x1198   :  { %v6665_v55 = vpop.f32.mrf.mxu1  ;;  %v6644_v5 = vadd.f32 %v6643_v20, %v6642_v50 }
0x1199   :  { %v6645_v25 = vpop.f32.mrf.mxu0  ;;  %v6666_v42 = vadd.f32 %v6665_v55, %v6664_v24 }
0x119a   :  { %v6667_v12 = vpop.f32.mrf.mxu1  ;;  %v4454_v26 = vadd.f32 %v6644_v5, %v4414_v21  ;;  %v6120_v5 = vld [vmem:[%s8829_s8 + $0x17] ss:$0 sm:$0xff] }
0x119b   :  { %v6646_v54 = vpop.f32.mrf.mxu0 }
0x119c   :  { %v6668_v63 = vpop.f32.mrf.mxu1  ;;  %v4494_v41 = vadd.f32 %v6666_v42, %v4454_v26  ;;  %v4586_v54 = vpop.permute.xlu0 %4585 }
0x11b5   :  { %v6686_v19 = vpop.f32.mrf.mxu0 }
0x11b6   :  { %v6708_v7 = vpop.f32.mrf.mxu1 }
0x11b7   :  { %v6687_v48 = vpop.f32.mrf.mxu0 }
0x11b8   :  { %v6688_v33 = vadd.f32 %v6687_v48, %v6686_v19  ;;  %v6709_v9 = vpop.f32.mrf.mxu1 }
0x11b9   :  { %v6689_v62 = vpop.f32.mrf.mxu0  ;;  %v6710_v30 = vadd.f32 %v6709_v9, %v6708_v7 }
0x11ba   :  { %v4534_v23 = vadd.f32 %v6688_v33, %v4494_v41  ;;  %v6711_v25 = vpop.f32.mrf.mxu1 }
0x11bb   :  { %v6690_v12 = vpop.f32.mrf.mxu0 }
0x11bc   :  { %v6712_v63 = vpop.f32.mrf.mxu1  ;;  %v4574_v1 = vadd.f32 %v6710_v30, %v4534_v23  ;;  %v6122_v30 = vld [vmem:[%s8829_s8 + $0x18] ss:$0 sm:$0xff] }
0x11be   :  { %v4588_v56 = vadd.f32 %v4586_v54, %v4574_v1 }
0x11c0   :  { %v4590_v59 = vrot.slane %v4588_v56, 6 }
0x11c2   :  { %4591 = vrot.lane.b32.xlu1 %v4590_v59, %s7386_s13  ;;  %s5817_s13 = sshll.u32 %s7394_s25, 4  ;;  %s5818_s13 = int_to_ptr.vmem [resolvable:$true] %s5817_s13 }
0x11c3   :  { %s7358_s26 = scalar_lea.vmem %s5818_s13, 32  ;;  %p7363_p11 = scmp.lt.s32.totalorder %s5818_s13, %s5818_s13 }
0x11c4   :  { %p7359_p10 = scmp.ne.s32.totalorder %s5818_s13, %s7358_s26  ;;  %p7364_p12 = scmp.lt.s32.totalorder %s7358_s26, %s7358_s26 }
0x11c6   :  { %p7365_p13 = por %p7364_p12, %p7363_p11 }
0x11c8   :  { %p7366_p0 = pnand %p7365_p13, %p7359_p10 }
0x1234   :  { %v4592_v20 = vpop.permute.xlu1 %4591 }
0x1235   :  { %v4594_v55 = vadd.f32 %v4592_v20, %v8288_v2 }
0x1237   :  { %v4597_v24 = vsel %vm3561_vm6, %v4594_v55, 0.0 }
0x1238   :  { %4598 = vadd.xlane.f32.xlu1 %v4597_v24 }
0x12c1   :  { %v4599_v42 = vpop.xlane.xlu1 %4598 }
0x12c2   :  { %v4600_v6 = vmul.f32 0.03125, %v4599_v42 }
0x12c4   :  { %v4601_v62 = vsub.f32 %v4594_v55, %v4600_v6 }
0x12c6   :  { %v4602_v28 = vmul.f32 %v4601_v62, %v4601_v62 }
0x12c8   :  { %v4603_v9 = vsel %vm3561_vm6, %v4602_v28, 0.0 }
0x12c9   :  { %4604 = vadd.xlane.f32.xlu0 %v4603_v9 }
0x12df   :  { %4672 = vrot.lane.b32.xlu0 %v6122_v30, %s7393_s10 }
0x1352   :  { %v4605_v23 = vpop.xlane.xlu0 %4604 }
0x1353   :  { %v4606_v50 = vmul.f32 0.03125, %v4605_v23 }
0x1355   :  { %v4607_v29 = vadd.f32 1e-05, %v4606_v50  ;;  %v6123_v50 = vld [vmem:[%s8829_s8 + $0x1a] ss:$0 sm:$0xff] }
0x1356   :  { %v4673_v48 = vpop.permute.xlu0 %4672 }
0x1357   :  { %7090 = vrsqrt.f32 %v4607_v29 }
0x1364   :  { %v7091_v2 = vpop.eup %7090 }
0x1365   :  { %v4609_v37 = vmul.f32 %v7091_v2, %v4601_v62  ;;  %v9161_v62 = vrot.slane %v8272_v16, 6  ;;  %v6124_v2 = vld [vmem:[%s8829_s8 + $0x1b] ss:$0 sm:$0xff] }
0x1367   :  { %v4614_v21 = vmul.f32 %v6119_v14, %v4609_v37 }
0x1369   :  { %v4619_v26 = vadd.f32 %v6120_v5, %v4614_v21 }
0x136b   :  { %v4620_v19 = vpack.c.bf16 %v4619_v26, %v4619_v26 }
0x136d   :  { %v4622_v7 = vrot.slane %v4620_v19, 1 }
0x136f   :  { %6121 = vmatmul.mubr.msk.bf16.vlgmr.msra.gmra.mxu0 %vm266_vm4, %v4622_v7 }
0x1370   :  { %5094 = vmatprep.mubr.bf16.mxu0 %v8979_v58 }
0x142f   :  { %v4660_v41 = vpop.f32.mrf.mxu0 }
0x1430   :  { %v4675_v33 = vadd.f32 %v4673_v48, %v4660_v41 }
0x1431   :  { %v4662_v25 = vpop.f32.mrf.mxu0 }
0x1432   :  { %v4677_v12 = vrot.slane %v4675_v33, 6  ;;  %v4753_v33 = vld [vmem:[#allocation2 + $0x380] sm:$0xff] }
0x1433   :  { %v4663_v54 = vpop.f32.mrf.mxu0  ;;  %v4761_v25 = vld [vmem:[#allocation2 + $0x3c0] sm:$0xff] }
0x1434   :  { %4678 = vrot.lane.b32.xlu1 %v4677_v12, %s7392_s5  ;;  %v4754_v12 = vld [vmem:[#allocation2 + $0x388] sm:$0xff]  ;;  %v6146_v54 = vcombine.high %v4753_v33, %v4761_v25 }
0x1435   :  { %v4664_v63 = vpop.f32.mrf.mxu0 }
0x1436   :  { %v4762_v63 = vld [vmem:[#allocation2 + $0x3c8] sm:$0xff]  ;;  %5033 = vmatprep.subr.bf16.mxu1 %v6146_v54  ;;  %v4739_v54 = vld [vmem:[#allocation2 + $0x310] sm:$0xff] }
0x14a6   :  { %v4679_v1 = vpop.permute.xlu1 %4678 }
0x14a7   :  { %v4681_v56 = vadd.f32 %v4679_v1, %v4619_v26  ;;  %v6145_v1 = vcombine.low %v4753_v33, %v4761_v25  ;;  %v6126_v33 = vld [vmem:[%s8829_s8 + $0x1d] ss:$0 sm:$0xff] }
0x14a9   :  { %v4684_v59 = vsel %vm3561_vm6, %v4681_v56, 0.0  ;;  %5034 = vmatpush1.bf16.msra.mxu1 %v6145_v1  ;;  %v4740_v1 = vld [vmem:[#allocation2 + $0x318] sm:$0xff] }
0x14aa   :  { %4685 = vadd.xlane.f32.xlu1 %v4684_v59  ;;  %v6148_v59 = vcombine.high %v4754_v12, %v4762_v63 }
0x14ac   :  { %5074 = vmatprep.subr.bf16.mxu0 %v6148_v59 }
0x1533   :  { %v4686_v20 = vpop.xlane.xlu1 %4685 }
0x1534   :  { %v4687_v55 = vmul.f32 0.03125, %v4686_v20  ;;  %v4737_v20 = vld [vmem:[#allocation2 + $0x300] sm:$0xff] }
0x1536   :  { %v4688_v24 = vsub.f32 %v4681_v56, %v4687_v55  ;;  %v6147_v56 = vcombine.low %v4754_v12, %v4762_v63  ;;  %v4745_v55 = vld [vmem:[#allocation2 + $0x340] sm:$0xff]  ;;  %v4747_v63 = vld [vmem:[#allocation2 + $0x350] sm:$0xff] }
0x1538   :  { %v4689_v42 = vmul.f32 %v4688_v24, %v4688_v24  ;;  %5075 = vmatpush1.bf16.msra.mxu0 %v6147_v56  ;;  %v4748_v56 = vld [vmem:[#allocation2 + $0x358] sm:$0xff] }
0x153a   :  { %v4690_v6 = vsel %vm3561_vm6, %v4689_v42, 0.0  ;;  %v6130_v42 = vcombine.high %v4737_v20, %v4745_v55 }
0x153b   :  { %4691 = vadd.xlane.f32.xlu0 %v4690_v6  ;;  %v4746_v6 = vld [vmem:[#allocation2 + $0x348] sm:$0xff] }
0x153c   :  { %5035 = vmatprep.subr.bf16.mxu1 %v6130_v42  ;;  %v4757_v42 = vld [vmem:[#allocation2 + $0x3a0] sm:$0xff] }
0x1551   :  { %4707 = vrot.lane.b32.xlu0 %v9161_v62, %s7393_s10  ;;  %v6129_v62 = vcombine.low %v4737_v20, %v4745_v55  ;;  %v6134_v55 = vcombine.high %v4739_v54, %v4747_v63 }
0x1553   :  { %5036 = vmatpush1.bf16.msra.mxu1 %v6129_v62  ;;  %v4766_v62 = vld [vmem:[#allocation2 + $0x3e8] sm:$0xff] }
0x15c4   :  { %v4692_v28 = vpop.xlane.xlu0 %4691 }
0x15c5   :  { %v4693_v9 = vmul.f32 0.03125, %v4692_v28 }
0x15c7   :  { %v4694_v30 = vadd.f32 1e-05, %v4693_v9 }
0x15c8   :  { %v4708_v5 = vpop.permute.xlu0 %4707 }
0x15c9   :  { %7092 = vrsqrt.f32 %v4694_v30  ;;  %v4755_v30 = vld [vmem:[#allocation2 + $0x390] sm:$0xff] }
0x15d6   :  { %v7093_v23 = vpop.eup %7092 }
0x15d7   :  { %v4696_v29 = vmul.f32 %v7093_v23, %v4688_v24  ;;  %v4738_v24 = vld [vmem:[#allocation2 + $0x308] sm:$0xff]  ;;  %v4763_v23 = vld [vmem:[#allocation2 + $0x3d0] sm:$0xff] }
0x15d8   :  { %v6131_v28 = vcombine.low %v4738_v24, %v4746_v6  ;;  %v6132_v9 = vcombine.high %v4738_v24, %v4746_v6  ;;  %v6136_v24 = vcombine.high %v4740_v1, %v4748_v56  ;;  %v4758_v6 = vld [vmem:[#allocation2 + $0x3a8] sm:$0xff] }
0x15d9   :  { %v4701_v14 = vmul.f32 %v6123_v50, %v4696_v29  ;;  %v4756_v50 = vld [vmem:[#allocation2 + $0x398] sm:$0xff]  ;;  %v6149_v29 = vcombine.low %v4755_v30, %v4763_v23 }
0x15da   :  { %5076 = vmatprep.subr.bf16.mxu0 %v6132_v9  ;;  %v6135_v9 = vcombine.low %v4740_v1, %v4748_v56  ;;  %v4743_v1 = vld [vmem:[#allocation2 + $0x330] sm:$0xff] }
0x15db   :  { %v4706_v37 = vadd.f32 %v6124_v2, %v4701_v14  ;;  %5077 = vmatpush1.bf16.msra.mxu0 %v6131_v28  ;;  %v6150_v2 = vcombine.high %v4755_v30, %v4763_v23  ;;  %v4764_v14 = vld [vmem:[#allocation2 + $0x3d8] sm:$0xff]  ;;  %v6133_v28 = vcombine.low %v4739_v54, %v4747_v63  ;;  %v6156_v23 = vcombine.high %v4758_v6, %v4766_v62  ;;  %v4751_v56 = vld [vmem:[#allocation2 + $0x370] sm:$0xff] }
0x15dd   :  { %v4710_v21 = vadd.f32 %v4708_v5, %v4706_v37  ;;  %v6151_v37 = vcombine.low %v4756_v50, %v4764_v14  ;;  %v6152_v5 = vcombine.high %v4756_v50, %v4764_v14  ;;  %5115 = vmatprep.subr.bf16.mxu1 %v6150_v2  ;;  %v4741_v50 = vld [vmem:[#allocation2 + $0x320] sm:$0xff]  ;;  %v4742_v14 = vld [vmem:[#allocation2 + $0x328] sm:$0xff] }
0x15de   :  { %v4749_v2 = vld [vmem:[#allocation2 + $0x360] sm:$0xff] }
0x15df   :  { %v4713_v16 = vsel %vm3561_vm6, %v4710_v21, 0.0  ;;  %5156 = vmatprep.subr.bf16.mxu0 %v6152_v5  ;;  %v4750_v5 = vld [vmem:[#allocation2 + $0x368] sm:$0xff] }
0x15e0   :  { %4714 = vadd.xlane.f32.xlu1 %v4713_v16 }
0x1669   :  { %v4715_v26 = vpop.xlane.xlu1 %4714 }
0x166a   :  { %v4716_v19 = vmul.f32 0.03125, %v4715_v26 }
0x166c   :  { %v4717_v7 = vsub.f32 %v4710_v21, %v4716_v19 }
0x166e   :  { %v4718_v48 = vmul.f32 %v4717_v7, %v4717_v7 }
0x1670   :  { %v4719_v41 = vsel %vm3561_vm6, %v4718_v48, 0.0  ;;  %v6125_v48 = vld [vmem:[%s8829_s8 + $0x1c] ss:$0 sm:$0xff] }
0x1671   :  { %4720 = vadd.xlane.f32.xlu1 %v4719_v41 }
0x16fa   :  { %v4721_v21 = vpop.xlane.xlu1 %4720 }
0x16fb   :  { %v4722_v16 = vmul.f32 0.03125, %v4721_v21 }
0x16fd   :  { %v4723_v26 = vadd.f32 1e-05, %v4722_v16  ;;  %v6155_v16 = vcombine.low %v4758_v6, %v4766_v62  ;;  %v6141_v62 = vcombine.low %v4743_v1, %v4751_v56 }
0x16ff   :  { %7094 = vrsqrt.f32 %v4723_v26  ;;  %v4759_v26 = vld [vmem:[#allocation2 + $0x3b0] sm:$0xff] }
0x170c   :  { %v7095_v19 = vpop.eup %7094 }
0x170d   :  { %v4725_v41 = vmul.f32 %v7095_v19, %v4717_v7  ;;  %v4765_v7 = vld [vmem:[#allocation2 + $0x3e0] sm:$0xff]  ;;  %v4767_v19 = vld [vmem:[#allocation2 + $0x3f0] sm:$0xff] }
0x170e   :  { %v6154_v30 = vcombine.high %v4757_v42, %v4765_v7  ;;  %v6153_v21 = vcombine.low %v4757_v42, %v4765_v7  ;;  %v6158_v54 = vcombine.high %v4759_v26, %v4767_v19  ;;  %v6142_v7 = vcombine.high %v4743_v1, %v4751_v56  ;;  %v7255_v1 = vld [vmem:[#allocation5 + $0xd0] sm:$0xff]  }
0x170f   :  { %v4730_v25 = vmul.f32 %v6125_v48, %v4725_v41  ;;  %v4760_v48 = vld [vmem:[#allocation2 + $0x3b8] sm:$0xff]  ;;  %v7256_v56 = vld [vmem:[#allocation5 + $0x10] sm:$0xff]  }
0x1710   :  { %v4768_v41 = vld [vmem:[#allocation2 + $0x3f8] sm:$0xff] }
0x1711   :  { %v8652_v12 = vadd.f32 %v6126_v33, %v4730_v25  ;;  %v6137_v33 = vcombine.low %v4741_v50, %v4749_v2  ;;  %v6139_v25 = vcombine.low %v4742_v14, %v4750_v5  ;;  %v6160_v63 = vcombine.high %v4760_v48, %v4768_v41 }
0x1712   :  { %v6159_v42 = vcombine.low %v4760_v48, %v4768_v41  ;;  %v7249_v48 = vld [vmem:[#allocation5 + $0xa0] sm:$0xff]   ;;  %v7250_v41 = vld [vmem:[#allocation5 + $0x58] sm:$0xff]  }
0x1713   :  { %v4769_v59 = vpack.c.bf16 %v8652_v12, %v8652_v12 }
0x1715   :  { %v8656_v20 = vrot.slane %v4769_v59, 1  ;;  %v4744_v59 = vld [vmem:[#allocation2 + $0x338] sm:$0xff] }
0x1717   :  { %6161 = vmatmul.mubr.msk.bf16.vlgmr.msra.gmra.mxu1 %vm266_vm4, %v8656_v20  ;;  %6162 = vmatmul.mubr.msk.bf16.vlgmr.msra.gmra.mxu0 %vm266_vm4, %v8656_v20 }
0x1718   :  { %5116 = vmatpush1.bf16.msra.mxu1 %v6149_v29  ;;  %5157 = vmatpush1.bf16.msra.mxu0 %v6151_v37  ;;  %v6138_v29 = vcombine.high %v4741_v50, %v4749_v2  ;;  %v6140_v37 = vcombine.high %v4742_v14, %v4750_v5  ;;  %v7237_v50 = vld [vmem:[#allocation5 + $0xb8] sm:$0xff]   ;;  %v7238_v2 = vld [vmem:[#allocation5 + $0x70] sm:$0xff]  }
0x1719   :  { %5117 = vmatprep.subr.bf16.mxu1 %v6134_v55  ;;  %5158 = vmatprep.subr.bf16.mxu0 %v6136_v24  ;;  %v4752_v55 = vld [vmem:[#allocation2 + $0x378] sm:$0xff]  ;;  %v6157_v24 = vcombine.low %v4759_v26, %v4767_v19  ;;  %v7239_v14 = vld [vmem:[#allocation5 + $0xf0] sm:$0xff]   ;;  %v7247_v26 = vld [vmem:[#allocation5 + $0xe0] sm:$0xff]  }
0x171a   :  { %5135 = vmatprep.mubr.bf16.mxu1 %v8979_v58  ;;  %5176 = vmatprep.mubr.bf16.mxu0 %v8979_v58  ;;  %v6144_v6 = vcombine.high %v4744_v59, %v4752_v55  ;;  %v7241_v5 = vld [vmem:[#allocation5 + $0xb0] sm:$0xff]   ;;  %v7248_v19 = vld [vmem:[#allocation5 + $0x20] sm:$0xff]  }
0x171c   :  { %5118 = vmatpush1.bf16.msra.mxu1 %v6133_v28  ;;  %5159 = vmatpush1.bf16.msra.mxu0 %v6135_v9  ;;  %v6143_v28 = vcombine.low %v4744_v59, %v4752_v55  ;;  %v7234_v9 = vld [vmem:[#allocation5 + $0x78] sm:$0xff]   ;;  %v7257_v59 = vld [vmem:[#allocation5 + $0x90] sm:$0xff]   ;;  %v7258_v55 = vld [vmem:[#allocation5 + $0x48] sm:$0xff]  }
0x171d   :  { %5197 = vmatprep.subr.bf16.mxu1 %v6154_v30  ;;  %5238 = vmatprep.subr.bf16.mxu0 %v6156_v23  ;;  %v7235_v30 = vld [vmem:[#allocation5 + $0xf8] sm:$0xff]  }
0x171e   :  { %v7236_v23 = vld [vmem:[#allocation5 + $0x38] sm:$0xff]  }
0x171f   :  { %6163 = vmatmul.mubr.msk.bf16.vlgmr.msra.gmra.mxu1 %vm266_vm4, %v8656_v20  ;;  %6164 = vmatmul.mubr.msk.bf16.vlgmr.msra.gmra.mxu0 %vm266_vm4, %v8656_v20 }
0x1720   :  { %5198 = vmatpush1.bf16.msra.mxu1 %v6153_v21  ;;  %5239 = vmatpush1.bf16.msra.mxu0 %v6155_v16  ;;  %v7242_v21 = vld [vmem:[#allocation5 + $0x68] sm:$0xff]  }
0x1721   :  { %5199 = vmatprep.subr.bf16.mxu1 %v6138_v29  ;;  %5240 = vmatprep.subr.bf16.mxu0 %v6140_v37  ;;  %v7243_v16 = vld [vmem:[#allocation5 + $0xe8] sm:$0xff]  }
0x1722   :  { %5217 = vmatprep.mubr.bf16.mxu1 %v8979_v58  ;;  %5258 = vmatprep.mubr.bf16.mxu0 %v8979_v58  ;;  %v7244_v29 = vld [vmem:[#allocation5 + $0x28] sm:$0xff]  }
0x1723   :  { %v7245_v37 = vld [vmem:[#allocation5 + $0xa8] sm:$0xff]  }
0x1724   :  { %5200 = vmatpush1.bf16.msra.mxu1 %v6137_v33  ;;  %5241 = vmatpush1.bf16.msra.mxu0 %v6139_v25  ;;  %v7251_v33 = vld [vmem:[#allocation5 + $0xd8] sm:$0xff]  }
0x1725   :  { %5279 = vmatprep.subr.bf16.mxu1 %v6158_v54  ;;  %5320 = vmatprep.subr.bf16.mxu0 %v6160_v63  ;;  %v7252_v25 = vld [vmem:[#allocation5 + $0x18] sm:$0xff]   ;;  %v7254_v63 = vld [vmem:[#allocation5 + $0x50] sm:$0xff]  }
0x1726   :  { %v7253_v54 = vld [vmem:[#allocation5 + $0x98] sm:$0xff]  }
0x1727   :  { %6165 = vmatmul.mubr.msk.bf16.vlgmr.msra.gmra.mxu1 %vm266_vm4, %v8656_v20  ;;  %6166 = vmatmul.mubr.msk.bf16.vlgmr.msra.gmra.mxu0 %vm266_vm4, %v8656_v20 }
0x1728   :  { %5280 = vmatpush1.bf16.msra.mxu1 %v6157_v24  ;;  %5321 = vmatpush1.bf16.msra.mxu0 %v6159_v42  ;;  %v7259_v24 = vld [vmem:[#allocation5 + $0xc8] sm:$0xff]  }
0x1729   :  { %5281 = vmatprep.subr.bf16.mxu1 %v6142_v7  ;;  %5322 = vmatprep.subr.bf16.mxu0 %v6144_v6  ;;  %v7260_v42 = vld [vmem:[#allocation5 + $0x8] sm:$0xff]   ;;  %v7262_v6 = vld [vmem:[#allocation5 + $0x40] sm:$0xff]  }
0x172a   :  { %5299 = vmatprep.mubr.bf16.mxu1 %v8979_v58  ;;  %5340 = vmatprep.mubr.bf16.mxu0 %v8979_v58  ;;  %v7240_v58 = vld [vmem:[#allocation5 + $0x30] sm:$0xff]   ;;  %v7261_v7 = vld [vmem:[#allocation5 + $0x88] sm:$0xff]  }
0x172c   :  { %5282 = vmatpush1.bf16.msra.mxu1 %v6141_v62  ;;  %5323 = vmatpush1.bf16.msra.mxu0 %v6143_v28  ;;  %v7263_v62 = vld [vmem:[#allocation5 + $0xc0] sm:$0xff]  }
0x172d   :  { %6714 = vmatprep.subr.bf16.mxu1 %v7234_v9  ;;  %6736 = vmatprep.subr.bf16.mxu0 %v7235_v30  ;;  %v7264_v28 = vld [vmem:[#allocation5] sm:$0xff]   ;;  %v7266_v30 = vld [vmem:[#allocation5 + $0x178] sm:$0xff]  }
0x172e   :  { %v7265_v9 = vld [vmem:[#allocation5 + $0x80] sm:$0xff]  }
0x172f   :  { %6167 = vmatmul.mubr.msk.bf16.vlgmr.msra.gmra.mxu1 %vm266_vm4, %v8656_v20  ;;  %6168 = vmatmul.mubr.msk.bf16.vlgmr.msra.gmra.mxu0 %vm266_vm4, %v8656_v20  ;;  %v7246_v20 = vld [vmem:[#allocation5 + $0x60] sm:$0xff]  }
0x1730   :  { %6715 = vmatpush3.bf16.msra.mxu1 %v7236_v23  ;;  %6737 = vmatpush3.bf16.msra.mxu0 %v7237_v50  ;;  %v7267_v23 = vld [vmem:[#allocation5 + $0x1f8] sm:$0xff]  }
0x1731   :  { %6716 = vmatprep.subr.bf16.mxu1 %v7238_v2  ;;  %6738 = vmatprep.subr.bf16.mxu0 %v7239_v14  ;;  %v6169_v50 = vld [vmem:[%s8829_s8 + $0x19] ss:$0 sm:$0xff]  ;;  %v8687_v2 = vld [vmem:[%s8827_s6 + $0x3] ss:$4 sm:$0xff] }
0x1732   :  { %5707 = vrot.lane.b32.xlu1 %v6169_v50, %s7393_s10  ;;  %v4779_v14 = vrot.slane %v8687_v2, %v7565_v43 }
0x1734   :  { %6717 = vmatpush3.bf16.msra.mxu1 %v7240_v58  ;;  %6739 = vmatpush3.bf16.msra.mxu0 %v7241_v5  ;;  %v4787_v58 = vrot.slane %v8687_v2, %v7568_v44  ;;  %v4783_v5 = vrot.slane %v8687_v2, %v7576_v46 }
0x1735   :  { %6718 = vmatprep.subr.bf16.mxu1 %v7242_v21  ;;  %6740 = vmatprep.subr.bf16.mxu0 %v7243_v16  ;;  %v4791_v21 = vrot.slane %v8687_v2, %v7579_v47 }
0x1738   :  { %6719 = vmatpush3.bf16.msra.mxu1 %v7244_v29  ;;  %6741 = vmatpush3.bf16.msra.mxu0 %v7245_v37 }
0x1739   :  { %6720 = vmatprep.subr.bf16.mxu1 %v7246_v20  ;;  %6742 = vmatprep.subr.bf16.mxu0 %v7247_v26 }
0x173c   :  { %6721 = vmatpush3.bf16.msra.mxu1 %v7248_v19  ;;  %6743 = vmatpush3.bf16.msra.mxu0 %v7249_v48 }
0x173d   :  { %6722 = vmatprep.subr.bf16.mxu1 %v7250_v41  ;;  %6744 = vmatprep.subr.bf16.mxu0 %v7251_v33 }
0x1740   :  { %6723 = vmatpush3.bf16.msra.mxu1 %v7252_v25  ;;  %6745 = vmatpush3.bf16.msra.mxu0 %v7253_v54 }
0x1741   :  { %6724 = vmatprep.subr.bf16.mxu1 %v7254_v63  ;;  %6746 = vmatprep.subr.bf16.mxu0 %v7255_v1 }
0x1744   :  { %6725 = vmatpush3.bf16.msra.mxu1 %v7256_v56  ;;  %6747 = vmatpush3.bf16.msra.mxu0 %v7257_v59 }
0x1745   :  { %6726 = vmatprep.subr.bf16.mxu1 %v7258_v55  ;;  %6748 = vmatprep.subr.bf16.mxu0 %v7259_v24 }
0x1748   :  { %6727 = vmatpush3.bf16.msra.mxu1 %v7260_v42  ;;  %6749 = vmatpush3.bf16.msra.mxu0 %v7261_v7  ;;  %v4799_v7 = vrot.slane %v8687_v2, %v7590_v60 }
0x1749   :  { %6728 = vmatprep.subr.bf16.mxu1 %v7262_v6  ;;  %6750 = vmatprep.subr.bf16.mxu0 %v7263_v62  ;;  %v4807_v6 = vrot.slane %v8687_v2, %v7593_v61 }
0x174c   :  { %6729 = vmatpush3.bf16.msra.mxu1 %v7264_v28  ;;  %6751 = vmatpush3.bf16.msra.mxu0 %v7265_v9 }
0x174d   :  { %6758 = vmatprep.subr.bf16.mxu1 %v7266_v30  ;;  %6780 = vmatprep.subr.bf16.mxu0 %v7267_v23 }
0x17d7   :  { %v5055_v16 = vpop.f32.mrf.mxu1  ;;  %v5096_v29 = vpop.f32.mrf.mxu0 }
0x17d8   :  { %v5056_v37 = vadd.f32 %v5055_v16, %v4779_v14  ;;  %v5097_v20 = vadd.f32 %v5096_v29, %v4787_v58 }
0x17d9   :  { %v5057_v26 = vpop.f32.mrf.mxu1  ;;  %v5098_v19 = vpop.f32.mrf.mxu0 }
0x17da   :  { %v5058_v48 = vadd.f32 %v5057_v26, %v4783_v5  ;;  %v5099_v41 = vadd.f32 %v5098_v19, %v4791_v21  ;;  %v5349_v33 = vmax.f32 %v5056_v37, 0.0  ;;  %v5351_v25 = vmax.f32 %v5097_v20, 0.0  ;;  %v7268_v5 = vld [vmem:[#allocation5 + $0x138] sm:$0xff]   ;;  %v7270_v37 = vld [vmem:[#allocation5 + $0x170] sm:$0xff]  }
0x17db   :  { %v5059_v54 = vpop.f32.mrf.mxu1  ;;  %v5100_v63 = vpop.f32.mrf.mxu0  ;;  %v7269_v21 = vld [vmem:[#allocation5 + $0x1b8] sm:$0xff]   ;;  %v7271_v20 = vld [vmem:[#allocation5 + $0x1f0] sm:$0xff]  }
0x17dc   :  { %v5350_v1 = vmax.f32 %v5058_v48, 0.0  ;;  %v5352_v56 = vmax.f32 %v5099_v41, 0.0  ;;  %v5365_v62 = vpack.c.bf16 %v5349_v33, %v5349_v33  ;;  %v5367_v28 = vpack.c.bf16 %v5351_v25, %v5351_v25  ;;  %v7272_v54 = vld [vmem:[#allocation5 + $0x130] sm:$0xff]  }
0x17dd   :  { %v5060_v59 = vpop.f32.mrf.mxu1  ;;  %v5101_v55 = vpop.f32.mrf.mxu0  ;;  %v7273_v63 = vld [vmem:[#allocation5 + $0x1b0] sm:$0xff]  }
0x17de   :  { %v5366_v24 = vpack.c.bf16 %v5350_v1, %v5350_v1  ;;  %v5368_v42 = vpack.c.bf16 %v5352_v56, %v5352_v56  ;;  %v7274_v59 = vld [vmem:[#allocation5 + $0x168] sm:$0xff]  }
0x17df   :  { %v8701_v9 = vpop.f32.mrf.mxu1  ;;  %v8703_v30 = vpop.f32.mrf.mxu0  ;;  %v7275_v55 = vld [vmem:[#allocation5 + $0x1e8] sm:$0xff]  }
0x17e0   :  { %5413 = vmatprep.mubr.bf16.mxu1 %v5366_v24  ;;  %5453 = vmatprep.mubr.bf16.mxu0 %v5368_v42 }
0x17e1   :  { %v5139_v23 = vpop.f32.mrf.mxu1  ;;  %v5180_v50 = vpop.f32.mrf.mxu0  ;;  %5414 = vmatmul.mubr.bf16.vlgmr.msra.gmra.mxu1 %v5365_v62  ;;  %5454 = vmatmul.mubr.bf16.vlgmr.msra.gmra.mxu0 %v5367_v28  ;;  %v8712_v62 = vld [vmem:[%s8827_s6 + $0x23] ss:$4 sm:$0xff] }
0x17e2   :  { %v5140_v14 = vadd.f32 %v5139_v23, %v4799_v7  ;;  %v5181_v58 = vadd.f32 %v5180_v50, %v4807_v6  ;;  %6759 = vmatpush3.bf16.msra.mxu1 %v7268_v5  ;;  %6781 = vmatpush3.bf16.msra.mxu0 %v7269_v21  ;;  %v7276_v7 = vld [vmem:[#allocation5 + $0x128] sm:$0xff]   ;;  %v7278_v50 = vld [vmem:[#allocation5 + $0x160] sm:$0xff]  }
0x17e3   :  { %v5141_v16 = vpop.f32.mrf.mxu1  ;;  %v5182_v29 = vpop.f32.mrf.mxu0  ;;  %6760 = vmatprep.subr.bf16.mxu1 %v7270_v37  ;;  %6782 = vmatprep.subr.bf16.mxu0 %v7271_v20  ;;  %v7277_v6 = vld [vmem:[#allocation5 + $0x1a8] sm:$0xff]  }
0x17e4   :  { %v5354_v26 = vmax.f32 %v5140_v14, 0.0  ;;  %v5356_v19 = vmax.f32 %v5181_v58, 0.0  ;;  %v7279_v14 = vld [vmem:[#allocation5 + $0x1e0] sm:$0xff]   ;;  %v4835_v58 = vrot.slane %v8712_v62, %v9113_v17 }
0x17e5   :  { %v5142_v48 = vpop.f32.mrf.mxu1  ;;  %v5183_v41 = vpop.f32.mrf.mxu0  ;;  %v7280_v16 = vld [vmem:[#allocation5 + $0x120] sm:$0xff]  }
0x17e6   :  { %v5370_v33 = vpack.c.bf16 %v5354_v26, %v5354_v26  ;;  %v5372_v25 = vpack.c.bf16 %v5356_v19, %v5356_v19  ;;  %6761 = vmatpush3.bf16.msra.mxu1 %v7272_v54  ;;  %6783 = vmatpush3.bf16.msra.mxu0 %v7273_v63  ;;  %v7281_v29 = vld [vmem:[#allocation5 + $0x1a0] sm:$0xff]   ;;  %v7282_v26 = vld [vmem:[#allocation5 + $0x158] sm:$0xff]   ;;  %v4795_v63 = vrot.slane %v8687_v2, %v7618_v4 }
0x17e7   :  { %v8705_v1 = vpop.f32.mrf.mxu1  ;;  %v8707_v56 = vpop.f32.mrf.mxu0  ;;  %6762 = vmatprep.subr.bf16.mxu1 %v7274_v59  ;;  %6784 = vmatprep.subr.bf16.mxu0 %v7275_v55  ;;  %v7283_v19 = vld [vmem:[#allocation5 + $0x1d8] sm:$0xff]   ;;  %v4803_v59 = vrot.slane %v8687_v2, %v9113_v17 }
0x17e8   :  { %5493 = vmatprep.mubr.bf16.mxu1 %v5370_v33  ;;  %5533 = vmatprep.mubr.bf16.mxu0 %v5372_v25  ;;  %v7284_v25 = vld [vmem:[#allocation5 + $0x118] sm:$0xff]   ;;  %v5138_v17 = vadd.f32 %v8701_v9, %v4795_v63  ;;  %v7296_v63 = vld [vmem:[#allocation5 + $0x100] sm:$0xff]  }
0x17e9   :  { %v5221_v24 = vpop.f32.mrf.mxu1  ;;  %v5262_v42 = vpop.f32.mrf.mxu0  ;;  %v7285_v54 = vld [vmem:[#allocation5 + $0x198] sm:$0xff]   ;;  %v5179_v2 = vadd.f32 %v8703_v30, %v4803_v59  ;;  %v7297_v30 = vld [vmem:[#allocation5 + $0x180] sm:$0xff]  }
0x17ea   :  { %6763 = vmatpush3.bf16.msra.mxu1 %v7276_v7  ;;  %6785 = vmatpush3.bf16.msra.mxu0 %v7277_v6  ;;  %v7286_v6 = vld [vmem:[#allocation5 + $0x150] sm:$0xff]  }
0x17eb   :  { %v5223_v28 = vpop.f32.mrf.mxu1  ;;  %v5264_v23 = vpop.f32.mrf.mxu0  ;;  %6764 = vmatprep.subr.bf16.mxu1 %v7278_v50  ;;  %6786 = vmatprep.subr.bf16.mxu0 %v7279_v14  ;;  %v4823_v50 = vrot.slane %v8712_v62, %v7579_v47  ;;  %v5353_v47 = vmax.f32 %v5138_v17, 0.0  ;;  %v7305_v17 = vld [vmem:[#allocation5 + $0x2b0] sm:$0xff]  }
0x17ec   :  { %v7287_v28 = vld [vmem:[#allocation5 + $0x1d0] sm:$0xff]   ;;  %v4815_v23 = vrot.slane %v8712_v62, %v7576_v46  ;;  %v7292_v46 = vld [vmem:[#allocation5 + $0x108] sm:$0xff]  }
0x17ed   :  { %v5224_v5 = vpop.f32.mrf.mxu1  ;;  %v5265_v21 = vpop.f32.mrf.mxu0  ;;  %v5369_v59 = vpack.c.bf16 %v5353_v47, %v5353_v47  ;;  %v7313_v47 = vld [vmem:[#allocation5 + $0x2a0] sm:$0xff]  }
0x17ee   :  { %6765 = vmatpush3.bf16.msra.mxu1 %v7280_v16  ;;  %6787 = vmatpush3.bf16.msra.mxu0 %v7281_v29  ;;  %v7288_v5 = vld [vmem:[#allocation5 + $0x110] sm:$0xff]   ;;  %v7290_v16 = vld [vmem:[#allocation5 + $0x148] sm:$0xff]  }
0x17ef   :  { %v8716_v37 = vpop.f32.mrf.mxu1  ;;  %v5342_v20 = vpop.f32.mrf.mxu0  ;;  %6766 = vmatprep.subr.bf16.mxu1 %v7282_v26  ;;  %6788 = vmatprep.subr.bf16.mxu0 %v7283_v19  ;;  %v7289_v21 = vld [vmem:[#allocation5 + $0x190] sm:$0xff]   ;;  %v7291_v29 = vld [vmem:[#allocation5 + $0x1c8] sm:$0xff]   ;;  %v5263_v26 = vadd.f32 %v5262_v42, %v4823_v50  ;;  %v7299_v42 = vld [vmem:[#allocation5 + $0x2f8] sm:$0xff]  }
0x17f0   :  { %v8718_v48 = vadd.f32 %v5342_v20, %v4835_v58  ;;  %v5222_v20 = vadd.f32 %v5221_v24, %v4815_v23  ;;  %v7293_v19 = vld [vmem:[#allocation5 + $0x188] sm:$0xff]   ;;  %v7298_v24 = vld [vmem:[#allocation5 + $0x278] sm:$0xff]  }
0x17f1   :  { %v8720_v41 = vpop.f32.mrf.mxu1  ;;  %v8722_v33 = vpop.f32.mrf.mxu0  ;;  %v5360_v9 = vmax.f32 %v5263_v26, 0.0  ;;  %v7300_v50 = vld [vmem:[#allocation5 + $0x238] sm:$0xff]   ;;  %v7310_v26 = vld [vmem:[#allocation5 + $0x260] sm:$0xff]  }
0x17f2   :  { %6767 = vmatpush3.bf16.msra.mxu1 %v7284_v25  ;;  %6789 = vmatpush3.bf16.msra.mxu0 %v7285_v54  ;;  %v5355_v25 = vmax.f32 %v5179_v2, 0.0  ;;  %v7294_v54 = vld [vmem:[#allocation5 + $0x140] sm:$0xff]   ;;  %v7306_v2 = vld [vmem:[#allocation5 + $0x268] sm:$0xff]  }
0x17f3   :  { %v5305_v55 = vpop.f32.mrf.mxu1  ;;  %v5346_v7 = vpop.f32.mrf.mxu0  ;;  %6768 = vmatprep.subr.bf16.mxu1 %v7286_v6  ;;  %6790 = vmatprep.subr.bf16.mxu0 %v7287_v28  ;;  %v5376_v23 = vpack.c.bf16 %v5360_v9, %v5360_v9  ;;  %v4819_v9 = vrot.slane %v8712_v62, %v7568_v44 }
0x17f4   :  { %v7295_v55 = vld [vmem:[#allocation5 + $0x1c0] sm:$0xff]   ;;  %v5358_v7 = vmax.f32 %v5222_v20, 0.0  ;;  %v5371_v6 = vpack.c.bf16 %v5355_v25, %v5355_v25  ;;  %v7309_v20 = vld [vmem:[#allocation5 + $0x2a8] sm:$0xff]   ;;  %v7314_v25 = vld [vmem:[#allocation5 + $0x258] sm:$0xff]  }
0x17f5   :  { %v5306_v14 = vpop.f32.mrf.mxu1  ;;  %v5347_v58 = vpop.f32.mrf.mxu0 }
0x17f6   :  { %6769 = vmatpush3.bf16.msra.mxu1 %v7288_v5  ;;  %6791 = vmatpush3.bf16.msra.mxu0 %v7289_v21  ;;  %v5374_v28 = vpack.c.bf16 %v5358_v7, %v5358_v7  ;;  %v7301_v14 = vld [vmem:[#allocation5 + $0x2b8] sm:$0xff]   ;;  %v7302_v58 = vld [vmem:[#allocation5 + $0x270] sm:$0xff]   ;;  %v4811_v7 = vrot.slane %v8712_v62, %v7565_v43  ;;  %v5261_v43 = vadd.f32 %v8707_v56, %v4819_v9 }
0x17f7   :  { %6770 = vmatprep.subr.bf16.mxu1 %v7290_v16  ;;  %6792 = vmatprep.subr.bf16.mxu0 %v7291_v29  ;;  %v7303_v5 = vld [vmem:[#allocation5 + $0x2f0] sm:$0xff]   ;;  %v7307_v16 = vld [vmem:[#allocation5 + $0x2e8] sm:$0xff]   ;;  %v9178_v56 = vld [vmem:[#allocation30_spill] sm:$0xff] }
0x17f8   :  { %v7304_v21 = vld [vmem:[#allocation5 + $0x230] sm:$0xff]   ;;  %v7308_v29 = vld [vmem:[#allocation5 + $0x228] sm:$0xff]  }
0x17fa   :  { %6771 = vmatpush3.bf16.msra.mxu1 %v7292_v46  ;;  %6793 = vmatpush3.bf16.msra.mxu0 %v7293_v19  ;;  %v7311_v46 = vld [vmem:[#allocation5 + $0x2e0] sm:$0xff]  }
0x17fb   :  { %6772 = vmatprep.subr.bf16.mxu1 %v7294_v54  ;;  %6794 = vmatprep.subr.bf16.mxu0 %v7295_v55  ;;  %v7312_v19 = vld [vmem:[#allocation5 + $0x220] sm:$0xff]   ;;  %v7315_v54 = vld [vmem:[#allocation5 + $0x2d8] sm:$0xff]  }
0x17fc   :  { %v7316_v55 = vld [vmem:[#allocation5 + $0x218] sm:$0xff]  }
0x17fe   :  { %6773 = vmatpush3.bf16.msra.mxu1 %v7296_v63  ;;  %6795 = vmatpush3.bf16.msra.mxu0 %v7297_v30  ;;  %v4831_v63 = vrot.slane %v8712_v62, %v7590_v60  ;;  %v4839_v30 = vrot.slane %v8712_v62, %v7593_v61  ;;  %v5359_v61 = vmax.f32 %v5261_v43, 0.0 }
0x17ff   :  { %6802 = vmatprep.subr.bf16.mxu1 %v7298_v24  ;;  %6824 = vmatprep.subr.bf16.mxu0 %v7299_v42  ;;  %v9181_v24 = vld [vmem:[#allocation33_spill] sm:$0xff]  ;;  %v9182_v42 = vmov 0.0  }
0x1800   :  { %v5304_v44 = vadd.f32 %v8720_v41, %v4831_v63  ;;  %v9179_v41 = vld [vmem:[#allocation31_spill] sm:$0xff] }
0x1801   :  { %5494 = vmatmul.mubr.bf16.vlgmr.msra.gmra.mxu1 %v5369_v59  ;;  %5534 = vmatmul.mubr.bf16.vlgmr.msra.gmra.mxu0 %v5371_v6  ;;  %v7317_v59 = vld [vmem:[#allocation5 + $0x210] sm:$0xff]   ;;  %v5220_v6 = vadd.f32 %v8705_v1, %v4811_v7 }
0x1802   :  { %6803 = vmatpush3.bf16.msra.mxu1 %v7300_v50  ;;  %5573 = vmatprep.mubr.bf16.mxu1 %v5374_v28 }
0x1803   :  { %6825 = vmatpush3.bf16.msra.mxu0 %v7301_v14  ;;  %5613 = vmatprep.mubr.bf16.mxu0 %v5376_v23  ;;  %v5357_v60 = vmax.f32 %v5220_v6, 0.0 }
0x1804   :  { %6804 = vmatprep.subr.bf16.mxu1 %v7302_v58  ;;  %6826 = vmatprep.subr.bf16.mxu0 %v7303_v5 }
0x1806   :  { %6805 = vmatpush3.bf16.msra.mxu1 %v7304_v21 }
0x1807   :  { %6827 = vmatpush3.bf16.msra.mxu0 %v7305_v17  ;;  %6806 = vmatprep.subr.bf16.mxu1 %v7306_v2 }
0x1808   :  { %6828 = vmatprep.subr.bf16.mxu0 %v7307_v16 }
0x180a   :  { %6807 = vmatpush3.bf16.msra.mxu1 %v7308_v29 }
0x180b   :  { %6829 = vmatpush3.bf16.msra.mxu0 %v7309_v20  ;;  %6808 = vmatprep.subr.bf16.mxu1 %v7310_v26 }
0x180c   :  { %6830 = vmatprep.subr.bf16.mxu0 %v7311_v46 }
0x180e   :  { %6809 = vmatpush3.bf16.msra.mxu1 %v7312_v19 }
0x180f   :  { %6831 = vmatpush3.bf16.msra.mxu0 %v7313_v47  ;;  %6810 = vmatprep.subr.bf16.mxu1 %v7314_v25 }
0x1810   :  { %6832 = vmatprep.subr.bf16.mxu0 %v7315_v54 }
0x1812   :  { %6811 = vmatpush3.bf16.msra.mxu1 %v7316_v55 }
0x1813   :  { %6833 = vmatpush3.bf16.msra.mxu0 %v8455_v31  ;;  %6812 = vmatprep.subr.bf16.mxu1 %v8458_v34  ;;  %v5345_v31 = vadd.f32 %v8722_v33, %v4839_v30  ;;  %v5362_v34 = vmax.f32 %v5304_v44, 0.0  ;;  %v9180_v33 = vld [vmem:[#allocation32_spill] sm:$0xff] }
0x1814   :  { %6834 = vmatprep.subr.bf16.mxu0 %v8463_v38 }
0x1815   :  { %v5364_v38 = vmax.f32 %v5345_v31, 0.0 }
0x1816   :  { %6813 = vmatpush3.bf16.msra.mxu1 %v7317_v59 }
0x1817   :  { %6835 = vmatpush3.bf16.msra.mxu0 %v8472_v15  ;;  %6814 = vmatprep.subr.bf16.mxu1 %v8475_v52  ;;  %v5373_v15 = vpack.c.bf16 %v5357_v60, %v5357_v60  ;;  %v5375_v52 = vpack.c.bf16 %v5359_v61, %v5359_v61 }
0x1818   :  { %6836 = vmatprep.subr.bf16.mxu0 %v8479_v0  ;;  %v5378_v0 = vpack.c.bf16 %v5362_v34, %v5362_v34 }
0x181a   :  { %6815 = vmatpush3.bf16.msra.mxu1 %v8484_v3  ;;  %v5380_v3 = vpack.c.bf16 %v5364_v38, %v5364_v38 }
0x181b   :  { %6837 = vmatpush3.bf16.msra.mxu0 %v8487_v57  ;;  %6816 = vmatprep.subr.bf16.mxu1 %v8490_v11  ;;  %v9162_v57 = vld [vmem:[#allocation14_spill] sm:$0xff]  ;;  %v9163_v11 = vld [vmem:[#allocation15_spill] sm:$0xff] }
0x181c   :  { %6838 = vmatprep.subr.bf16.mxu0 %v8493_v8  ;;  %v9164_v8 = vld [vmem:[#allocation16_spill] sm:$0xff] }
0x181e   :  { %6817 = vmatpush3.bf16.msra.mxu1 %v8496_v27  ;;  %v9165_v27 = vld [vmem:[#allocation17_spill] sm:$0xff] }
0x181f   :  { %6839 = vmatpush3.bf16.msra.mxu0 %v8499_v36  ;;  %6846 = vmatprep.subr.bf16.mxu1 %v8502_v22  ;;  %v9166_v36 = vld [vmem:[#allocation18_spill] sm:$0xff]  ;;  %v9167_v22 = vld [vmem:[#allocation19_spill] sm:$0xff] }
0x1820   :  { %6868 = vmatprep.subr.bf16.mxu0 %v8505_v45  ;;  %v9168_v45 = vld [vmem:[#allocation20_spill] sm:$0xff] }
0x1821   :  { %5574 = vmatmul.mubr.bf16.vlgmr.msra.gmra.mxu1 %v5373_v15 }
0x1822   :  { %5614 = vmatmul.mubr.bf16.vlgmr.msra.gmra.mxu0 %v5375_v52  ;;  %6847 = vmatpush3.bf16.msra.mxu1 %v8508_v35  ;;  %v4827_v35 = vrot.slane %v8712_v62, %v7618_v4  ;;  %v9177_v4 = vld [vmem:[#allocation29_spill] sm:$0xff]  ;;  %v5363_v62 = vmax.f32 %v8718_v48, 0.0 }
0x1823   :  { %5653 = vmatprep.mubr.bf16.mxu1 %v5378_v0  ;;  %6869 = vmatpush3.bf16.msra.mxu0 %v8511_v39  ;;  %v9169_v39 = vld [vmem:[#allocation21_spill] sm:$0xff] }
0x1824   :  { %5693 = vmatprep.mubr.bf16.mxu0 %v5380_v3  ;;  %6848 = vmatprep.subr.bf16.mxu1 %v8514_v10  ;;  %v9170_v10 = vld [vmem:[#allocation22_spill] sm:$0xff]  ;;  %v5379_v28 = vpack.c.bf16 %v5363_v62, %v5363_v62 }
0x1825   :  { %6870 = vmatprep.subr.bf16.mxu0 %v8517_v53  ;;  %v9171_v53 = vld [vmem:[#allocation23_spill] sm:$0xff] }
0x1826   :  { %6849 = vmatpush3.bf16.msra.mxu1 %v8520_v32  ;;  %v9172_v32 = vld [vmem:[#allocation24_spill] sm:$0xff] }
0x1827   :  { %6871 = vmatpush3.bf16.msra.mxu0 %v8523_v49  ;;  %6850 = vmatprep.subr.bf16.mxu1 %v8526_v40  ;;  %v5302_v49 = vadd.f32 %v8716_v37, %v4827_v35  ;;  %v9173_v40 = vld [vmem:[#allocation25_spill] sm:$0xff] }
0x1828   :  { %6872 = vmatprep.subr.bf16.mxu0 %v8529_v51  ;;  %v9174_v51 = vld [vmem:[#allocation26_spill] sm:$0xff] }
0x1829   :  { %v5361_v1 = vmax.f32 %v5302_v49, 0.0 }
0x182a   :  { %6851 = vmatpush3.bf16.msra.mxu1 %v8532_v18  ;;  %v9175_v18 = vld [vmem:[#allocation27_spill] sm:$0xff] }
0x182b   :  { %6873 = vmatpush3.bf16.msra.mxu0 %v8535_v13  ;;  %6852 = vmatprep.subr.bf16.mxu1 %v9162_v57  ;;  %v9176_v13 = vld [vmem:[#allocation28_spill] sm:$0xff]  ;;  %v5377_v37 = vpack.c.bf16 %v5361_v1, %v5361_v1 }
0x182c   :  { %6874 = vmatprep.subr.bf16.mxu0 %v9163_v11 }
0x182e   :  { %6853 = vmatpush3.bf16.msra.mxu1 %v9164_v8 }
0x182f   :  { %6875 = vmatpush3.bf16.msra.mxu0 %v9165_v27  ;;  %6854 = vmatprep.subr.bf16.mxu1 %v9166_v36 }
0x1830   :  { %6876 = vmatprep.subr.bf16.mxu0 %v9167_v22 }
0x1832   :  { %6855 = vmatpush3.bf16.msra.mxu1 %v9168_v45 }
0x1833   :  { %6877 = vmatpush3.bf16.msra.mxu0 %v9169_v39  ;;  %6856 = vmatprep.subr.bf16.mxu1 %v9170_v10  ;;  %v5708_v10 = vpop.permute.xlu1 %5707 }
0x1834   :  { %6878 = vmatprep.subr.bf16.mxu0 %v9171_v53 }
0x1836   :  { %6857 = vmatpush3.bf16.msra.mxu1 %v9172_v32 }
0x1837   :  { %6879 = vmatpush3.bf16.msra.mxu0 %v9173_v40  ;;  %6858 = vmatprep.subr.bf16.mxu1 %v9174_v51 }
0x1838   :  { %6880 = vmatprep.subr.bf16.mxu0 %v9175_v18 }
0x183a   :  { %6859 = vmatpush3.bf16.msra.mxu1 %v9176_v13 }
0x183b   :  { %6881 = vmatpush3.bf16.msra.mxu0 %v9177_v4  ;;  %6860 = vmatprep.subr.bf16.mxu1 %v9178_v56 }
0x183c   :  { %6882 = vmatprep.subr.bf16.mxu0 %v9179_v41 }
0x183e   :  { %6861 = vmatpush3.bf16.msra.mxu1 %v9180_v33  ;;  %v7076_v33 = vld [vmem:[%s8828_s7 + $0x8] sm:$0xff]  }
0x183f   :  { %6883 = vmatpush3.bf16.msra.mxu0 %v9181_v24  ;;  %6915 = vmatprep.subr.bf16.mxu1 %v9182_v42 }
0x1841   :  { %5654 = vmatmul.mubr.bf16.vlgmr.msra.gmra.mxu1 %v5377_v37  ;;  %v7077_v37 = vld [vmem:[%s8828_s7] sm:$0xff]  }
0x1842   :  { %5694 = vmatmul.mubr.bf16.vlgmr.msra.gmra.mxu0 %v5379_v28  ;;  %6919 = vmatprep.mubr.msk.bf16.mxu1 %vm7390_vm2, %v9182_v42 }
0x1843   :  { %6916 = vmatpush3.bf16.msra.mxu1 %v7076_v33 }
0x1844   :  { %6917 = vmatprep.subr.bf16.mxu1 %v9182_v42  ;;  %v6172_v42 = vld [vmem:[%s8829_s8 + $0x2] ss:$0 sm:$0xff] }
0x1847   :  { %6918 = vmatpush3.bf16.msra.mxu1 %v7077_v37 }
0x18a1   :  { %v6730_v23 = vpop.f32.mrf.mxu1  ;;  %v6752_v50 = vpop.f32.mrf.mxu0 }
0x18a3   :  { %v6731_v14 = vpop.f32.mrf.mxu1  ;;  %v6753_v58 = vpop.f32.mrf.mxu0 }
0x18a4   :  { %v6732_v48 = vadd.f32 %v6731_v14, %v6730_v23  ;;  %v6754_v5 = vadd.f32 %v6753_v58, %v6752_v50  ;;  %v6170_v50 = vld [vmem:[%s8829_s8 + $0x1e] ss:$0 sm:$0xff]  ;;  %v6171_v58 = vld [vmem:[%s8829_s8 + $0x1f] ss:$0 sm:$0xff] }
0x18a5   :  { %v6733_v21 = vpop.f32.mrf.mxu1  ;;  %v6755_v17 = vpop.f32.mrf.mxu0 }
0x18a6   :  { %v5456_v2 = vadd.f32 %v6754_v5, %v6732_v48 }
0x18a7   :  { %v6734_v16 = vpop.f32.mrf.mxu1  ;;  %v6756_v29 = vpop.f32.mrf.mxu0 }
0x18c1   :  { %v6774_v20 = vpop.f32.mrf.mxu1  ;;  %v6796_v26 = vpop.f32.mrf.mxu0 }
0x18c3   :  { %v6775_v46 = vpop.f32.mrf.mxu1  ;;  %v6797_v19 = vpop.f32.mrf.mxu0 }
0x18c4   :  { %v6776_v31 = vadd.f32 %v6775_v46, %v6774_v20  ;;  %v6798_v61 = vadd.f32 %v6797_v19, %v6796_v26 }
0x18c5   :  { %v6777_v47 = vpop.f32.mrf.mxu1  ;;  %v6799_v25 = vpop.f32.mrf.mxu0 }
0x18c6   :  { %v5496_v60 = vadd.f32 %v6776_v31, %v5456_v2 }
0x18c7   :  { %v6778_v54 = vpop.f32.mrf.mxu1  ;;  %v6800_v55 = vpop.f32.mrf.mxu0 }
0x18c8   :  { %v5536_v38 = vadd.f32 %v6798_v61, %v5496_v60 }
0x18e1   :  { %v6818_v7 = vpop.f32.mrf.mxu1 }
0x18e2   :  { %v6840_v9 = vpop.f32.mrf.mxu0 }
0x18e3   :  { %v6819_v63 = vpop.f32.mrf.mxu1 }
0x18e4   :  { %v6841_v30 = vpop.f32.mrf.mxu0  ;;  %v6820_v34 = vadd.f32 %v6819_v63, %v6818_v7 }
0x18e5   :  { %v6821_v59 = vpop.f32.mrf.mxu1  ;;  %v6842_v0 = vadd.f32 %v6841_v30, %v6840_v9 }
0x18e6   :  { %v6843_v6 = vpop.f32.mrf.mxu0  ;;  %v5576_v15 = vadd.f32 %v6820_v34, %v5536_v38 }
0x18e7   :  { %v6822_v43 = vpop.f32.mrf.mxu1 }
0x18e8   :  { %v6844_v44 = vpop.f32.mrf.mxu0  ;;  %v5616_v11 = vadd.f32 %v6842_v0, %v5576_v15 }
0x1901   :  { %v6862_v52 = vpop.f32.mrf.mxu1 }
0x1902   :  { %v6884_v3 = vpop.f32.mrf.mxu0 }
0x1903   :  { %v6863_v57 = vpop.f32.mrf.mxu1 }
0x1904   :  { %v6864_v8 = vadd.f32 %v6863_v57, %v6862_v52  ;;  %v6885_v27 = vpop.f32.mrf.mxu0 }
0x1905   :  { %v6865_v36 = vpop.f32.mrf.mxu1  ;;  %v6886_v45 = vadd.f32 %v6885_v27, %v6884_v3 }
0x1906   :  { %v5656_v22 = vadd.f32 %v6864_v8, %v5616_v11  ;;  %v6887_v35 = vpop.f32.mrf.mxu0 }
0x1907   :  { %v6866_v39 = vpop.f32.mrf.mxu1 }
0x1908   :  { %v6888_v53 = vpop.f32.mrf.mxu0  ;;  %v5696_v32 = vadd.f32 %v6886_v45, %v5656_v22 }
0x190a   :  { %v5710_v49 = vadd.f32 %v5708_v10, %v5696_v32 }
0x190c   :  { %v5712_v40 = vrot.slane %v5710_v49, 6 }
0x190e   :  { %5713 = vrot.lane.b32.xlu0 %v5712_v40, %s7392_s5 }
0x1980   :  { %v5714_v51 = vpop.permute.xlu0 %5713 }
0x1981   :  { %v5716_v18 = vadd.f32 %v5714_v51, %v8652_v12 }
0x1983   :  { %v5719_v13 = vsel %vm3561_vm6, %v5716_v18, 0.0 }
0x1984   :  { %5720 = vadd.xlane.f32.xlu1 %v5719_v13 }
0x1a0d   :  { %v5721_v1 = vpop.xlane.xlu1 %5720 }
0x1a0e   :  { %v5722_v4 = vmul.f32 0.03125, %v5721_v1 }
0x1a10   :  { %v5723_v56 = vsub.f32 %v5716_v18, %v5722_v4 }
0x1a12   :  { %v5724_v62 = vmul.f32 %v5723_v56, %v5723_v56 }
0x1a14   :  { %v5725_v41 = vsel %vm3561_vm6, %v5724_v62, 0.0 }
0x1a15   :  { %5726 = vadd.xlane.f32.xlu0 %v5725_v41 }
0x1a9e   :  { %v5727_v12 = vpop.xlane.xlu0 %5726 }
0x1a9f   :  { %v5728_v24 = vmul.f32 0.03125, %v5727_v12 }
0x1aa1   :  { %v5729_v28 = vadd.f32 1e-05, %v5728_v24 }
0x1aa3   :  { %7096 = vrsqrt.f32 %v5729_v28 }
0x1ab0   :  { %v7097_v23 = vpop.eup %7096 }
0x1ab1   :  { %v5731_v14 = vmul.f32 %v7097_v23, %v5723_v56 }
0x1ab3   :  { %v5736_v48 = vmul.f32 %v6170_v50, %v5731_v14 }
0x1ab5   :  { %v5741_v5 = vadd.f32 %v6171_v58, %v5736_v48 }
0x1ab7   :  { %v5746_v21 = vpack.c.bf16 %v5741_v5, %v5741_v5 }
0x1ab9   :  { %v5753_v17 = vrot.slane %v5746_v21, 1 }
0x1abb   :  { %6920 = vmatmul.mubr.msk.bf16.vlgmr.msra.gmra.mxu1 %vm266_vm4, %v5753_v17 }
0x1b7b   :  { %v5803_v2 = vpop.f32.mrf.mxu1 }
0x1b7c   :  { %v5804_v16 = vadd.f32 %v6172_v42, %v5803_v2 }
0x1b7d   :  { %v6921_v29 = vpop.f32.mrf.mxu1 }
0x1b7e   :  { %5810 = vst.msk [vmem:[#allocation7] sm:$0x3] %vm5809_vm7, %v5804_v16 }
0x1b7f   :  { %v5806_v20 = vpop.f32.mrf.mxu1 }
0x1b80   :  { %7369 = shalt.err (!%p7366_p0)
}
0x1b81   :  { %5820 = dma.vmem_to_hbm [thread:$0]  %s5818_s13, 32, %s8830_s9, [#allocation4]   ;;  %v6922_v26 = vpop.f32.mrf.mxu1 }
0x1b82   :  { %7382 = dma.done.wait [#allocation4], 32  }
0x1b83   :  { %7383 = vsyncadd [#allocation4], 4294967264 }
0x1b84   :  { %5824 = vsyncpa [#allocation3], 1 }
0x1b85   :  { %5825 = vsyncpa [#allocation6], 1 }
0x1b86   :  { %5826 = vsyncpa [#allocation4], 1 }

</bundles_post_ra>
